<compile_context>
chip_gen: v7x
topology: tpu7x:2x2x1
jax: 0.10.0
libtpu: 0.0.40
codegen_flags: <defaults>
</compile_context>

<pallas_src>
import functools

import numpy as np
import jax
import jax.numpy as jnp
from jax import lax
from jax.experimental import pallas as pl
from jax.experimental.pallas import tpu as pltpu


# ----------------------------------------------------------------------------
# Parameter setup (plain JAX glue; matrix inverse is not the forward hot path)
# ----------------------------------------------------------------------------
def cayley(W):
    """Cayley transform of an (out, in) matrix -> semi-orthogonal (out, in)."""
    cout, cin = W.shape
    if cin > cout:
        return cayley(W.T).T
    U, V = W[:cin, :], W[cin:, :]
    I = jnp.eye(cin, dtype=W.dtype)
    A = U - U.T + V.T @ V
    iIpA = jnp.linalg.inv(I + A)
    return jnp.concatenate([iIpA @ (I - A), -2.0 * V @ iIpA], axis=0)


def init_lbnn_params(key, input_size, output_size, hidden_sizes, scale, groups):
    """Deterministic synthetic parameters matching LBNN.__init__ layer shapes."""
    layer_specs = []
    prev = input_size
    for i, h in enumerate(hidden_sizes):
        s = float(np.sqrt(scale)) if i == 0 else 1.0
        layer_specs.append((prev, h, s, groups))
        prev = h
    layer_specs.append((prev, output_size, float(np.sqrt(scale)), output_size))

    params = []
    for (fin, fout, s, g) in layer_specs:
        key, k1, k2 = jax.random.split(key, 3)
        bound = 1.0 / np.sqrt(fin)            # nn.Linear default init
        W = jax.random.uniform(k1, (fout, fin), jnp.float32, -bound, bound)
        b = jax.random.uniform(k2, (fout,), jnp.float32, -bound, bound)
        alpha = jnp.linalg.norm(W)            # alpha initialized to ||W||_F
        params.append(dict(W=W, b=b, alpha=alpha, scale=s, groups=g,
                           fin=fin, fout=fout))
    return params


# ----------------------------------------------------------------------------
# Small helpers
# ----------------------------------------------------------------------------
def _round_up(n, m):
    return ((n + m - 1) // m) * m


def _is_pow2(n):
    return n >= 1 and (n & (n - 1)) == 0


@functools.lru_cache(maxsize=None)
def _native_sublane_roll_ok():
    """Probe whether pltpu.roll along axis 0 works in the current execution mode
    (and has jnp.roll semantics).  On hardware it is the native XLU sublane
    rotate we want; some interpret/emulation modes cannot evaluate it, in which
    case we fall back to an equivalent slice+concatenate rotate."""
    try:
        def k(x_ref, o_ref):
            o_ref[...] = pltpu.roll(x_ref[...], 3, axis=0)
        x = jnp.arange(8 * 128, dtype=jnp.float32).reshape(8, 128)
        got = jax.block_until_ready(
            pl.pallas_call(k, out_shape=jax.ShapeDtypeStruct((8, 128),
                                                             jnp.float32))(x))
        return bool(jnp.array_equal(got, jnp.roll(x, 3, axis=0)))
    except Exception:
        return False


def _roll_rows(h, shift, use_native):
    """result[i, :] = h[(i - shift) % F, :]  (jnp.roll semantics, axis 0)."""
    F = h.shape[0]
    shift = shift % F
    if shift == 0:
        return h
    if use_native:
        return pltpu.roll(h, shift, axis=0)          # native XLU sublane rotate
    # Equivalent rotate expressed with static slices + concatenate.
    return jnp.concatenate([h[F - shift:, :], h[:F - shift, :]], axis=0)


# ----------------------------------------------------------------------------
# GroupSort (feature-major: sort along the sublane/feature axis, per column)
# ----------------------------------------------------------------------------
def _make_groupsort_stages(n_feat, tile_b, group_size):
    """Compare-exchange schedule with masks hoisted (built once per config).

    Each stage is (dist, use_up, keep_min, active):
        up      = h rolled so up[i] = h[i + dist]
        dn      = h rolled so dn[i] = h[i - dist]
        partner = where(use_up, up, dn)
        cand    = where(keep_min, min(h, partner), max(h, partner))
        h       = cand if active is None else where(active, cand, h)

    Power-of-two group sizes use a bitonic network (10 stages for 16 elements
    vs 16 odd-even passes); other sizes fall back to odd-even transposition.
    """
    row = lax.broadcasted_iota(jnp.int32, (n_feat, tile_b), 0)
    ig = row % group_size                      # local index inside the group
    stages = []
    if _is_pow2(group_size):
        k = 2
        while k <= group_size:
            j = k // 2
            while j >= 1:
                low = (ig & j) == 0            # lower element of the pair
                asc = (ig & k) == 0            # ascending sub-sequence
                keep_min = low == asc
                # partner index is exactly ig ^ j (stays inside the group, no
                # wrap contamination), so no extra boundary masking is needed.
                stages.append((j, low, keep_min, None))
                j //= 2
            k *= 2
    else:
        for p in range(group_size):            # odd-even transposition fallback
            left = jnp.logical_and(ig % 2 == p % 2, ig < group_size - 1)
            right = jnp.logical_and(ig >= 1, (ig - 1) % 2 == p % 2)
            stages.append((1, left, left, jnp.logical_or(left, right)))
    return stages


def _group_sort(h, stages, use_native_roll):
    """Ascending sort inside contiguous feature groups (axis 0)."""
    F = h.shape[0]
    for dist, use_up, keep_min, active in stages:
        up = _roll_rows(h, F - dist, use_native_roll)   # up[i] = h[(i+dist) % F]
        dn = _roll_rows(h, dist, use_native_roll)       # dn[i] = h[(i-dist) % F]
        partner = jnp.where(use_up, up, dn)
        cand = jnp.where(keep_min, jnp.minimum(h, partner),
                         jnp.maximum(h, partner))
        h = cand if active is None else jnp.where(active, cand, h)
    return h


# ----------------------------------------------------------------------------
# Pallas kernel
# ----------------------------------------------------------------------------
def make_lbnn_kernel(layer_dims, group_sizes, tile_b, use_native_roll):
    """layer_dims[l] = (fin_l, fout_l); per-layer scale is pre-folded into Q."""

    def kernel(x_ref, q_ref, b_ref, o_ref):
        # Hoisted GroupSort masks: one iota + mask set per distinct
        # (fout, group_size) config, shared by every layer that uses it.
        stage_cache = {}
        for (_, fout), gs in zip(layer_dims, group_sizes):
            if gs > 1 and (fout, gs) not in stage_cache:
                stage_cache[(fout, gs)] = _make_groupsort_stages(fout, tile_b, gs)

        h = x_ref[...]                                   # (fin0, tile_b) feature-major
        for l, ((fin, fout), gs) in enumerate(zip(layer_dims, group_sizes)):
            q = q_ref[l][:fout, :fin]                    # (fout, fin), scale folded in
            b = b_ref[l][:fout, :]                       # (fout, 1)
            h = jnp.dot(q, h, preferred_element_type=jnp.float32) + b
            if gs > 1:
                h = _group_sort(h, stage_cache[(fout, gs)], use_native_roll)
        o_ref[...] = h.astype(o_ref.dtype)               # lane-dense (out, tile_b)

    return kernel


def lbnn_forward_pallas(x, qs, biases, group_sizes, *, tile_b=None):
    """LBNN forward.  x: (B, input_size); qs[l]: (fout, fin) scaled orthogonal
    weight; biases[l]: (fout,).  Returns (B, output_size)."""
    B, fin0 = x.shape
    n_layers = len(qs)
    layer_dims = tuple((int(q.shape[1]), int(q.shape[0])) for q in qs)
    assert layer_dims[0][0] == fin0
    out_dim = layer_dims[-1][1]
    max_fout = max(d[1] for d in layer_dims)
    max_fin = max(d[0] for d in layer_dims)

    # Batch lives on the 128-lane axis: tile it in multiples of 128 and
    # zero-pad the remainder (padded columns are sliced off below; GroupSort is
    # per-column, so they never contaminate real outputs).
    if tile_b is None:
        tile_b = min(1024, _round_up(B, 128))
    tile_b = max(128, _round_up(tile_b, 128))
    padded_b = _round_up(B, tile_b)
    grid = (padded_b // tile_b,)

    xt = jnp.zeros((fin0, padded_b), jnp.float32)
    xt = xt.at[:, :B].set(jnp.asarray(x, jnp.float32).T)

    # Consolidated, zero-padded parameter stacks (3 inputs total).
    q_all = jnp.zeros((n_layers, max_fout, max_fin), jnp.float32)
    b_all = jnp.zeros((n_layers, max_fout, 1), jnp.float32)
    for l, (q, b) in enumerate(zip(qs, biases)):
        fout, fin = q.shape
        q_all = q_all.at[l, :fout, :fin].set(jnp.asarray(q, jnp.float32))
        b_all = b_all.at[l, :fout, 0].set(jnp.asarray(b, jnp.float32).reshape(-1))

    kernel = make_lbnn_kernel(layer_dims, tuple(int(g) for g in group_sizes),
                              tile_b, _native_sublane_roll_ok())

    out_t = pl.pallas_call(
        kernel,
        out_shape=jax.ShapeDtypeStruct((out_dim, padded_b), jnp.float32),
        grid_spec=pltpu.PrefetchScalarGridSpec(
            num_scalar_prefetch=0,
            grid=grid,
            in_specs=[
                pl.BlockSpec((fin0, tile_b), lambda i: (0, i)),
                pl.BlockSpec((n_layers, max_fout, max_fin), lambda i: (0, 0, 0)),
                pl.BlockSpec((n_layers, max_fout, 1), lambda i: (0, 0, 0)),
            ],
            out_specs=pl.BlockSpec((out_dim, tile_b), lambda i: (0, i)),
        ),
        compiler_params=pltpu.CompilerParams(
            dimension_semantics=("parallel",)),   # batch tiles shard across TCs
    )(xt, q_all, b_all)

    return out_t[:, :B].T                         # back to (B, output_size)


# ----------------------------------------------------------------------------
# Pure-JAX reference (same semantics) for a correctness check
# ----------------------------------------------------------------------------
def lbnn_forward_ref(x, params):
    h = x
    for p in params:
        Q = cayley(p["alpha"] * p["W"] / jnp.linalg.norm(p["W"]))
        h = p["scale"] * (h @ Q.T) + p["b"]
        gs = p["fout"] // p["groups"]
        if gs > 1:
            B = h.shape[0]
            h = jnp.sort(h.reshape(B, p["groups"], gs), axis=-1)
            h = h.reshape(B, p["fout"])
    return h


# ----------------------------------------------------------------------------
if __name__ == "__main__":
    key = jax.random.PRNGKey(0)

    # LBNN(input_size=16, output_size=1, hidden_sizes=[32,32,32,32],
    #      scale=2.0, groups=2, orthornormal_layer='cayley')
    input_size, output_size = 16, 1
    hidden_sizes = [32, 32, 32, 32]
    scale, groups = 2.0, 2
    B = 200            # not a multiple of the batch tile -> exercises padding

    key, kx = jax.random.split(key)
    x = jax.random.normal(kx, (B, input_size), jnp.float32)
    params = init_lbnn_params(key, input_size, output_size, hidden_sizes,
                              scale, groups)

    # Parameter setup (not the hot path): Cayley-orthogonalize and fold the
    # per-layer scale straight into the weight so the kernel skips the multiply.
    qs, biases, group_sizes = [], [], []
    for p in params:
        Q = cayley(p["alpha"] * p["W"] / jnp.linalg.norm(p["W"]))   # (fout, fin)
        qs.append(p["scale"] * Q)
        biases.append(p["b"])
        group_sizes.append(p["fout"] // p["groups"])

    out = jax.block_until_ready(
        lbnn_forward_pallas(x, qs, biases, group_sizes, tile_b=128))
    ref = jax.block_until_ready(lbnn_forward_ref(x, params))

    assert out.shape == (B, output_size)
    np.testing.assert_allclose(np.asarray(out), np.asarray(ref),
                               rtol=1e-4, atol=2e-4)
    print("KERNEL_OK")
</pallas_src>

<mosaic_0001>
module attributes {stable_mosaic.version = 11 : i64} {
  func.func @k(%arg0: memref<8x128xf32, #tpu.memory_space<vmem>>, %arg1: memref<8x128xf32, #tpu.memory_space<vmem>>) attributes {dimension_semantics = [], scalar_prefetch = 0 : i64, scratch_operands = 0 : i64, tpu.core_type = #tpu.core_type<tc>} {
    %c0 = arith.constant 0 : index
    %c0_0 = arith.constant 0 : index
    %0 = vector.load %arg0[%c0, %c0_0] : memref<8x128xf32, #tpu.memory_space<vmem>>, vector<8x128xf32>
    %c3_i32 = arith.constant 3 : i32
    %1 = tpu.dynamic_rotate %0 by %c3_i32 dim 0 : vector<8x128xf32>, i32 -> vector<8x128xf32>
    %c0_1 = arith.constant 0 : index
    %c0_2 = arith.constant 0 : index
    %2 = vector.load %arg1[%c0_1, %c0_2] : memref<8x128xf32, #tpu.memory_space<vmem>>, vector<8x128xf32>
    tpu.vector_store %arg1[%c0_1, %c0_2], %1 {strides = array<i32>} : memref<8x128xf32, #tpu.memory_space<vmem>>, vector<8x128xf32>,
    return
  }
}

module attributes {stable_mosaic.version = 11 : i64} {
  func.func @kernel(%arg0: i32, %arg1: memref<16x128xf32, #tpu.memory_space<vmem>>, %arg2: memref<5x32x32xf32, #tpu.memory_space<vmem>>, %arg3: memref<5x32x1xf32, #tpu.memory_space<vmem>>, %arg4: memref<1x128xf32, #tpu.memory_space<vmem>>) attributes {dimension_semantics = [#tpu.dimension_semantics<parallel>], iteration_bounds = array<i64: 2>, scalar_prefetch = 0 : i64, scratch_operands = 0 : i64, tpu.core_type = #tpu.core_type<tc>, window_params = [{transform_indices = @transform_0, window_bounds = array<i64: 16, 128>}, {pipeline_mode = #tpu.pipeline_mode<synchronous>, transform_indices = @transform_1, window_bounds = array<i64: 5, 32, 32>}, {pipeline_mode = #tpu.pipeline_mode<synchronous>, transform_indices = @transform_2, window_bounds = array<i64: 5, 32, 1>}, {transform_indices = @transform_3, window_bounds = array<i64: 1, 128>}]} {
    %0 = tpu.iota {dimensions = array<i32: 0>} : vector<32x128xi32>
    %c16_i32 = arith.constant 16 : i32
    %c0_i32 = arith.constant 0 : i32
    %1 = arith.cmpi eq, %c16_i32, %c0_i32 : i32
    %c1_i32 = arith.constant 1 : i32
    %2 = arith.select %1, %c1_i32, %c16_i32 : i32
    %3 = vector.broadcast %2 : i32 to vector<32x128xi32>
    %4 = arith.remsi %0, %3 : vector<32x128xi32>
    %c0_i32_0 = arith.constant 0 : i32
    %5 = vector.broadcast %c0_i32_0 : i32 to vector<32x128xi32>
    %6 = arith.cmpi ne, %4, %5 : vector<32x128xi32>
    %c0_i32_1 = arith.constant 0 : i32
    %7 = vector.broadcast %c0_i32_1 : i32 to vector<32x128xi32>
    %8 = arith.cmpi slt, %4, %7 : vector<32x128xi32>
    %c0_i32_2 = arith.constant 0 : i32
    %9 = arith.cmpi slt, %2, %c0_i32_2 : i32
    %10 = vector.broadcast %9 : i1 to vector<32x128xi1>
    %11 = vector.broadcast %10 : vector<32x128xi1> to vector<32x128xi1>
    %12 = arith.xori %8, %11 : vector<32x128xi1>
    %13 = arith.andi %12, %6 : vector<32x128xi1>
    %14 = vector.broadcast %2 : i32 to vector<32x128xi32>
    %15 = arith.addi %4, %14 : vector<32x128xi32>
    %16 = arith.select %13, %15, %4 : vector<32x128xi1>, vector<32x128xi32>
    %c1_i32_3 = arith.constant 1 : i32
    %17 = vector.broadcast %c1_i32_3 : i32 to vector<32x128xi32>
    %18 = arith.andi %16, %17 : vector<32x128xi32>
    %c0_i32_4 = arith.constant 0 : i32
    %19 = vector.broadcast %c0_i32_4 : i32 to vector<32x128xi32>
    %20 = arith.cmpi eq, %18, %19 : vector<32x128xi32>
    %c2_i32 = arith.constant 2 : i32
    %21 = vector.broadcast %c2_i32 : i32 to vector<32x128xi32>
    %22 = arith.andi %16, %21 : vector<32x128xi32>
    %c0_i32_5 = arith.constant 0 : i32
    %23 = vector.broadcast %c0_i32_5 : i32 to vector<32x128xi32>
    %24 = arith.cmpi eq, %22, %23 : vector<32x128xi32>
    %25 = arith.xori %20, %24 : vector<32x128xi1>
    %cst = arith.constant dense<true> : vector<32x128xi1>
    %26 = arith.xori %25, %cst : vector<32x128xi1>
    %c2_i32_6 = arith.constant 2 : i32
    %27 = vector.broadcast %c2_i32_6 : i32 to vector<32x128xi32>
    %28 = arith.andi %16, %27 : vector<32x128xi32>
    %c0_i32_7 = arith.constant 0 : i32
    %29 = vector.broadcast %c0_i32_7 : i32 to vector<32x128xi32>
    %30 = arith.cmpi eq, %28, %29 : vector<32x128xi32>
    %c4_i32 = arith.constant 4 : i32
    %31 = vector.broadcast %c4_i32 : i32 to vector<32x128xi32>
    %32 = arith.andi %16, %31 : vector<32x128xi32>
    %c0_i32_8 = arith.constant 0 : i32
    %33 = vector.broadcast %c0_i32_8 : i32 to vector<32x128xi32>
    %34 = arith.cmpi eq, %32, %33 : vector<32x128xi32>
    %35 = arith.xori %30, %34 : vector<32x128xi1>
    %cst_9 = arith.constant dense<true> : vector<32x128xi1>
    %36 = arith.xori %35, %cst_9 : vector<32x128xi1>
    %c1_i32_10 = arith.constant 1 : i32
    %37 = vector.broadcast %c1_i32_10 : i32 to vector<32x128xi32>
    %38 = arith.andi %16, %37 : vector<32x128xi32>
    %c0_i32_11 = arith.constant 0 : i32
    %39 = vector.broadcast %c0_i32_11 : i32 to vector<32x128xi32>
    %40 = arith.cmpi eq, %38, %39 : vector<32x128xi32>
    %c4_i32_12 = arith.constant 4 : i32
    %41 = vector.broadcast %c4_i32_12 : i32 to vector<32x128xi32>
    %42 = arith.andi %16, %41 : vector<32x128xi32>
    %c0_i32_13 = arith.constant 0 : i32
    %43 = vector.broadcast %c0_i32_13 : i32 to vector<32x128xi32>
    %44 = arith.cmpi eq, %42, %43 : vector<32x128xi32>
    %45 = arith.xori %40, %44 : vector<32x128xi1>
    %cst_14 = arith.constant dense<true> : vector<32x128xi1>
    %46 = arith.xori %45, %cst_14 : vector<32x128xi1>
    %c4_i32_15 = arith.constant 4 : i32
    %47 = vector.broadcast %c4_i32_15 : i32 to vector<32x128xi32>
    %48 = arith.andi %16, %47 : vector<32x128xi32>
    %c0_i32_16 = arith.constant 0 : i32
    %49 = vector.broadcast %c0_i32_16 : i32 to vector<32x128xi32>
    %50 = arith.cmpi eq, %48, %49 : vector<32x128xi32>
    %c8_i32 = arith.constant 8 : i32
    %51 = vector.broadcast %c8_i32 : i32 to vector<32x128xi32>
    %52 = arith.andi %16, %51 : vector<32x128xi32>
    %c0_i32_17 = arith.constant 0 : i32
    %53 = vector.broadcast %c0_i32_17 : i32 to vector<32x128xi32>
    %54 = arith.cmpi eq, %52, %53 : vector<32x128xi32>
    %55 = arith.xori %50, %54 : vector<32x128xi1>
    %cst_18 = arith.constant dense<true> : vector<32x128xi1>
    %56 = arith.xori %55, %cst_18 : vector<32x128xi1>
    %c2_i32_19 = arith.constant 2 : i32
    %57 = vector.broadcast %c2_i32_19 : i32 to vector<32x128xi32>
    %58 = arith.andi %16, %57 : vector<32x128xi32>
    %c0_i32_20 = arith.constant 0 : i32
    %59 = vector.broadcast %c0_i32_20 : i32 to vector<32x128xi32>
    %60 = arith.cmpi eq, %58, %59 : vector<32x128xi32>
    %c8_i32_21 = arith.constant 8 : i32
    %61 = vector.broadcast %c8_i32_21 : i32 to vector<32x128xi32>
    %62 = arith.andi %16, %61 : vector<32x128xi32>
    %c0_i32_22 = arith.constant 0 : i32
    %63 = vector.broadcast %c0_i32_22 : i32 to vector<32x128xi32>
    %64 = arith.cmpi eq, %62, %63 : vector<32x128xi32>
    %65 = arith.xori %60, %64 : vector<32x128xi1>
    %cst_23 = arith.constant dense<true> : vector<32x128xi1>
    %66 = arith.xori %65, %cst_23 : vector<32x128xi1>
    %c1_i32_24 = arith.constant 1 : i32
    %67 = vector.broadcast %c1_i32_24 : i32 to vector<32x128xi32>
    %68 = arith.andi %16, %67 : vector<32x128xi32>
    %c0_i32_25 = arith.constant 0 : i32
    %69 = vector.broadcast %c0_i32_25 : i32 to vector<32x128xi32>
    %70 = arith.cmpi eq, %68, %69 : vector<32x128xi32>
    %c8_i32_26 = arith.constant 8 : i32
    %71 = vector.broadcast %c8_i32_26 : i32 to vector<32x128xi32>
    %72 = arith.andi %16, %71 : vector<32x128xi32>
    %c0_i32_27 = arith.constant 0 : i32
    %73 = vector.broadcast %c0_i32_27 : i32 to vector<32x128xi32>
    %74 = arith.cmpi eq, %72, %73 : vector<32x128xi32>
    %75 = arith.xori %70, %74 : vector<32x128xi1>
    %cst_28 = arith.constant dense<true> : vector<32x128xi1>
    %76 = arith.xori %75, %cst_28 : vector<32x128xi1>
    %c8_i32_29 = arith.constant 8 : i32
    %77 = vector.broadcast %c8_i32_29 : i32 to vector<32x128xi32>
    %78 = arith.andi %16, %77 : vector<32x128xi32>
    %c0_i32_30 = arith.constant 0 : i32
    %79 = vector.broadcast %c0_i32_30 : i32 to vector<32x128xi32>
    %80 = arith.cmpi eq, %78, %79 : vector<32x128xi32>
    %c16_i32_31 = arith.constant 16 : i32
    %81 = vector.broadcast %c16_i32_31 : i32 to vector<32x128xi32>
    %82 = arith.andi %16, %81 : vector<32x128xi32>
    %c0_i32_32 = arith.constant 0 : i32
    %83 = vector.broadcast %c0_i32_32 : i32 to vector<32x128xi32>
    %84 = arith.cmpi eq, %82, %83 : vector<32x128xi32>
    %85 = arith.xori %80, %84 : vector<32x128xi1>
    %cst_33 = arith.constant dense<true> : vector<32x128xi1>
    %86 = arith.xori %85, %cst_33 : vector<32x128xi1>
    %c4_i32_34 = arith.constant 4 : i32
    %87 = vector.broadcast %c4_i32_34 : i32 to vector<32x128xi32>
    %88 = arith.andi %16, %87 : vector<32x128xi32>
    %c0_i32_35 = arith.constant 0 : i32
    %89 = vector.broadcast %c0_i32_35 : i32 to vector<32x128xi32>
    %90 = arith.cmpi eq, %88, %89 : vector<32x128xi32>
    %c16_i32_36 = arith.constant 16 : i32
    %91 = vector.broadcast %c16_i32_36 : i32 to vector<32x128xi32>
    %92 = arith.andi %16, %91 : vector<32x128xi32>
    %c0_i32_37 = arith.constant 0 : i32
    %93 = vector.broadcast %c0_i32_37 : i32 to vector<32x128xi32>
    %94 = arith.cmpi eq, %92, %93 : vector<32x128xi32>
    %95 = arith.xori %90, %94 : vector<32x128xi1>
    %cst_38 = arith.constant dense<true> : vector<32x128xi1>
    %96 = arith.xori %95, %cst_38 : vector<32x128xi1>
    %c2_i32_39 = arith.constant 2 : i32
    %97 = vector.broadcast %c2_i32_39 : i32 to vector<32x128xi32>
    %98 = arith.andi %16, %97 : vector<32x128xi32>
    %c0_i32_40 = arith.constant 0 : i32
    %99 = vector.broadcast %c0_i32_40 : i32 to vector<32x128xi32>
    %100 = arith.cmpi eq, %98, %99 : vector<32x128xi32>
    %c16_i32_41 = arith.constant 16 : i32
    %101 = vector.broadcast %c16_i32_41 : i32 to vector<32x128xi32>
    %102 = arith.andi %16, %101 : vector<32x128xi32>
    %c0_i32_42 = arith.constant 0 : i32
    %103 = vector.broadcast %c0_i32_42 : i32 to vector<32x128xi32>
    %104 = arith.cmpi eq, %102, %103 : vector<32x128xi32>
    %105 = arith.xori %100, %104 : vector<32x128xi1>
    %cst_43 = arith.constant dense<true> : vector<32x128xi1>
    %106 = arith.xori %105, %cst_43 : vector<32x128xi1>
    %c1_i32_44 = arith.constant 1 : i32
    %107 = vector.broadcast %c1_i32_44 : i32 to vector<32x128xi32>
    %108 = arith.andi %16, %107 : vector<32x128xi32>
    %c0_i32_45 = arith.constant 0 : i32
    %109 = vector.broadcast %c0_i32_45 : i32 to vector<32x128xi32>
    %110 = arith.cmpi eq, %108, %109 : vector<32x128xi32>
    %c16_i32_46 = arith.constant 16 : i32
    %111 = vector.broadcast %c16_i32_46 : i32 to vector<32x128xi32>
    %112 = arith.andi %16, %111 : vector<32x128xi32>
    %c0_i32_47 = arith.constant 0 : i32
    %113 = vector.broadcast %c0_i32_47 : i32 to vector<32x128xi32>
    %114 = arith.cmpi eq, %112, %113 : vector<32x128xi32>
    %115 = arith.xori %110, %114 : vector<32x128xi1>
    %cst_48 = arith.constant dense<true> : vector<32x128xi1>
    %116 = arith.xori %115, %cst_48 : vector<32x128xi1>
    %c0 = arith.constant 0 : index
    %c0_49 = arith.constant 0 : index
    %117 = vector.load %arg1[%c0, %c0_49] : memref<16x128xf32, #tpu.memory_space<vmem>>, vector<16x128xf32>
    %c0_50 = arith.constant 0 : index
    %c0_51 = arith.constant 0 : index
    %c0_52 = arith.constant 0 : index
    %118 = vector.load %arg2[%c0_50, %c0_51, %c0_52] : memref<5x32x32xf32, #tpu.memory_space<vmem>>, vector<1x32x32xf32>
    %119 = vector.shape_cast %118 : vector<1x32x32xf32> to vector<32x32xf32>
    %120 = vector.extract_strided_slice %119 {offsets = [0, 0], sizes = [32, 16], strides = [1, 1]} : vector<32x32xf32> to vector<32x16xf32>
    %c0_53 = arith.constant 0 : index
    %c0_54 = arith.constant 0 : index
    %c0_55 = arith.constant 0 : index
    %121 = vector.load %arg3[%c0_53, %c0_54, %c0_55] : memref<5x32x1xf32, #tpu.memory_space<vmem>>, vector<1x32x1xf32>
    %122 = vector.shape_cast %121 : vector<1x32x1xf32> to vector<32x1xf32>
    %cst_56 = arith.constant dense<0.000000e+00> : vector<32x128xf32>
    %123 = tpu.matmul %120, %117, %cst_56 {dimension_numbers = #tpu.dot_dimension_numbers<[1], [0], [0], [1], [0, 0, 1, 1], [], []>} : vector<32x16xf32>, vector<16x128xf32>, vector<32x128xf32> -> vector<32x128xf32>
    %124 = vector.broadcast %122 : vector<32x1xf32> to vector<32x128xf32>
    %125 = arith.addf %123, %124 : vector<32x128xf32>
    %126 = vector.extract_strided_slice %125 {offsets = [1, 0], sizes = [31, 128], strides = [1, 1]} : vector<32x128xf32> to vector<31x128xf32>
    %127 = vector.extract_strided_slice %125 {offsets = [0, 0], sizes = [1, 128], strides = [1, 1]} : vector<32x128xf32> to vector<1x128xf32>
    %128 = tpu.concatenate %126, %127 in 0 : vector<31x128xf32>, vector<1x128xf32> -> vector<32x128xf32>
    %129 = vector.extract_strided_slice %125 {offsets = [31, 0], sizes = [1, 128], strides = [1, 1]} : vector<32x128xf32> to vector<1x128xf32>
    %130 = vector.extract_strided_slice %125 {offsets = [0, 0], sizes = [31, 128], strides = [1, 1]} : vector<32x128xf32> to vector<31x128xf32>
    %131 = tpu.concatenate %129, %130 in 0 : vector<1x128xf32>, vector<31x128xf32> -> vector<32x128xf32>
    %132 = arith.select %20, %128, %131 : vector<32x128xi1>, vector<32x128xf32>
    %133 = arith.minimumf %125, %132 : vector<32x128xf32>
    %134 = arith.maximumf %125, %132 : vector<32x128xf32>
    %135 = arith.select %26, %133, %134 : vector<32x128xi1>, vector<32x128xf32>
    %136 = vector.extract_strided_slice %135 {offsets = [2, 0], sizes = [30, 128], strides = [1, 1]} : vector<32x128xf32> to vector<30x128xf32>
    %137 = vector.extract_strided_slice %135 {offsets = [0, 0], sizes = [2, 128], strides = [1, 1]} : vector<32x128xf32> to vector<2x128xf32>
    %138 = tpu.concatenate %136, %137 in 0 : vector<30x128xf32>, vector<2x128xf32> -> vector<32x128xf32>
    %139 = vector.extract_strided_slice %135 {offsets = [30, 0], sizes = [2, 128], strides = [1, 1]} : vector<32x128xf32> to vector<2x128xf32>
    %140 = vector.extract_strided_slice %135 {offsets = [0, 0], sizes = [30, 128], strides = [1, 1]} : vector<32x128xf32> to vector<30x128xf32>
    %141 = tpu.concatenate %139, %140 in 0 : vector<2x128xf32>, vector<30x128xf32> -> vector<32x128xf32>
    %142 = arith.select %30, %138, %141 : vector<32x128xi1>, vector<32x128xf32>
    %143 = arith.minimumf %135, %142 : vector<32x128xf32>
    %144 = arith.maximumf %135, %142 : vector<32x128xf32>
    %145 = arith.select %36, %143, %144 : vector<32x128xi1>, vector<32x128xf32>
    %146 = vector.extract_strided_slice %145 {offsets = [1, 0], sizes = [31, 128], strides = [1, 1]} : vector<32x128xf32> to vector<31x128xf32>
    %147 = vector.extract_strided_slice %145 {offsets = [0, 0], sizes = [1, 128], strides = [1, 1]} : vector<32x128xf32> to vector<1x128xf32>
    %148 = tpu.concatenate %146, %147 in 0 : vector<31x128xf32>, vector<1x128xf32> -> vector<32x128xf32>
    %149 = vector.extract_strided_slice %145 {offsets = [31, 0], sizes = [1, 128], strides = [1, 1]} : vector<32x128xf32> to vector<1x128xf32>
    %150 = vector.extract_strided_slice %145 {offsets = [0, 0], sizes = [31, 128], strides = [1, 1]} : vector<32x128xf32> to vector<31x128xf32>
    %151 = tpu.concatenate %149, %150 in 0 : vector<1x128xf32>, vector<31x128xf32> -> vector<32x128xf32>
    %152 = arith.select %40, %148, %151 : vector<32x128xi1>, vector<32x128xf32>
    %153 = arith.minimumf %145, %152 : vector<32x128xf32>
    %154 = arith.maximumf %145, %152 : vector<32x128xf32>
    %155 = arith.select %46, %153, %154 : vector<32x128xi1>, vector<32x128xf32>
    %156 = vector.extract_strided_slice %155 {offsets = [4, 0], sizes = [28, 128], strides = [1, 1]} : vector<32x128xf32> to vector<28x128xf32>
    %157 = vector.extract_strided_slice %155 {offsets = [0, 0], sizes = [4, 128], strides = [1, 1]} : vector<32x128xf32> to vector<4x128xf32>
    %158 = tpu.concatenate %156, %157 in 0 : vector<28x128xf32>, vector<4x128xf32> -> vector<32x128xf32>
    %159 = vector.extract_strided_slice %155 {offsets = [28, 0], sizes = [4, 128], strides = [1, 1]} : vector<32x128xf32> to vector<4x128xf32>
    %160 = vector.extract_strided_slice %155 {offsets = [0, 0], sizes = [28, 128], strides = [1, 1]} : vector<32x128xf32> to vector<28x128xf32>
    %161 = tpu.concatenate %159, %160 in 0 : vector<4x128xf32>, vector<28x128xf32> -> vector<32x128xf32>
    %162 = arith.select %50, %158, %161 : vector<32x128xi1>, vector<32x128xf32>
    %163 = arith.minimumf %155, %162 : vector<32x128xf32>
    %164 = arith.maximumf %155, %162 : vector<32x128xf32>
    %165 = arith.select %56, %163, %164 : vector<32x128xi1>, vector<32x128xf32>
    %166 = vector.extract_strided_slice %165 {offsets = [2, 0], sizes = [30, 128], strides = [1, 1]} : vector<32x128xf32> to vector<30x128xf32>
    %167 = vector.extract_strided_slice %165 {offsets = [0, 0], sizes = [2, 128], strides = [1, 1]} : vector<32x128xf32> to vector<2x128xf32>
    %168 = tpu.concatenate %166, %167 in 0 : vector<30x128xf32>, vector<2x128xf32> -> vector<32x128xf32>
    %169 = vector.extract_strided_slice %165 {offsets = [30, 0], sizes = [2, 128], strides = [1, 1]} : vector<32x128xf32> to vector<2x128xf32>
    %170 = vector.extract_strided_slice %165 {offsets = [0, 0], sizes = [30, 128], strides = [1, 1]} : vector<32x128xf32> to vector<30x128xf32>
    %171 = tpu.concatenate %169, %170 in 0 : vector<2x128xf32>, vector<30x128xf32> -> vector<32x128xf32>
    %172 = arith.select %60, %168, %171 : vector<32x128xi1>, vector<32x128xf32>
    %173 = arith.minimumf %165, %172 : vector<32x128xf32>
    %174 = arith.maximumf %165, %172 : vector<32x128xf32>
    %175 = arith.select %66, %173, %174 : vector<32x128xi1>, vector<32x128xf32>
    %176 = vector.extract_strided_slice %175 {offsets = [1, 0], sizes = [31, 128], strides = [1, 1]} : vector<32x128xf32> to vector<31x128xf32>
    %177 = vector.extract_strided_slice %175 {offsets = [0, 0], sizes = [1, 128], strides = [1, 1]} : vector<32x128xf32> to vector<1x128xf32>
    %178 = tpu.concatenate %176, %177 in 0 : vector<31x128xf32>, vector<1x128xf32> -> vector<32x128xf32>
    %179 = vector.extract_strided_slice %175 {offsets = [31, 0], sizes = [1, 128], strides = [1, 1]} : vector<32x128xf32> to vector<1x128xf32>
    %180 = vector.extract_strided_slice %175 {offsets = [0, 0], sizes = [31, 128], strides = [1, 1]} : vector<32x128xf32> to vector<31x128xf32>
    %181 = tpu.concatenate %179, %180 in 0 : vector<1x128xf32>, vector<31x128xf32> -> vector<32x128xf32>
    %182 = arith.select %70, %178, %181 : vector<32x128xi1>, vector<32x128xf32>
    %183 = arith.minimumf %175, %182 : vector<32x128xf32>
    %184 = arith.maximumf %175, %182 : vector<32x128xf32>
    %185 = arith.select %76, %183, %184 : vector<32x128xi1>, vector<32x128xf32>
    %186 = vector.extract_strided_slice %185 {offsets = [8, 0], sizes = [24, 128], strides = [1, 1]} : vector<32x128xf32> to vector<24x128xf32>
    %187 = vector.extract_strided_slice %185 {offsets = [0, 0], sizes = [8, 128], strides = [1, 1]} : vector<32x128xf32> to vector<8x128xf32>
    %188 = tpu.concatenate %186, %187 in 0 : vector<24x128xf32>, vector<8x128xf32> -> vector<32x128xf32>
    %189 = vector.extract_strided_slice %185 {offsets = [24, 0], sizes = [8, 128], strides = [1, 1]} : vector<32x128xf32> to vector<8x128xf32>
    %190 = vector.extract_strided_slice %185 {offsets = [0, 0], sizes = [24, 128], strides = [1, 1]} : vector<32x128xf32> to vector<24x128xf32>
    %191 = tpu.concatenate %189, %190 in 0 : vector<8x128xf32>, vector<24x128xf32> -> vector<32x128xf32>
    %192 = arith.select %80, %188, %191 : vector<32x128xi1>, vector<32x128xf32>
    %193 = arith.minimumf %185, %192 : vector<32x128xf32>
    %194 = arith.maximumf %185, %192 : vector<32x128xf32>
    %195 = arith.select %86, %193, %194 : vector<32x128xi1>, vector<32x128xf32>
    %196 = vector.extract_strided_slice %195 {offsets = [4, 0], sizes = [28, 128], strides = [1, 1]} : vector<32x128xf32> to vector<28x128xf32>
    %197 = vector.extract_strided_slice %195 {offsets = [0, 0], sizes = [4, 128], strides = [1, 1]} : vector<32x128xf32> to vector<4x128xf32>
    %198 = tpu.concatenate %196, %197 in 0 : vector<28x128xf32>, vector<4x128xf32> -> vector<32x128xf32>
    %199 = vector.extract_strided_slice %195 {offsets = [28, 0], sizes = [4, 128], strides = [1, 1]} : vector<32x128xf32> to vector<4x128xf32>
    %200 = vector.extract_strided_slice %195 {offsets = [0, 0], sizes = [28, 128], strides = [1, 1]} : vector<32x128xf32> to vector<28x128xf32>
    %201 = tpu.concatenate %199, %200 in 0 : vector<4x128xf32>, vector<28x128xf32> -> vector<32x128xf32>
    %202 = arith.select %90, %198, %201 : vector<32x128xi1>, vector<32x128xf32>
    %203 = arith.minimumf %195, %202 : vector<32x128xf32>
    %204 = arith.maximumf %195, %202 : vector<32x128xf32>
    %205 = arith.select %96, %203, %204 : vector<32x128xi1>, vector<32x128xf32>
    %206 = vector.extract_strided_slice %205 {offsets = [2, 0], sizes = [30, 128], strides = [1, 1]} : vector<32x128xf32> to vector<30x128xf32>
    %207 = vector.extract_strided_slice %205 {offsets = [0, 0], sizes = [2, 128], strides = [1, 1]} : vector<32x128xf32> to vector<2x128xf32>
    %208 = tpu.concatenate %206, %207 in 0 : vector<30x128xf32>, vector<2x128xf32> -> vector<32x128xf32>
    %209 = vector.extract_strided_slice %205 {offsets = [30, 0], sizes = [2, 128], strides = [1, 1]} : vector<32x128xf32> to vector<2x128xf32>
    %210 = vector.extract_strided_slice %205 {offsets = [0, 0], sizes = [30, 128], strides = [1, 1]} : vector<32x128xf32> to vector<30x128xf32>
    %211 = tpu.concatenate %209, %210 in 0 : vector<2x128xf32>, vector<30x128xf32> -> vector<32x128xf32>
    %212 = arith.select %100, %208, %211 : vector<32x128xi1>, vector<32x128xf32>
    %213 = arith.minimumf %205, %212 : vector<32x128xf32>
    %214 = arith.maximumf %205, %212 : vector<32x128xf32>
    %215 = arith.select %106, %213, %214 : vector<32x128xi1>, vector<32x128xf32>
    %216 = vector.extract_strided_slice %215 {offsets = [1, 0], sizes = [31, 128], strides = [1, 1]} : vector<32x128xf32> to vector<31x128xf32>
    %217 = vector.extract_strided_slice %215 {offsets = [0, 0], sizes = [1, 128], strides = [1, 1]} : vector<32x128xf32> to vector<1x128xf32>
    %218 = tpu.concatenate %216, %217 in 0 : vector<31x128xf32>, vector<1x128xf32> -> vector<32x128xf32>
    %219 = vector.extract_strided_slice %215 {offsets = [31, 0], sizes = [1, 128], strides = [1, 1]} : vector<32x128xf32> to vector<1x128xf32>
    %220 = vector.extract_strided_slice %215 {offsets = [0, 0], sizes = [31, 128], strides = [1, 1]} : vector<32x128xf32> to vector<31x128xf32>
    %221 = tpu.concatenate %219, %220 in 0 : vector<1x128xf32>, vector<31x128xf32> -> vector<32x128xf32>
    %222 = arith.select %110, %218, %221 : vector<32x128xi1>, vector<32x128xf32>
    %223 = arith.minimumf %215, %222 : vector<32x128xf32>
    %224 = arith.maximumf %215, %222 : vector<32x128xf32>
    %225 = arith.select %116, %223, %224 : vector<32x128xi1>, vector<32x128xf32>
    %c1 = arith.constant 1 : index
    %c0_57 = arith.constant 0 : index
    %c0_58 = arith.constant 0 : index
    %226 = vector.load %arg2[%c1, %c0_57, %c0_58] : memref<5x32x32xf32, #tpu.memory_space<vmem>>, vector<1x32x32xf32>
    %227 = vector.shape_cast %226 : vector<1x32x32xf32> to vector<32x32xf32>
    %c1_59 = arith.constant 1 : index
    %c0_60 = arith.constant 0 : index
    %c0_61 = arith.constant 0 : index
    %228 = vector.load %arg3[%c1_59, %c0_60, %c0_61] : memref<5x32x1xf32, #tpu.memory_space<vmem>>, vector<1x32x1xf32>
    %229 = vector.shape_cast %228 : vector<1x32x1xf32> to vector<32x1xf32>
    %cst_62 = arith.constant dense<0.000000e+00> : vector<32x128xf32>
    %230 = tpu.matmul %227, %225, %cst_62 {dimension_numbers = #tpu.dot_dimension_numbers<[1], [0], [0], [1], [0, 0, 1, 1], [], []>} : vector<32x32xf32>, vector<32x128xf32>, vector<32x128xf32> -> vector<32x128xf32>
    %231 = vector.broadcast %229 : vector<32x1xf32> to vector<32x128xf32>
    %232 = arith.addf %230, %231 : vector<32x128xf32>
    %233 = vector.extract_strided_slice %232 {offsets = [1, 0], sizes = [31, 128], strides = [1, 1]} : vector<32x128xf32> to vector<31x128xf32>
    %234 = vector.extract_strided_slice %232 {offsets = [0, 0], sizes = [1, 128], strides = [1, 1]} : vector<32x128xf32> to vector<1x128xf32>
    %235 = tpu.concatenate %233, %234 in 0 : vector<31x128xf32>, vector<1x128xf32> -> vector<32x128xf32>
    %236 = vector.extract_strided_slice %232 {offsets = [31, 0], sizes = [1, 128], strides = [1, 1]} : vector<32x128xf32> to vector<1x128xf32>
    %237 = vector.extract_strided_slice %232 {offsets = [0, 0], sizes = [31, 128], strides = [1, 1]} : vector<32x128xf32> to vector<31x128xf32>
    %238 = tpu.concatenate %236, %237 in 0 : vector<1x128xf32>, vector<31x128xf32> -> vector<32x128xf32>
    %239 = arith.select %20, %235, %238 : vector<32x128xi1>, vector<32x128xf32>
    %240 = arith.minimumf %232, %239 : vector<32x128xf32>
    %241 = arith.maximumf %232, %239 : vector<32x128xf32>
    %242 = arith.select %26, %240, %241 : vector<32x128xi1>, vector<32x128xf32>
    %243 = vector.extract_strided_slice %242 {offsets = [2, 0], sizes = [30, 128], strides = [1, 1]} : vector<32x128xf32> to vector<30x128xf32>
    %244 = vector.extract_strided_slice %242 {offsets = [0, 0], sizes = [2, 128], strides = [1, 1]} : vector<32x128xf32> to vector<2x128xf32>
    %245 = tpu.concatenate %243, %244 in 0 : vector<30x128xf32>, vector<2x128xf32> -> vector<32x128xf32>
    %246 = vector.extract_strided_slice %242 {offsets = [30, 0], sizes = [2, 128], strides = [1, 1]} : vector<32x128xf32> to vector<2x128xf32>
    %247 = vector.extract_strided_slice %242 {offsets = [0, 0], sizes = [30, 128], strides = [1, 1]} : vector<32x128xf32> to vector<30x128xf32>
    %248 = tpu.concatenate %246, %247 in 0 : vector<2x128xf32>, vector<30x128xf32> -> vector<32x128xf32>
    %249 = arith.select %30, %245, %248 : vector<32x128xi1>, vector<32x128xf32>
    %250 = arith.minimumf %242, %249 : vector<32x128xf32>
    %251 = arith.maximumf %242, %249 : vector<32x128xf32>
    %252 = arith.select %36, %250, %251 : vector<32x128xi1>, vector<32x128xf32>
    %253 = vector.extract_strided_slice %252 {offsets = [1, 0], sizes = [31, 128], strides = [1, 1]} : vector<32x128xf32> to vector<31x128xf32>
    %254 = vector.extract_strided_slice %252 {offsets = [0, 0], sizes = [1, 128], strides = [1, 1]} : vector<32x128xf32> to vector<1x128xf32>
    %255 = tpu.concatenate %253, %254 in 0 : vector<31x128xf32>, vector<1x128xf32> -> vector<32x128xf32>
    %256 = vector.extract_strided_slice %252 {offsets = [31, 0], sizes = [1, 128], strides = [1, 1]} : vector<32x128xf32> to vector<1x128xf32>
    %257 = vector.extract_strided_slice %252 {offsets = [0, 0], sizes = [31, 128], strides = [1, 1]} : vector<32x128xf32> to vector<31x128xf32>
    %258 = tpu.concatenate %256, %257 in 0 : vector<1x128xf32>, vector<31x128xf32> -> vector<32x128xf32>
    %259 = arith.select %40, %255, %258 : vector<32x128xi1>, vector<32x128xf32>
    %260 = arith.minimumf %252, %259 : vector<32x128xf32>
    %261 = arith.maximumf %252, %259 : vector<32x128xf32>
    %262 = arith.select %46, %260, %261 : vector<32x128xi1>, vector<32x128xf32>
    %263 = vector.extract_strided_slice %262 {offsets = [4, 0], sizes = [28, 128], strides = [1, 1]} : vector<32x128xf32> to vector<28x128xf32>
    %264 = vector.extract_strided_slice %262 {offsets = [0, 0], sizes = [4, 128], strides = [1, 1]} : vector<32x128xf32> to vector<4x128xf32>
    %265 = tpu.concatenate %263, %264 in 0 : vector<28x128xf32>, vector<4x128xf32> -> vector<32x128xf32>
    %266 = vector.extract_strided_slice %262 {offsets = [28, 0], sizes = [4, 128], strides = [1, 1]} : vector<32x128xf32> to vector<4x128xf32>
    %267 = vector.extract_strided_slice %262 {offsets = [0, 0], sizes = [28, 128], strides = [1, 1]} : vector<32x128xf32> to vector<28x128xf32>
    %268 = tpu.concatenate %266, %267 in 0 : vector<4x128xf32>, vector<28x128xf32> -> vector<32x128xf32>
    %269 = arith.select %50, %265, %268 : vector<32x128xi1>, vector<32x128xf32>
    %270 = arith.minimumf %262, %269 : vector<32x128xf32>
    %271 = arith.maximumf %262, %269 : vector<32x128xf32>
    %272 = arith.select %56, %270, %271 : vector<32x128xi1>, vector<32x128xf32>
    %273 = vector.extract_strided_slice %272 {offsets = [2, 0], sizes = [30, 128], strides = [1, 1]} : vector<32x128xf32> to vector<30x128xf32>
    %274 = vector.extract_strided_slice %272 {offsets = [0, 0], sizes = [2, 128], strides = [1, 1]} : vector<32x128xf32> to vector<2x128xf32>
    %275 = tpu.concatenate %273, %274 in 0 : vector<30x128xf32>, vector<2x128xf32> -> vector<32x128xf32>
    %276 = vector.extract_strided_slice %272 {offsets = [30, 0], sizes = [2, 128], strides = [1, 1]} : vector<32x128xf32> to vector<2x128xf32>
    %277 = vector.extract_strided_slice %272 {offsets = [0, 0], sizes = [30, 128], strides = [1, 1]} : vector<32x128xf32> to vector<30x128xf32>
    %278 = tpu.concatenate %276, %277 in 0 : vector<2x128xf32>, vector<30x128xf32> -> vector<32x128xf32>
    %279 = arith.select %60, %275, %278 : vector<32x128xi1>, vector<32x128xf32>
    %280 = arith.minimumf %272, %279 : vector<32x128xf32>
    %281 = arith.maximumf %272, %279 : vector<32x128xf32>
    %282 = arith.select %66, %280, %281 : vector<32x128xi1>, vector<32x128xf32>
    %283 = vector.extract_strided_slice %282 {offsets = [1, 0], sizes = [31, 128], strides = [1, 1]} : vector<32x128xf32> to vector<31x128xf32>
    %284 = vector.extract_strided_slice %282 {offsets = [0, 0], sizes = [1, 128], strides = [1, 1]} : vector<32x128xf32> to vector<1x128xf32>
    %285 = tpu.concatenate %283, %284 in 0 : vector<31x128xf32>, vector<1x128xf32> -> vector<32x128xf32>
    %286 = vector.extract_strided_slice %282 {offsets = [31, 0], sizes = [1, 128], strides = [1, 1]} : vector<32x128xf32> to vector<1x128xf32>
    %287 = vector.extract_strided_slice %282 {offsets = [0, 0], sizes = [31, 128], strides = [1, 1]} : vector<32x128xf32> to vector<31x128xf32>
    %288 = tpu.concatenate %286, %287 in 0 : vector<1x128xf32>, vector<31x128xf32> -> vector<32x128xf32>
    %289 = arith.select %70, %285, %288 : vector<32x128xi1>, vector<32x128xf32>
    %290 = arith.minimumf %282, %289 : vector<32x128xf32>
    %291 = arith.maximumf %282, %289 : vector<32x128xf32>
    %292 = arith.select %76, %290, %291 : vector<32x128xi1>, vector<32x128xf32>
    %293 = vector.extract_strided_slice %292 {offsets = [8, 0], sizes = [24, 128], strides = [1, 1]} : vector<32x128xf32> to vector<24x128xf32>
    %294 = vector.extract_strided_slice %292 {offsets = [0, 0], sizes = [8, 128], strides = [1, 1]} : vector<32x128xf32> to vector<8x128xf32>
    %295 = tpu.concatenate %293, %294 in 0 : vector<24x128xf32>, vector<8x128xf32> -> vector<32x128xf32>
    %296 = vector.extract_strided_slice %292 {offsets = [24, 0], sizes = [8, 128], strides = [1, 1]} : vector<32x128xf32> to vector<8x128xf32>
    %297 = vector.extract_strided_slice %292 {offsets = [0, 0], sizes = [24, 128], strides = [1, 1]} : vector<32x128xf32> to vector<24x128xf32>
    %298 = tpu.concatenate %296, %297 in 0 : vector<8x128xf32>, vector<24x128xf32> -> vector<32x128xf32>
    %299 = arith.select %80, %295, %298 : vector<32x128xi1>, vector<32x128xf32>
    %300 = arith.minimumf %292, %299 : vector<32x128xf32>
    %301 = arith.maximumf %292, %299 : vector<32x128xf32>
    %302 = arith.select %86, %300, %301 : vector<32x128xi1>, vector<32x128xf32>
    %303 = vector.extract_strided_slice %302 {offsets = [4, 0], sizes = [28, 128], strides = [1, 1]} : vector<32x128xf32> to vector<28x128xf32>
    %304 = vector.extract_strided_slice %302 {offsets = [0, 0], sizes = [4, 128], strides = [1, 1]} : vector<32x128xf32> to vector<4x128xf32>
    %305 = tpu.concatenate %303, %304 in 0 : vector<28x128xf32>, vector<4x128xf32> -> vector<32x128xf32>
    %306 = vector.extract_strided_slice %302 {offsets = [28, 0], sizes = [4, 128], strides = [1, 1]} : vector<32x128xf32> to vector<4x128xf32>
    %307 = vector.extract_strided_slice %302 {offsets = [0, 0], sizes = [28, 128], strides = [1, 1]} : vector<32x128xf32> to vector<28x128xf32>
    %308 = tpu.concatenate %306, %307 in 0 : vector<4x128xf32>, vector<28x128xf32> -> vector<32x128xf32>
    %309 = arith.select %90, %305, %308 : vector<32x128xi1>, vector<32x128xf32>
    %310 = arith.minimumf %302, %309 : vector<32x128xf32>
    %311 = arith.maximumf %302, %309 : vector<32x128xf32>
    %312 = arith.select %96, %310, %311 : vector<32x128xi1>, vector<32x128xf32>
    %313 = vector.extract_strided_slice %312 {offsets = [2, 0], sizes = [30, 128], strides = [1, 1]} : vector<32x128xf32> to vector<30x128xf32>
    %314 = vector.extract_strided_slice %312 {offsets = [0, 0], sizes = [2, 128], strides = [1, 1]} : vector<32x128xf32> to vector<2x128xf32>
    %315 = tpu.concatenate %313, %314 in 0 : vector<30x128xf32>, vector<2x128xf32> -> vector<32x128xf32>
    %316 = vector.extract_strided_slice %312 {offsets = [30, 0], sizes = [2, 128], strides = [1, 1]} : vector<32x128xf32> to vector<2x128xf32>
    %317 = vector.extract_strided_slice %312 {offsets = [0, 0], sizes = [30, 128], strides = [1, 1]} : vector<32x128xf32> to vector<30x128xf32>
    %318 = tpu.concatenate %316, %317 in 0 : vector<2x128xf32>, vector<30x128xf32> -> vector<32x128xf32>
    %319 = arith.select %100, %315, %318 : vector<32x128xi1>, vector<32x128xf32>
    %320 = arith.minimumf %312, %319 : vector<32x128xf32>
    %321 = arith.maximumf %312, %319 : vector<32x128xf32>
    %322 = arith.select %106, %320, %321 : vector<32x128xi1>, vector<32x128xf32>
    %323 = vector.extract_strided_slice %322 {offsets = [1, 0], sizes = [31, 128], strides = [1, 1]} : vector<32x128xf32> to vector<31x128xf32>
    %324 = vector.extract_strided_slice %322 {offsets = [0, 0], sizes = [1, 128], strides = [1, 1]} : vector<32x128xf32> to vector<1x128xf32>
    %325 = tpu.concatenate %323, %324 in 0 : vector<31x128xf32>, vector<1x128xf32> -> vector<32x128xf32>
    %326 = vector.extract_strided_slice %322 {offsets = [31, 0], sizes = [1, 128], strides = [1, 1]} : vector<32x128xf32> to vector<1x128xf32>
    %327 = vector.extract_strided_slice %322 {offsets = [0, 0], sizes = [31, 128], strides = [1, 1]} : vector<32x128xf32> to vector<31x128xf32>
    %328 = tpu.concatenate %326, %327 in 0 : vector<1x128xf32>, vector<31x128xf32> -> vector<32x128xf32>
    %329 = arith.select %110, %325, %328 : vector<32x128xi1>, vector<32x128xf32>
    %330 = arith.minimumf %322, %329 : vector<32x128xf32>
    %331 = arith.maximumf %322, %329 : vector<32x128xf32>
    %332 = arith.select %116, %330, %331 : vector<32x128xi1>, vector<32x128xf32>
    %c2 = arith.constant 2 : index
    %c0_63 = arith.constant 0 : index
    %c0_64 = arith.constant 0 : index
    %333 = vector.load %arg2[%c2, %c0_63, %c0_64] : memref<5x32x32xf32, #tpu.memory_space<vmem>>, vector<1x32x32xf32>
    %334 = vector.shape_cast %333 : vector<1x32x32xf32> to vector<32x32xf32>
    %c2_65 = arith.constant 2 : index
    %c0_66 = arith.constant 0 : index
    %c0_67 = arith.constant 0 : index
    %335 = vector.load %arg3[%c2_65, %c0_66, %c0_67] : memref<5x32x1xf32, #tpu.memory_space<vmem>>, vector<1x32x1xf32>
    %336 = vector.shape_cast %335 : vector<1x32x1xf32> to vector<32x1xf32>
    %cst_68 = arith.constant dense<0.000000e+00> : vector<32x128xf32>
    %337 = tpu.matmul %334, %332, %cst_68 {dimension_numbers = #tpu.dot_dimension_numbers<[1], [0], [0], [1], [0, 0, 1, 1], [], []>} : vector<32x32xf32>, vector<32x128xf32>, vector<32x128xf32> -> vector<32x128xf32>
    %338 = vector.broadcast %336 : vector<32x1xf32> to vector<32x128xf32>
    %339 = arith.addf %337, %338 : vector<32x128xf32>
    %340 = vector.extract_strided_slice %339 {offsets = [1, 0], sizes = [31, 128], strides = [1, 1]} : vector<32x128xf32> to vector<31x128xf32>
    %341 = vector.extract_strided_slice %339 {offsets = [0, 0], sizes = [1, 128], strides = [1, 1]} : vector<32x128xf32> to vector<1x128xf32>
    %342 = tpu.concatenate %340, %341 in 0 : vector<31x128xf32>, vector<1x128xf32> -> vector<32x128xf32>
    %343 = vector.extract_strided_slice %339 {offsets = [31, 0], sizes = [1, 128], strides = [1, 1]} : vector<32x128xf32> to vector<1x128xf32>
    %344 = vector.extract_strided_slice %339 {offsets = [0, 0], sizes = [31, 128], strides = [1, 1]} : vector<32x128xf32> to vector<31x128xf32>
    %345 = tpu.concatenate %343, %344 in 0 : vector<1x128xf32>, vector<31x128xf32> -> vector<32x128xf32>
    %346 = arith.select %20, %342, %345 : vector<32x128xi1>, vector<32x128xf32>
    %347 = arith.minimumf %339, %346 : vector<32x128xf32>
    %348 = arith.maximumf %339, %346 : vector<32x128xf32>
    %349 = arith.select %26, %347, %348 : vector<32x128xi1>, vector<32x128xf32>
    %350 = vector.extract_strided_slice %349 {offsets = [2, 0], sizes = [30, 128], strides = [1, 1]} : vector<32x128xf32> to vector<30x128xf32>
    %351 = vector.extract_strided_slice %349 {offsets = [0, 0], sizes = [2, 128], strides = [1, 1]} : vector<32x128xf32> to vector<2x128xf32>
    %352 = tpu.concatenate %350, %351 in 0 : vector<30x128xf32>, vector<2x128xf32> -> vector<32x128xf32>
    %353 = vector.extract_strided_slice %349 {offsets = [30, 0], sizes = [2, 128], strides = [1, 1]} : vector<32x128xf32> to vector<2x128xf32>
    %354 = vector.extract_strided_slice %349 {offsets = [0, 0], sizes = [30, 128], strides = [1, 1]} : vector<32x128xf32> to vector<30x128xf32>
    %355 = tpu.concatenate %353, %354 in 0 : vector<2x128xf32>, vector<30x128xf32> -> vector<32x128xf32>
    %356 = arith.select %30, %352, %355 : vector<32x128xi1>, vector<32x128xf32>
    %357 = arith.minimumf %349, %356 : vector<32x128xf32>
    %358 = arith.maximumf %349, %356 : vector<32x128xf32>
    %359 = arith.select %36, %357, %358 : vector<32x128xi1>, vector<32x128xf32>
    %360 = vector.extract_strided_slice %359 {offsets = [1, 0], sizes = [31, 128], strides = [1, 1]} : vector<32x128xf32> to vector<31x128xf32>
    %361 = vector.extract_strided_slice %359 {offsets = [0, 0], sizes = [1, 128], strides = [1, 1]} : vector<32x128xf32> to vector<1x128xf32>
    %362 = tpu.concatenate %360, %361 in 0 : vector<31x128xf32>, vector<1x128xf32> -> vector<32x128xf32>
    %363 = vector.extract_strided_slice %359 {offsets = [31, 0], sizes = [1, 128], strides = [1, 1]} : vector<32x128xf32> to vector<1x128xf32>
    %364 = vector.extract_strided_slice %359 {offsets = [0, 0], sizes = [31, 128], strides = [1, 1]} : vector<32x128xf32> to vector<31x128xf32>
    %365 = tpu.concatenate %363, %364 in 0 : vector<1x128xf32>, vector<31x128xf32> -> vector<32x128xf32>
    %366 = arith.select %40, %362, %365 : vector<32x128xi1>, vector<32x128xf32>
    %367 = arith.minimumf %359, %366 : vector<32x128xf32>
    %368 = arith.maximumf %359, %366 : vector<32x128xf32>
    %369 = arith.select %46, %367, %368 : vector<32x128xi1>, vector<32x128xf32>
    %370 = vector.extract_strided_slice %369 {offsets = [4, 0], sizes = [28, 128], strides = [1, 1]} : vector<32x128xf32> to vector<28x128xf32>
    %371 = vector.extract_strided_slice %369 {offsets = [0, 0], sizes = [4, 128], strides = [1, 1]} : vector<32x128xf32> to vector<4x128xf32>
    %372 = tpu.concatenate %370, %371 in 0 : vector<28x128xf32>, vector<4x128xf32> -> vector<32x128xf32>
    %373 = vector.extract_strided_slice %369 {offsets = [28, 0], sizes = [4, 128], strides = [1, 1]} : vector<32x128xf32> to vector<4x128xf32>
    %374 = vector.extract_strided_slice %369 {offsets = [0, 0], sizes = [28, 128], strides = [1, 1]} : vector<32x128xf32> to vector<28x128xf32>
    %375 = tpu.concatenate %373, %374 in 0 : vector<4x128xf32>, vector<28x128xf32> -> vector<32x128xf32>
    %376 = arith.select %50, %372, %375 : vector<32x128xi1>, vector<32x128xf32>
    %377 = arith.minimumf %369, %376 : vector<32x128xf32>
    %378 = arith.maximumf %369, %376 : vector<32x128xf32>
    %379 = arith.select %56, %377, %378 : vector<32x128xi1>, vector<32x128xf32>
    %380 = vector.extract_strided_slice %379 {offsets = [2, 0], sizes = [30, 128], strides = [1, 1]} : vector<32x128xf32> to vector<30x128xf32>
    %381 = vector.extract_strided_slice %379 {offsets = [0, 0], sizes = [2, 128], strides = [1, 1]} : vector<32x128xf32> to vector<2x128xf32>
    %382 = tpu.concatenate %380, %381 in 0 : vector<30x128xf32>, vector<2x128xf32> -> vector<32x128xf32>
    %383 = vector.extract_strided_slice %379 {offsets = [30, 0], sizes = [2, 128], strides = [1, 1]} : vector<32x128xf32> to vector<2x128xf32>
    %384 = vector.extract_strided_slice %379 {offsets = [0, 0], sizes = [30, 128], strides = [1, 1]} : vector<32x128xf32> to vector<30x128xf32>
    %385 = tpu.concatenate %383, %384 in 0 : vector<2x128xf32>, vector<30x128xf32> -> vector<32x128xf32>
    %386 = arith.select %60, %382, %385 : vector<32x128xi1>, vector<32x128xf32>
    %387 = arith.minimumf %379, %386 : vector<32x128xf32>
    %388 = arith.maximumf %379, %386 : vector<32x128xf32>
    %389 = arith.select %66, %387, %388 : vector<32x128xi1>, vector<32x128xf32>
    %390 = vector.extract_strided_slice %389 {offsets = [1, 0], sizes = [31, 128], strides = [1, 1]} : vector<32x128xf32> to vector<31x128xf32>
    %391 = vector.extract_strided_slice %389 {offsets = [0, 0], sizes = [1, 128], strides = [1, 1]} : vector<32x128xf32> to vector<1x128xf32>
    %392 = tpu.concatenate %390, %391 in 0 : vector<31x128xf32>, vector<1x128xf32> -> vector<32x128xf32>
    %393 = vector.extract_strided_slice %389 {offsets = [31, 0], sizes = [1, 128], strides = [1, 1]} : vector<32x128xf32> to vector<1x128xf32>
    %394 = vector.extract_strided_slice %389 {offsets = [0, 0], sizes = [31, 128], strides = [1, 1]} : vector<32x128xf32> to vector<31x128xf32>
    %395 = tpu.concatenate %393, %394 in 0 : vector<1x128xf32>, vector<31x128xf32> -> vector<32x128xf32>
    %396 = arith.select %70, %392, %395 : vector<32x128xi1>, vector<32x128xf32>
    %397 = arith.minimumf %389, %396 : vector<32x128xf32>
    %398 = arith.maximumf %389, %396 : vector<32x128xf32>
    %399 = arith.select %76, %397, %398 : vector<32x128xi1>, vector<32x128xf32>
    %400 = vector.extract_strided_slice %399 {offsets = [8, 0], sizes = [24, 128], strides = [1, 1]} : vector<32x128xf32> to vector<24x128xf32>
    %401 = vector.extract_strided_slice %399 {offsets = [0, 0], sizes = [8, 128], strides = [1, 1]} : vector<32x128xf32> to vector<8x128xf32>
    %402 = tpu.concatenate %400, %401 in 0 : vector<24x128xf32>, vector<8x128xf32> -> vector<32x128xf32>
    %403 = vector.extract_strided_slice %399 {offsets = [24, 0], sizes = [8, 128], strides = [1, 1]} : vector<32x128xf32> to vector<8x128xf32>
    %404 = vector.extract_strided_slice %399 {offsets = [0, 0], sizes = [24, 128], strides = [1, 1]} : vector<32x128xf32> to vector<24x128xf32>
    %405 = tpu.concatenate %403, %404 in 0 : vector<8x128xf32>, vector<24x128xf32> -> vector<32x128xf32>
    %406 = arith.select %80, %402, %405 : vector<32x128xi1>, vector<32x128xf32>
    %407 = arith.minimumf %399, %406 : vector<32x128xf32>
    %408 = arith.maximumf %399, %406 : vector<32x128xf32>
    %409 = arith.select %86, %407, %408 : vector<32x128xi1>, vector<32x128xf32>
    %410 = vector.extract_strided_slice %409 {offsets = [4, 0], sizes = [28, 128], strides = [1, 1]} : vector<32x128xf32> to vector<28x128xf32>
    %411 = vector.extract_strided_slice %409 {offsets = [0, 0], sizes = [4, 128], strides = [1, 1]} : vector<32x128xf32> to vector<4x128xf32>
    %412 = tpu.concatenate %410, %411 in 0 : vector<28x128xf32>, vector<4x128xf32> -> vector<32x128xf32>
    %413 = vector.extract_strided_slice %409 {offsets = [28, 0], sizes = [4, 128], strides = [1, 1]} : vector<32x128xf32> to vector<4x128xf32>
    %414 = vector.extract_strided_slice %409 {offsets = [0, 0], sizes = [28, 128], strides = [1, 1]} : vector<32x128xf32> to vector<28x128xf32>
    %415 = tpu.concatenate %413, %414 in 0 : vector<4x128xf32>, vector<28x128xf32> -> vector<32x128xf32>
    %416 = arith.select %90, %412, %415 : vector<32x128xi1>, vector<32x128xf32>
    %417 = arith.minimumf %409, %416 : vector<32x128xf32>
    %418 = arith.maximumf %409, %416 : vector<32x128xf32>
    %419 = arith.select %96, %417, %418 : vector<32x128xi1>, vector<32x128xf32>
    %420 = vector.extract_strided_slice %419 {offsets = [2, 0], sizes = [30, 128], strides = [1, 1]} : vector<32x128xf32> to vector<30x128xf32>
    %421 = vector.extract_strided_slice %419 {offsets = [0, 0], sizes = [2, 128], strides = [1, 1]} : vector<32x128xf32> to vector<2x128xf32>
    %422 = tpu.concatenate %420, %421 in 0 : vector<30x128xf32>, vector<2x128xf32> -> vector<32x128xf32>
    %423 = vector.extract_strided_slice %419 {offsets = [30, 0], sizes = [2, 128], strides = [1, 1]} : vector<32x128xf32> to vector<2x128xf32>
    %424 = vector.extract_strided_slice %419 {offsets = [0, 0], sizes = [30, 128], strides = [1, 1]} : vector<32x128xf32> to vector<30x128xf32>
    %425 = tpu.concatenate %423, %424 in 0 : vector<2x128xf32>, vector<30x128xf32> -> vector<32x128xf32>
    %426 = arith.select %100, %422, %425 : vector<32x128xi1>, vector<32x128xf32>
    %427 = arith.minimumf %419, %426 : vector<32x128xf32>
    %428 = arith.maximumf %419, %426 : vector<32x128xf32>
    %429 = arith.select %106, %427, %428 : vector<32x128xi1>, vector<32x128xf32>
    %430 = vector.extract_strided_slice %429 {offsets = [1, 0], sizes = [31, 128], strides = [1, 1]} : vector<32x128xf32> to vector<31x128xf32>
    %431 = vector.extract_strided_slice %429 {offsets = [0, 0], sizes = [1, 128], strides = [1, 1]} : vector<32x128xf32> to vector<1x128xf32>
    %432 = tpu.concatenate %430, %431 in 0 : vector<31x128xf32>, vector<1x128xf32> -> vector<32x128xf32>
    %433 = vector.extract_strided_slice %429 {offsets = [31, 0], sizes = [1, 128], strides = [1, 1]} : vector<32x128xf32> to vector<1x128xf32>
    %434 = vector.extract_strided_slice %429 {offsets = [0, 0], sizes = [31, 128], strides = [1, 1]} : vector<32x128xf32> to vector<31x128xf32>
    %435 = tpu.concatenate %433, %434 in 0 : vector<1x128xf32>, vector<31x128xf32> -> vector<32x128xf32>
    %436 = arith.select %110, %432, %435 : vector<32x128xi1>, vector<32x128xf32>
    %437 = arith.minimumf %429, %436 : vector<32x128xf32>
    %438 = arith.maximumf %429, %436 : vector<32x128xf32>
    %439 = arith.select %116, %437, %438 : vector<32x128xi1>, vector<32x128xf32>
    %c3 = arith.constant 3 : index
    %c0_69 = arith.constant 0 : index
    %c0_70 = arith.constant 0 : index
    %440 = vector.load %arg2[%c3, %c0_69, %c0_70] : memref<5x32x32xf32, #tpu.memory_space<vmem>>, vector<1x32x32xf32>
    %441 = vector.shape_cast %440 : vector<1x32x32xf32> to vector<32x32xf32>
    %c3_71 = arith.constant 3 : index
    %c0_72 = arith.constant 0 : index
    %c0_73 = arith.constant 0 : index
    %442 = vector.load %arg3[%c3_71, %c0_72, %c0_73] : memref<5x32x1xf32, #tpu.memory_space<vmem>>, vector<1x32x1xf32>
    %443 = vector.shape_cast %442 : vector<1x32x1xf32> to vector<32x1xf32>
    %cst_74 = arith.constant dense<0.000000e+00> : vector<32x128xf32>
    %444 = tpu.matmul %441, %439, %cst_74 {dimension_numbers = #tpu.dot_dimension_numbers<[1], [0], [0], [1], [0, 0, 1, 1], [], []>} : vector<32x32xf32>, vector<32x128xf32>, vector<32x128xf32> -> vector<32x128xf32>
    %445 = vector.broadcast %443 : vector<32x1xf32> to vector<32x128xf32>
    %446 = arith.addf %444, %445 : vector<32x128xf32>
    %447 = vector.extract_strided_slice %446 {offsets = [1, 0], sizes = [31, 128], strides = [1, 1]} : vector<32x128xf32> to vector<31x128xf32>
    %448 = vector.extract_strided_slice %446 {offsets = [0, 0], sizes = [1, 128], strides = [1, 1]} : vector<32x128xf32> to vector<1x128xf32>
    %449 = tpu.concatenate %447, %448 in 0 : vector<31x128xf32>, vector<1x128xf32> -> vector<32x128xf32>
    %450 = vector.extract_strided_slice %446 {offsets = [31, 0], sizes = [1, 128], strides = [1, 1]} : vector<32x128xf32> to vector<1x128xf32>
    %451 = vector.extract_strided_slice %446 {offsets = [0, 0], sizes = [31, 128], strides = [1, 1]} : vector<32x128xf32> to vector<31x128xf32>
    %452 = tpu.concatenate %450, %451 in 0 : vector<1x128xf32>, vector<31x128xf32> -> vector<32x128xf32>
    %453 = arith.select %20, %449, %452 : vector<32x128xi1>, vector<32x128xf32>
    %454 = arith.minimumf %446, %453 : vector<32x128xf32>
    %455 = arith.maximumf %446, %453 : vector<32x128xf32>
    %456 = arith.select %26, %454, %455 : vector<32x128xi1>, vector<32x128xf32>
    %457 = vector.extract_strided_slice %456 {offsets = [2, 0], sizes = [30, 128], strides = [1, 1]} : vector<32x128xf32> to vector<30x128xf32>
    %458 = vector.extract_strided_slice %456 {offsets = [0, 0], sizes = [2, 128], strides = [1, 1]} : vector<32x128xf32> to vector<2x128xf32>
    %459 = tpu.concatenate %457, %458 in 0 : vector<30x128xf32>, vector<2x128xf32> -> vector<32x128xf32>
    %460 = vector.extract_strided_slice %456 {offsets = [30, 0], sizes = [2, 128], strides = [1, 1]} : vector<32x128xf32> to vector<2x128xf32>
    %461 = vector.extract_strided_slice %456 {offsets = [0, 0], sizes = [30, 128], strides = [1, 1]} : vector<32x128xf32> to vector<30x128xf32>
    %462 = tpu.concatenate %460, %461 in 0 : vector<2x128xf32>, vector<30x128xf32> -> vector<32x128xf32>
    %463 = arith.select %30, %459, %462 : vector<32x128xi1>, vector<32x128xf32>
    %464 = arith.minimumf %456, %463 : vector<32x128xf32>
    %465 = arith.maximumf %456, %463 : vector<32x128xf32>
    %466 = arith.select %36, %464, %465 : vector<32x128xi1>, vector<32x128xf32>
    %467 = vector.extract_strided_slice %466 {offsets = [1, 0], sizes = [31, 128], strides = [1, 1]} : vector<32x128xf32> to vector<31x128xf32>
    %468 = vector.extract_strided_slice %466 {offsets = [0, 0], sizes = [1, 128], strides = [1, 1]} : vector<32x128xf32> to vector<1x128xf32>
    %469 = tpu.concatenate %467, %468 in 0 : vector<31x128xf32>, vector<1x128xf32> -> vector<32x128xf32>
    %470 = vector.extract_strided_slice %466 {offsets = [31, 0], sizes = [1, 128], strides = [1, 1]} : vector<32x128xf32> to vector<1x128xf32>
    %471 = vector.extract_strided_slice %466 {offsets = [0, 0], sizes = [31, 128], strides = [1, 1]} : vector<32x128xf32> to vector<31x128xf32>
    %472 = tpu.concatenate %470, %471 in 0 : vector<1x128xf32>, vector<31x128xf32> -> vector<32x128xf32>
    %473 = arith.select %40, %469, %472 : vector<32x128xi1>, vector<32x128xf32>
    %474 = arith.minimumf %466, %473 : vector<32x128xf32>
    %475 = arith.maximumf %466, %473 : vector<32x128xf32>
    %476 = arith.select %46, %474, %475 : vector<32x128xi1>, vector<32x128xf32>
    %477 = vector.extract_strided_slice %476 {offsets = [4, 0], sizes = [28, 128], strides = [1, 1]} : vector<32x128xf32> to vector<28x128xf32>
    %478 = vector.extract_strided_slice %476 {offsets = [0, 0], sizes = [4, 128], strides = [1, 1]} : vector<32x128xf32> to vector<4x128xf32>
    %479 = tpu.concatenate %477, %478 in 0 : vector<28x128xf32>, vector<4x128xf32> -> vector<32x128xf32>
    %480 = vector.extract_strided_slice %476 {offsets = [28, 0], sizes = [4, 128], strides = [1, 1]} : vector<32x128xf32> to vector<4x128xf32>
    %481 = vector.extract_strided_slice %476 {offsets = [0, 0], sizes = [28, 128], strides = [1, 1]} : vector<32x128xf32> to vector<28x128xf32>
    %482 = tpu.concatenate %480, %481 in 0 : vector<4x128xf32>, vector<28x128xf32> -> vector<32x128xf32>
    %483 = arith.select %50, %479, %482 : vector<32x128xi1>, vector<32x128xf32>
    %484 = arith.minimumf %476, %483 : vector<32x128xf32>
    %485 = arith.maximumf %476, %483 : vector<32x128xf32>
    %486 = arith.select %56, %484, %485 : vector<32x128xi1>, vector<32x128xf32>
    %487 = vector.extract_strided_slice %486 {offsets = [2, 0], sizes = [30, 128], strides = [1, 1]} : vector<32x128xf32> to vector<30x128xf32>
    %488 = vector.extract_strided_slice %486 {offsets = [0, 0], sizes = [2, 128], strides = [1, 1]} : vector<32x128xf32> to vector<2x128xf32>
    %489 = tpu.concatenate %487, %488 in 0 : vector<30x128xf32>, vector<2x128xf32> -> vector<32x128xf32>
    %490 = vector.extract_strided_slice %486 {offsets = [30, 0], sizes = [2, 128], strides = [1, 1]} : vector<32x128xf32> to vector<2x128xf32>
    %491 = vector.extract_strided_slice %486 {offsets = [0, 0], sizes = [30, 128], strides = [1, 1]} : vector<32x128xf32> to vector<30x128xf32>
    %492 = tpu.concatenate %490, %491 in 0 : vector<2x128xf32>, vector<30x128xf32> -> vector<32x128xf32>
    %493 = arith.select %60, %489, %492 : vector<32x128xi1>, vector<32x128xf32>
    %494 = arith.minimumf %486, %493 : vector<32x128xf32>
    %495 = arith.maximumf %486, %493 : vector<32x128xf32>
    %496 = arith.select %66, %494, %495 : vector<32x128xi1>, vector<32x128xf32>
    %497 = vector.extract_strided_slice %496 {offsets = [1, 0], sizes = [31, 128], strides = [1, 1]} : vector<32x128xf32> to vector<31x128xf32>
    %498 = vector.extract_strided_slice %496 {offsets = [0, 0], sizes = [1, 128], strides = [1, 1]} : vector<32x128xf32> to vector<1x128xf32>
    %499 = tpu.concatenate %497, %498 in 0 : vector<31x128xf32>, vector<1x128xf32> -> vector<32x128xf32>
    %500 = vector.extract_strided_slice %496 {offsets = [31, 0], sizes = [1, 128], strides = [1, 1]} : vector<32x128xf32> to vector<1x128xf32>
    %501 = vector.extract_strided_slice %496 {offsets = [0, 0], sizes = [31, 128], strides = [1, 1]} : vector<32x128xf32> to vector<31x128xf32>
    %502 = tpu.concatenate %500, %501 in 0 : vector<1x128xf32>, vector<31x128xf32> -> vector<32x128xf32>
    %503 = arith.select %70, %499, %502 : vector<32x128xi1>, vector<32x128xf32>
    %504 = arith.minimumf %496, %503 : vector<32x128xf32>
    %505 = arith.maximumf %496, %503 : vector<32x128xf32>
    %506 = arith.select %76, %504, %505 : vector<32x128xi1>, vector<32x128xf32>
    %507 = vector.extract_strided_slice %506 {offsets = [8, 0], sizes = [24, 128], strides = [1, 1]} : vector<32x128xf32> to vector<24x128xf32>
    %508 = vector.extract_strided_slice %506 {offsets = [0, 0], sizes = [8, 128], strides = [1, 1]} : vector<32x128xf32> to vector<8x128xf32>
    %509 = tpu.concatenate %507, %508 in 0 : vector<24x128xf32>, vector<8x128xf32> -> vector<32x128xf32>
    %510 = vector.extract_strided_slice %506 {offsets = [24, 0], sizes = [8, 128], strides = [1, 1]} : vector<32x128xf32> to vector<8x128xf32>
    %511 = vector.extract_strided_slice %506 {offsets = [0, 0], sizes = [24, 128], strides = [1, 1]} : vector<32x128xf32> to vector<24x128xf32>
    %512 = tpu.concatenate %510, %511 in 0 : vector<8x128xf32>, vector<24x128xf32> -> vector<32x128xf32>
    %513 = arith.select %80, %509, %512 : vector<32x128xi1>, vector<32x128xf32>
    %514 = arith.minimumf %506, %513 : vector<32x128xf32>
    %515 = arith.maximumf %506, %513 : vector<32x128xf32>
    %516 = arith.select %86, %514, %515 : vector<32x128xi1>, vector<32x128xf32>
    %517 = vector.extract_strided_slice %516 {offsets = [4, 0], sizes = [28, 128], strides = [1, 1]} : vector<32x128xf32> to vector<28x128xf32>
    %518 = vector.extract_strided_slice %516 {offsets = [0, 0], sizes = [4, 128], strides = [1, 1]} : vector<32x128xf32> to vector<4x128xf32>
    %519 = tpu.concatenate %517, %518 in 0 : vector<28x128xf32>, vector<4x128xf32> -> vector<32x128xf32>
    %520 = vector.extract_strided_slice %516 {offsets = [28, 0], sizes = [4, 128], strides = [1, 1]} : vector<32x128xf32> to vector<4x128xf32>
    %521 = vector.extract_strided_slice %516 {offsets = [0, 0], sizes = [28, 128], strides = [1, 1]} : vector<32x128xf32> to vector<28x128xf32>
    %522 = tpu.concatenate %520, %521 in 0 : vector<4x128xf32>, vector<28x128xf32> -> vector<32x128xf32>
    %523 = arith.select %90, %519, %522 : vector<32x128xi1>, vector<32x128xf32>
    %524 = arith.minimumf %516, %523 : vector<32x128xf32>
    %525 = arith.maximumf %516, %523 : vector<32x128xf32>
    %526 = arith.select %96, %524, %525 : vector<32x128xi1>, vector<32x128xf32>
    %527 = vector.extract_strided_slice %526 {offsets = [2, 0], sizes = [30, 128], strides = [1, 1]} : vector<32x128xf32> to vector<30x128xf32>
    %528 = vector.extract_strided_slice %526 {offsets = [0, 0], sizes = [2, 128], strides = [1, 1]} : vector<32x128xf32> to vector<2x128xf32>
    %529 = tpu.concatenate %527, %528 in 0 : vector<30x128xf32>, vector<2x128xf32> -> vector<32x128xf32>
    %530 = vector.extract_strided_slice %526 {offsets = [30, 0], sizes = [2, 128], strides = [1, 1]} : vector<32x128xf32> to vector<2x128xf32>
    %531 = vector.extract_strided_slice %526 {offsets = [0, 0], sizes = [30, 128], strides = [1, 1]} : vector<32x128xf32> to vector<30x128xf32>
    %532 = tpu.concatenate %530, %531 in 0 : vector<2x128xf32>, vector<30x128xf32> -> vector<32x128xf32>
    %533 = arith.select %100, %529, %532 : vector<32x128xi1>, vector<32x128xf32>
    %534 = arith.minimumf %526, %533 : vector<32x128xf32>
    %535 = arith.maximumf %526, %533 : vector<32x128xf32>
    %536 = arith.select %106, %534, %535 : vector<32x128xi1>, vector<32x128xf32>
    %537 = vector.extract_strided_slice %536 {offsets = [1, 0], sizes = [31, 128], strides = [1, 1]} : vector<32x128xf32> to vector<31x128xf32>
    %538 = vector.extract_strided_slice %536 {offsets = [0, 0], sizes = [1, 128], strides = [1, 1]} : vector<32x128xf32> to vector<1x128xf32>
    %539 = tpu.concatenate %537, %538 in 0 : vector<31x128xf32>, vector<1x128xf32> -> vector<32x128xf32>
    %540 = vector.extract_strided_slice %536 {offsets = [31, 0], sizes = [1, 128], strides = [1, 1]} : vector<32x128xf32> to vector<1x128xf32>
    %541 = vector.extract_strided_slice %536 {offsets = [0, 0], sizes = [31, 128], strides = [1, 1]} : vector<32x128xf32> to vector<31x128xf32>
    %542 = tpu.concatenate %540, %541 in 0 : vector<1x128xf32>, vector<31x128xf32> -> vector<32x128xf32>
    %543 = arith.select %110, %539, %542 : vector<32x128xi1>, vector<32x128xf32>
    %544 = arith.minimumf %536, %543 : vector<32x128xf32>
    %545 = arith.maximumf %536, %543 : vector<32x128xf32>
    %546 = arith.select %116, %544, %545 : vector<32x128xi1>, vector<32x128xf32>
    %c4 = arith.constant 4 : index
    %c0_75 = arith.constant 0 : index
    %c0_76 = arith.constant 0 : index
    %547 = vector.load %arg2[%c4, %c0_75, %c0_76] : memref<5x32x32xf32, #tpu.memory_space<vmem>>, vector<1x32x32xf32>
    %548 = vector.shape_cast %547 : vector<1x32x32xf32> to vector<32x32xf32>
    %549 = vector.extract_strided_slice %548 {offsets = [0, 0], sizes = [1, 32], strides = [1, 1]} : vector<32x32xf32> to vector<1x32xf32>
    %c4_77 = arith.constant 4 : index
    %c0_78 = arith.constant 0 : index
    %c0_79 = arith.constant 0 : index
    %550 = vector.load %arg3[%c4_77, %c0_78, %c0_79] : memref<5x32x1xf32, #tpu.memory_space<vmem>>, vector<1x32x1xf32>
    %551 = vector.shape_cast %550 : vector<1x32x1xf32> to vector<32x1xf32>
    %552 = vector.extract_strided_slice %551 {offsets = [0, 0], sizes = [1, 1], strides = [1, 1]} : vector<32x1xf32> to vector<1x1xf32>
    %cst_80 = arith.constant dense<0.000000e+00> : vector<1x128xf32>
    %553 = tpu.matmul %549, %546, %cst_80 {dimension_numbers = #tpu.dot_dimension_numbers<[1], [0], [0], [1], [0, 0, 1, 1], [], []>} : vector<1x32xf32>, vector<32x128xf32>, vector<1x128xf32> -> vector<1x128xf32>
    %554 = vector.broadcast %552 : vector<1x1xf32> to vector<1x128xf32>
    %555 = arith.addf %553, %554 : vector<1x128xf32>
    %c0_81 = arith.constant 0 : index
    %c0_82 = arith.constant 0 : index
    %556 = vector.load %arg4[%c0_81, %c0_82] : memref<1x128xf32, #tpu.memory_space<vmem>>, vector<1x128xf32>
    tpu.vector_store %arg4[%c0_81, %c0_82], %555 {strides = array<i32>} : memref<1x128xf32, #tpu.memory_space<vmem>>, vector<1x128xf32>,
    return
  }
  func.func @transform_0(%arg0: i32) -> (i32, i32) {
    %c0_i32 = arith.constant 0 : i32
    %c0_i32_0 = arith.constant 0 : i32
    return %c0_i32, %arg0 : i32, i32
  }
  func.func @transform_1(%arg0: i32) -> (i32, i32, i32) {
    %c0_i32 = arith.constant 0 : i32
    %c0_i32_0 = arith.constant 0 : i32
    %c0_i32_1 = arith.constant 0 : i32
    %c0_i32_2 = arith.constant 0 : i32
    return %c0_i32, %c0_i32_0, %c0_i32_1 : i32, i32, i32
  }
  func.func @transform_2(%arg0: i32) -> (i32, i32, i32) {
    %c0_i32 = arith.constant 0 : i32
    %c0_i32_0 = arith.constant 0 : i32
    %c0_i32_1 = arith.constant 0 : i32
    %c0_i32_2 = arith.constant 0 : i32
    return %c0_i32, %c0_i32_0, %c0_i32_1 : i32, i32, i32
  }
  func.func @transform_3(%arg0: i32) -> (i32, i32) {
    %c0_i32 = arith.constant 0 : i32
    %c0_i32_0 = arith.constant 0 : i32
    return %c0_i32, %arg0 : i32, i32
  }
}

</mosaic_0001>

<bundles_post_ra>
// kernel: tpu_custom_call.1
= control target key start
LH: loop header
LB: loop body
LE: loop exit
PB: predicated region body
PF: predicated region fallthrough
CT: control target
= control target key end

     0   :  { %6 = vsyncpa [#allocation3], 0  ;;  %s125_s0 = inlined_call_operand.hbm [shape: f32[8,128], index: 0, kind: input, shape index: {}]   ;;  %s126_s1 = inlined_call_operand.hbm [shape: f32[8,128], index: 1, kind: output, shape index: {}]  }
   0x1   :  { %7 = vsyncpa [#allocation4], 0  ;;  %s89_s6 = smov [#allocation2]   ;;  %s41_s10 = scalar_lea.hbm %s125_s0, 128 }
   0x2   :  { %s14_s7 = sshll.u32 %s89_s6, 4  ;;  %p42_p0 = scmp.ne.s32.totalorder %s125_s0, %s41_s10  ;;  %s15_s7 = int_to_ptr.vmem [resolvable:$true] %s14_s7 }
   0x3   :  { %p45_p1 = scmp.lt.u32.totalorder %s41_s10, %s125_s0 }
   0x5   :  { %p47_p2 = pnand %p45_p1, %p42_p0 }
   0x7   :  { %50 = shalt.err (!%p47_p2)
}
   0x8   :  { %s51_s15 = scalar_lea.vmem %s15_s7, 128  ;;  %p56_p4 = scmp.lt.s32.totalorder %s15_s7, %s15_s7 }
   0x9   :  { %p52_p3 = scmp.ne.s32.totalorder %s15_s7, %s51_s15  ;;  %p57_p5 = scmp.lt.s32.totalorder %s51_s15, %s51_s15 }
   0xb   :  { %p58_p6 = por %p57_p5, %p56_p4 }
   0xd   :  { %p59_p7 = pnand %p58_p6, %p52_p3 }
   0xf   :  { %62 = shalt.err (!%p59_p7)
}
  0x10   :  { %17 = dma.hbm_to_vmem [thread:$0]  %s125_s0, 128, %s15_s7, [#allocation3]  }
  0x11   :  { %85 = dma.done.wait [#allocation3], 128  }
  0x12   :  { %86 = vsyncadd [#allocation3], 4294967168  ;;  %s90_s18 = smov [#allocation5]   ;;  %v21_v0 = vld [vmem:[#allocation2] sm:$0xff] }
  0x13   :  { %s30_s19 = sshll.u32 %s90_s18, 4  ;;  %v22_v1 = vrot.slane %v21_v0, 5  ;;  %s31_s19 = int_to_ptr.vmem [resolvable:$true] %s30_s19 }
  0x14   :  { %s63_s20 = scalar_lea.vmem %s31_s19, 128  ;;  %p68_p9 = scmp.lt.s32.totalorder %s31_s19, %s31_s19 }
  0x15   :  { %23 = vst [vmem:[#allocation5] sm:$0xff] %v22_v1  ;;  %p64_p8 = scmp.ne.s32.totalorder %s31_s19, %s63_s20  ;;  %p69_p10 = scmp.lt.s32.totalorder %s63_s20, %s63_s20 }
  0x17   :  { %p70_p11 = por %p69_p10, %p68_p9 }
  0x19   :  { %p71_p12 = pnand %p70_p11, %p64_p8 }
  0x1b   :  { %74 = shalt.err (!%p71_p12)
}
  0x1c   :  { %s75_s23 = scalar_lea.hbm %s126_s1, 128 }
  0x1d   :  { %p76_p13 = scmp.ne.s32.totalorder %s126_s1, %s75_s23  ;;  %p79_p0 = scmp.lt.u32.totalorder %s75_s23, %s126_s1 }
  0x1f   :  { %p81_p1 = pnand %p79_p0, %p76_p13 }
  0x21   :  { %84 = shalt.err (!%p81_p1)
}
  0x22   :  { %33 = dma.vmem_to_hbm [thread:$0]  %s31_s19, 128, %s126_s1, [#allocation4]  }
  0x23   :  { %87 = dma.done.wait [#allocation4], 128  }
  0x24   :  { %88 = vsyncadd [#allocation4], 4294967168 }
  0x25   :  { %37 = vsyncpa [#allocation3], 1 }
  0x26   :  { %38 = vsyncpa [#allocation4], 1 }

// kernel: tpu_custom_call.1
= control target key start
LH: loop header
LB: loop body
LE: loop exit
PB: predicated region body
PF: predicated region fallthrough
CT: control target
= control target key end

     0   :  { %8 = vsyncpa [#allocation3], 0  ;;  %s4488_s0 = inlined_call_operand.hbm [shape: f32[16,256], index: 0, kind: input, shape index: {}]   ;;  %s4489_s1 = inlined_call_operand.vmem [shape: f32[5,32,32], index: 1, kind: input, shape index: {}]   ;;  %s4490_s2 = inlined_call_operand.vmem [shape: f32[5,32,1], index: 2, kind: input, shape index: {}]   ;;  %s4491_s3 = inlined_call_operand.hbm [shape: f32[1,256], index: 3, kind: output, shape index: {}]  }
   0x1   :  { %10 = vsyncpa [#allocation3 + $0x1], 0 }
   0x2   :  { %11 = vsyncpa [#allocation4], 0 }
   0x3   :  { %13 = vsyncpa [#allocation4 + $0x1], 0  ;;  %s3022_s12 = smov 0   ;;  %s3024_s13 = smov 0  }
   0x4   :  { %s3026_s14 = smov 0   ;;  %s3028_s15 = smov 0  }
   0x5 LB: > { %s3043_s16 = sadd.s32 4294967295, %s2990_s15   ;;  %s2653_s17 = sadd.s32 4294967294, %s2990_s15   ;;  %s2990_s15 = sphi %s3028_s15, %s5154_s15   ;;  %s2986_s14 = sphi %s3026_s14, %s5153_s14   ;;  %s2982_s13 = sphi %s3024_s13, %s5152_s13   ;;  %s2978_s12 = sphi %s3022_s12, %s5151_s12  }
   0x6   : > { %s3047_s18 = sadd.s32 1, %s2990_s15   ;;  %s26_s19 = sadd.s32 1, %s2986_s14 }
   0x7   : > { %s23_s20 = ssub.s32 %s2990_s15, %s3047_s18  ;;  %p33_p0 = scmp.ne.s32.totalorder %s2986_s14, %s2982_s13 }
   0x8   : > { %p24_p1 = scmp.eq.s32.totalorder %s23_s20, 0  ;;  %p34_p2 = scmp.eq.s32.totalorder %s2990_s15, 0 }
   0x9   : > { %p39_p3 = scmp.ne.s32.totalorder %s2982_s13, %s2978_s12  ;;  %p40_p4 = scmp.eq.s32.totalorder %s3043_s16, 0 }
   0xa   : > { %s3059_s21 = scalar_select %p24_p1, %s2986_s14, %s26_s19  }
   0xb   : > { %p3061_p5 = por %p34_p2, %p33_p0  ;;  %p3065_p6 = por %p40_p4, %p39_p3 }
   0xc   : > { %p105_p7 = scmp.eq.s32.totalorder %s3043_s16, 1  ;;  %p111_p8 = scmp.eq.s32.totalorder %s2653_s17, 1 }
   0xd   : > { %p2850_p10 = scmp.lt.s32.totalorder %s2990_s15, 2  ;;  %s137_s26 = sand.u32 1, %s2986_s14  }
   0xe   : > { %p3072_p11 = por %p105_p7, %p33_p0  ;;  %p3076_p12 = por %p111_p8, %p39_p3 }
   0xf   : > { %s2657_s27 = sshll.u32 %s2990_s15, 7  ;;  %s2656_s28 = sshll.u32 %s137_s26, 4 }
  0x10   : > { %s4604_s24 = scalar_select %p3072_p11, 1, 0 }
  0x11   : > { %s4605_s25 = scalar_select %p3076_p12, 1, 0 }
  0x12   : > { %s3085_s4 = scalar_lea.hbm %s4488_s0, %s2657_s27  ;;  %s141_s5 = scalar_lea.vmem [#allocation2], %s2656_s28 }
  0x13   : > { %s147_s6 = sshll.u32 %s141_s5, 4  ;;  %p3089_p13 = pnand %p2850_p10, %p3061_p5  ;;  %s3093_s6 = int_to_ptr.vmem [resolvable:$true] %s147_s6 }
  0x14   : > { %s3096_s8 = scalar_lea.sflag [#allocation3], %s137_s26  ;;  %s2894_s9 = scalar_lea.hbm %s3085_s4, 256 }
  0x15   : > { %p2895_p1 = scmp.ne.s32.totalorder %s3085_s4, %s2894_s9  ;;  %p2896_p2 = pneg %p3089_p13 }
  0x16   : > { %s2899_s17 = scalar_lea.hbm %s4488_s0, 512  ;;  %p2900_p5 = scmp.lt.u32.totalorder %s3085_s4, %s4488_s0 }
  0x17   : > { %p2897_p3 = pnand %p2896_p2, %p2895_p1  ;;  %p2901_p7 = scmp.lt.u32.totalorder %s2899_s17, %s2894_s9 }
  0x18   : > { %p2903_p10 = scmp.lt.u32.totalorder %s2894_s9, %s3085_s4 }
  0x19   : > { %p2898_p4 = pneg %p2897_p3  ;;  %p2902_p8 = por %p2901_p7, %p2900_p5 }
  0x1b   : > { %p2904_p9 = por %p2903_p10, %p2902_p8 }
  0x1d   : > { %p2905_p0 = pnand %p2904_p9, %p2898_p4 }
  0x1f   : > { %2908 = shalt.err (!%p2905_p0)
}
  0x20   : > { %s2909_s22 = scalar_lea.vmem %s3093_s6, 256  ;;  %s2992_s26 = smov [#allocation2]  }
  0x21   : > { %p2910_p1 = scmp.ne.s32.totalorder %s3093_s6, %s2909_s22  ;;  %s2914_s27 = sshll.u32 %s2992_s26, 4  ;;  %s2915_s27 = int_to_ptr.vmem [resolvable:$false] %s2914_s27 }
  0x22   : > { %s2916_s28 = scalar_lea.vmem %s2915_s27, 512  ;;  %p2917_p11 = scmp.lt.s32.totalorder %s3093_s6, %s2915_s27 }
  0x23   : > { %p2912_p3 = pnand %p2910_p1, %p2896_p2  ;;  %p2918_p5 = scmp.lt.s32.totalorder %s2916_s28, %s2909_s22 }
  0x25   : > { %p2913_p12 = pneg %p2912_p3  ;;  %p2919_p7 = por %p2918_p5, %p2917_p11 }
  0x27   : > { %p2920_p8 = pnand %p2919_p7, %p2913_p12 }
  0x29   : > { %2923 = shalt.err (!%p2920_p8)
}
  0x2a   : > { %s2993_s29 = smov 256   ;;  %s2994_s30 = smov 128  }
  0x2b   : > { %s2995_s5 = smov 8   ;;  %p155_p9 = scmp.lt.s32.totalorder %s2990_s15, 3 }
  0x2c   : > { %2845 = dma.hbm_to_vmem [thread:$0]  (!%p3089_p13), %s3085_s4, 256, %s3093_s6, %s3096_s8, %s2993_s29, %s2994_s30, %s2995_s5  }
  0x2d   : > { %p4607_p0 = scmp.ge.s32.totalorder %s2990_s15, 1 }
  0x2f   : > { %p156_p2 = pnand %p4607_p0, %p155_p9 }
  0x31   : > { %159 = sbr.rel (%p156_p2) target bundleno = 1578 (0x62a), region = 32 }
  0x38   : > { %s3128_s9 = sand.u32 1, %s2982_s13  }
  0x39   : > { %s2659_s10 = sshll.u32 %s3128_s9, 4  ;;  %s162_s11 = scalar_lea.sflag [#allocation3], %s3128_s9 }
  0x3a   : > { %s165_s17 = scalar_lea.vmem [#allocation2], %s2659_s10 }
  0x3b   : > { %2969 = dma.done.wait (%p3065_p6), %s162_s11, 256  }
  0x3c   : > { %2971 = vsyncadd (%p3065_p6), %s162_s11, 4294967040  ;;  %v2996_v0 = vmov 0   ;;  %vm390_vm0 = vcmask 130048   ;;  %v360_v1 = vld [vmem:[%s165_s17] sm:$0xff]  ;;  %v361_v2 = vld [vmem:[%s165_s17 + $0x8] sm:$0xff]  ;;  %vm4493_vm1 = vcmask 261120   ;;  %v187_v26 = vlaneseq }
  0x3d   : > { %2892 = vset.pattern.permute.xlu0 %v2996_v0  ;;  %2893 = vset.pattern.permute.xlu1 %v2996_v0  ;;  %v362_v3 = vld [vmem:[%s4489_s1] sm:$0xff]  ;;  %v2804_v4 = vpack.c.bf16 %v361_v2, %v360_v1  ;;  %v368_v6 = vld [vmem:[%s4490_s2 + $0x10] sm:$0xff]  ;;  %v363_v7 = vld [vmem:[%s4489_s1 + $0x8] sm:$0xff]  ;;  %vm4504_vm2 = vcmask 1046528   ;;  %vm4494_vm3 = vcmask 1040384   ;;  %v4608_v43 = vmov 0 }
  0x3e   : > { %2745 = vmatprep.mubr.msk.f32.mxu0 %vm390_vm0, %v362_v3  ;;  %v366_v5 = vld [vmem:[%s4490_s2] sm:$0xff]  ;;  %382 = vperm.xlu1 %2893, %v368_v6   ;;  %v367_v8 = vld [vmem:[%s4490_s2 + $0x8] sm:$0xff]  ;;  %v364_v9 = vld [vmem:[%s4489_s1 + $0x10] sm:$0xff]  ;;  %v188_v27 = vshrl.u32 %v187_v26, 7  ;;  %v4610_v47 = vmov 0  ;;  %v4612_v51 = vmov 0 }
  0x3f   : > { %2805 = vmatprep.subr.bf16.mxu0 %v2804_v4  ;;  %372 = vperm.xlu0 %2892, %v366_v5   ;;  %v369_v10 = vld [vmem:[%s4490_s2 + $0x18] sm:$0xff]  ;;  %v2668_v12 = vld [vmem:[%s4490_s2 + $0x20] sm:$0xff]  ;;  %v2669_v13 = vld [vmem:[%s4490_s2 + $0x28] sm:$0xff]  ;;  %v4614_v52 = vmov 0  ;;  %v4616_v1 = vmov 0  ;;  %v4618_v2 = vmov 0 }
  0x40   : > { %2807 = vmatpush3.bf16.msra.mxu0 %v2804_v4  ;;  %v365_v11 = vld [vmem:[%s4489_s1 + $0x18] sm:$0xff]  ;;  %v2670_v14 = vld [vmem:[%s4490_s2 + $0x30] sm:$0xff]  ;;  %v2680_v16 = vld [vmem:[%s4490_s2 + $0x40] sm:$0xff]  ;;  %v189_v28 = vadd.s32 8, %v188_v27  ;;  %v190_v29 = vadd.s32 16, %v188_v27  ;;  %v196_v30 = vand.u32 15, %v188_v27 }
  0x41   : > { %v2671_v15 = vld [vmem:[%s4490_s2 + $0x38] sm:$0xff]  ;;  %v2681_v17 = vld [vmem:[%s4490_s2 + $0x48] sm:$0xff]  ;;  %v2682_v18 = vld [vmem:[%s4490_s2 + $0x50] sm:$0xff]  ;;  %v191_v31 = vadd.s32 24, %v188_v27  ;;  %v4620_v3 = vmov 0  ;;  %vm4495_vm13 = vmmov 1  }
  0x42   : > { %387 = vperm.xlu1 %2893, %v369_v10   ;;  %v2683_v19 = vld [vmem:[%s4490_s2 + $0x58] sm:$0xff]  ;;  %v2692_v20 = vld [vmem:[%s4490_s2 + $0x60] sm:$0xff]  ;;  %v2693_v21 = vld [vmem:[%s4490_s2 + $0x68] sm:$0xff]  ;;  %v203_v33 = vand.u32 15, %v189_v28  ;;  %v210_v34 = vand.u32 15, %v190_v29  ;;  %v240_v35 = vand.u32 1, %v196_v30 }
  0x43   : > { %2746 = vmatmul.mubr.msk.f32.vlgmr.msra.gmra.mrb[0].mxu0 %vm390_vm0, %v363_v7  ;;  %377 = vperm.xlu0 %2892, %v367_v8   ;;  %v2694_v22 = vld [vmem:[%s4490_s2 + $0x70] sm:$0xff]  ;;  %v2695_v23 = vld [vmem:[%s4490_s2 + $0x78] sm:$0xff]  ;;  %v2701_v24 = vld [vmem:[%s4490_s2 + $0x80] sm:$0xff]  ;;  %v217_v36 = vand.u32 15, %v191_v31  ;;  %v248_v37 = vand.u32 2, %v196_v30  ;;  %v264_v56 = vand.u32 4, %v196_v30 }
  0x44   : > { %2748 = vmatprep.mubr.msk.f32.mxu0 %vm390_vm0, %v364_v9  ;;  %v2664_v25 = vld [vmem:[%s4489_s1 + $0x20] sm:$0xff]  ;;  %v241_v39 = vand.u32 1, %v203_v33  ;;  %v242_v40 = vand.u32 1, %v210_v34  ;;  %vm3207_vm4 = vcmp.eq.s32.totalorder %v240_v35, 0  ;;  %v249_v48 = vand.u32 2, %v203_v33  ;;  %s2703_s4 = sshll.u32 %s3043_s16, 4 }
  0x45   : > { %2759 = vmatprep.mubr.msk.f32.mxu1 %vm4493_vm1, %v2664_v25  ;;  %v4609_v43 = vsel %vm3207_vm4, 4294967295, %v4608_v43  ;;  %v243_v44 = vand.u32 1, %v217_v36  ;;  %vm3213_vm5 = vcmp.eq.s32.totalorder %v248_v37, 0  ;;  %v250_v49 = vand.u32 2, %v210_v34  ;;  %s186_s6 = scalar_lea.vmem [#allocation5], %s3128_s9  ;;  %s4444_s23 = scalar_lea.hbm %s4491_s3, %s2703_s4 }
  0x46   : > { %914 = vperm.xlu1 %2893, %v2669_v13   ;;  %v4611_v47 = vsel %vm3213_vm5, 4294967295, %v4610_v47  ;;  %vm3217_vm6 = vcmp.eq.s32.totalorder %v241_v39, 0  ;;  %vm3221_vm7 = vcmp.eq.s32.totalorder %v242_v40, 0  ;;  %v251_v53 = vand.u32 2, %v217_v36  ;;  %vm256_vm8 = vmxor %vm3207_vm4, %vm3213_vm5  ;;  %s2587_s7 = sshll.u32 %s186_s6, 4  ;;  %s2575_s20 = scalar_lea.sflag [#allocation4], %s3128_s9  ;;  %s4446_s7 = int_to_ptr.vmem [resolvable:$true] %s2587_s7 }
  0x47   : > { %2749 = vmatmul.mubr.msk.f32.gmra.mrb[2].mxu0 %vm390_vm0, %v365_v11  ;;  %909 = vperm.xlu0 %2892, %v2668_v12   ;;  %v4613_v51 = vsel %vm3217_vm6, 4294967295, %v4612_v51  ;;  %v4615_v52 = vsel %vm3221_vm7, 4294967295, %v4614_v52  ;;  %v265_v57 = vand.u32 4, %v203_v33  ;;  %v266_v62 = vand.u32 4, %v210_v34  ;;  %vm3250_vm14 = vmxor %vm256_vm8, %vm4495_vm13  ;;  %s2924_s22 = scalar_lea.vmem %s4446_s7, 16  ;;  %p5148_p11 = scmp.ne.s32.totalorder %s4604_s24, 0 }
  0x48   : > { %v267_v63 = vand.u32 4, %v217_v36  ;;  %vm3231_vm9 = vcmp.eq.s32.totalorder %v243_v44, 0  ;;  %vm3235_vm10 = vcmp.eq.s32.totalorder %v249_v48, 0  ;;  %vm3239_vm11 = vcmp.eq.s32.totalorder %v250_v49, 0  ;;  %p2925_p6 = scmp.ne.s32.totalorder %s4446_s7, %s2924_s22  ;;  %s3001_s16 = smov [#allocation5]  }
  0x49   : > { %v4617_v1 = vsel %vm3231_vm9, 4294967295, %v4616_v1  ;;  %v4619_v2 = vsel %vm3235_vm10, 4294967295, %v4618_v2  ;;  %v4621_v3 = vsel %vm3239_vm11, 4294967295, %v4620_v3  ;;  %vm3245_vm12 = vcmp.eq.s32.totalorder %v251_v53, 0  ;;  %vm4636_vm5 = vmxor %vm3217_vm6, %vm3235_vm10  ;;  %s2928_s26 = sshll.u32 %s3001_s16, 4  ;;  %s2929_s26 = int_to_ptr.vmem [resolvable:$false] %s2928_s26 }
  0x4a   : > { %924 = vperm.xlu1 %2893, %v2671_v15   ;;  %v4622_v7 = vmov 0  ;;  %v4624_v9 = vmov 0  ;;  %vm3254_vm15 = vcmp.eq.s32.totalorder %v264_v56, 0  ;;  %v4626_v12 = vmov 0  ;;  %p2926_p12 = pnand %p2925_p6, %p5148_p11  ;;  %s2930_s27 = scalar_lea.vmem %s2929_s26, 32 }
  0x4b   : > { %919 = vperm.xlu0 %2892, %v2670_v14   ;;  %v4623_v7 = vsel %vm3245_vm12, 4294967295, %v4622_v7  ;;  %v4625_v9 = vsel %vm3250_vm14, 4294967295, %v4624_v9  ;;  %v4627_v12 = vsel %vm3254_vm15, 4294967295, %v4626_v12  ;;  %vm3258_vm0 = vcmp.eq.s32.totalorder %v265_v57, 0  ;;  %p2931_p4 = scmp.lt.s32.totalorder %s4446_s7, %s2929_s26  ;;  %p2932_p10 = scmp.lt.s32.totalorder %s2930_s27, %s2924_s22 }
  0x4c   : > { %v4628_v13 = vmov 0  ;;  %v4630_v14 = vmov 0  ;;  %vm3270_vm8 = vcmp.eq.s32.totalorder %v267_v63, 0  ;;  %v4632_v15 = vmov 0  ;;  %p2927_p13 = pneg %p2926_p12 }
  0x4d   : > { %v4629_v13 = vsel %vm3258_vm0, 4294967295, %v4628_v13  ;;  %v4633_v15 = vsel %vm3270_vm8, 4294967295, %v4632_v15  ;;  %vm4634_vm13 = vcmask 1040384   ;;  %vm258_vm0 = vmxor %vm3221_vm7, %vm3239_vm11  ;;  %v4637_v26 = vmov 0  ;;  %p2933_p1 = por %p2932_p10, %p2931_p4 }
  0x4e   : > { %1446 = vperm.xlu1 %2893, %v2681_v17   ;;  %vm259_vm8 = vmxor %vm3231_vm9, %vm3245_vm12  ;;  %v4640_v29 = vmov 0  ;;  %v4643_v35 = vmov 0  ;;  %v4653_v57 = vmov 0 }
  0x4f   : > { %1441 = vperm.xlu0 %2892, %v2680_v16   ;;  %p2934_p3 = pnand %p2933_p1, %p2927_p13 }
  0x52   : > { %1456 = vperm.xlu1 %2893, %v2683_v19  }
  0x53   : > { %1451 = vperm.xlu0 %2892, %v2682_v18  }
  0x56   : > { %1977 = vperm.xlu1 %2893, %v2693_v21  }
  0x57   : > { %1972 = vperm.xlu0 %2892, %v2692_v20  }
  0x5a   : > { %1987 = vperm.xlu1 %2893, %v2695_v23  }
  0x5b   : > { %1982 = vperm.xlu0 %2892, %v2694_v22  }
  0x5f   : > { %2497 = vperm.xlu0 %2892, %v2701_v24  }
  0xbd   : > { %v383_v38 = vpop.permute.xlu1 %382 }
  0xbe   : > { %v373_v32 = vpop.permute.xlu0 %372 }
  0xc1   : > { %v388_v58 = vpop.permute.xlu1 %387 }
  0xc2   : > { %v378_v41 = vpop.permute.xlu0 %377 }
 0x116   : > { %v2747_v42 = vpop.f32.mrb[0].mxu0 }
 0x117   : > { %v3211_v45 = vadd.f32 %v2747_v42, %v378_v41  ;;  %v469_v46 = vpop.f32.mrb[1].mxu0 }
 0x118   : > { %v470_v50 = vadd.f32 %v469_v46, %v373_v32 }
 0x119   : > { %v494_v54 = vrot.slane %v3211_v45, 1  ;;  %v510_v55 = vrot.slane %v3211_v45, 7 }
 0x11a   : > { %v493_v59 = vrot.slane %v470_v50, 1  ;;  %v509_v60 = vrot.slane %v470_v50, 7  ;;  %v2750_v61 = vpop.f32.mrb[2].mxu0 }
 0x11b   : > { %v485_v0 = vadd.f32 %v2750_v61, %v388_v58  ;;  %v479_v4 = vpop.f32.mrb[3].mxu0 }
 0x11c   : > { %v495_v5 = vsel %vm4504_vm2, %v493_v59, %v494_v54  ;;  %v511_v6 = vsel %vm4494_vm3, %v509_v60, %v510_v55  ;;  %v480_v8 = vadd.f32 %v479_v4, %v383_v38  ;;  %vm3266_vm3 = vcmp.eq.s32.totalorder %v266_v62, 0 }
 0x11d   : > { %v498_v10 = vrot.slane %v485_v0, 1  ;;  %v506_v11 = vrot.slane %v485_v0, 7  ;;  %v4631_v14 = vsel %vm3266_vm3, 4294967295, %v4630_v14  ;;  %vm4635_vm3 = vmmov 1  }
 0x11e   : > { %v496_v16 = vrot.slane %v480_v8, 1  ;;  %v512_v17 = vrot.slane %v480_v8, 7  ;;  %vm3295_vm1 = vmxor %vm4636_vm5, %vm4635_vm3  ;;  %vm4646_vm5 = vnez %v4611_v47  ;;  %v4665_v4 = vmov 0 }
 0x11f   : > { %v505_v18 = vsel %vm4504_vm2, %v498_v10, %v493_v59  ;;  %v519_v19 = vsel %vm4634_vm13, %v506_v11, %v509_v60  ;;  %v4638_v26 = vsel %vm3295_vm1, 4294967295, %v4637_v26  ;;  %v4658_v60 = vmov 0 }
 0x120   : > { %v520_v20 = vsel %vm3207_vm4, %v495_v5, %v519_v19  ;;  %v497_v21 = vsel %vm4504_vm2, %v494_v54, %v496_v16  ;;  %v499_v22 = vsel %vm4504_vm2, %v496_v16, %v498_v10  ;;  %v513_v23 = vsel %vm4634_vm13, %v510_v55, %v512_v17  ;;  %vm4639_vm4 = vmmov %vm4634_vm13 }
 0x121   : > { %v524_v24 = vmin.f32 %v470_v50, %v520_v20  ;;  %v528_v25 = vmax.f32 %v470_v50, %v520_v20  ;;  %v514_v27 = vsel %vm4639_vm4, %v512_v17, %v506_v11  ;;  %v521_v28 = vsel %vm3217_vm6, %v497_v21, %v511_v6  ;;  %vm3303_vm2 = vmxor %vm258_vm0, %vm4635_vm3 }
 0x122   : > { %v4641_v29 = vsel %vm3303_vm2, 4294967295, %v4640_v29  ;;  %v522_v30 = vsel %vm3221_vm7, %v499_v22, %v513_v23  ;;  %v523_v31 = vsel %vm3231_vm9, %v505_v18, %v514_v27  ;;  %v525_v32 = vmin.f32 %v3211_v45, %v521_v28  ;;  %vm3321_vm4 = vmxor %vm259_vm8, %vm4635_vm3 }
 0x123   : > { %4642 = vst [vmem:[#allocation8_spill] sm:$0xff] %v4641_v29  ;;  %v529_v33 = vmax.f32 %v3211_v45, %v521_v28  ;;  %v532_v34 = vsel %vm3250_vm14, %v524_v24, %v528_v25  ;;  %v4644_v35 = vsel %vm3321_vm4, 4294967295, %v4643_v35  ;;  %v526_v36 = vmin.f32 %v480_v8, %v522_v30  ;;  %vm4652_vm9 = vmxor %vm4646_vm5, %vm3254_vm15 }
 0x124   : > { %4645 = vst [vmem:[#allocation9_spill] sm:$0xff] %v4644_v35  ;;  %v527_v37 = vmin.f32 %v485_v0, %v523_v31  ;;  %v530_v38 = vmax.f32 %v480_v8, %v522_v30  ;;  %v541_v39 = vrot.slane %v532_v34, 2  ;;  %v557_v40 = vrot.slane %v532_v34, 6 }
 0x125   : > { %v531_v41 = vmax.f32 %v485_v0, %v523_v31  ;;  %v533_v42 = vsel %vm3295_vm1, %v525_v32, %v529_v33  ;;  %vm4647_vm13 = vnez %v4629_v13  ;;  %vm4648_vm14 = vnez %v4631_v14 }
 0x126   : > { %v534_v44 = vsel %vm3303_vm2, %v526_v36, %v530_v38  ;;  %v542_v45 = vrot.slane %v533_v42, 2  ;;  %v558_v46 = vrot.slane %v533_v42, 6  ;;  %vm4649_vm0 = vnez %v4633_v15 }
 0x127   : > { %v535_v48 = vsel %vm3321_vm4, %v527_v37, %v531_v41  ;;  %v544_v49 = vrot.slane %v534_v44, 2  ;;  %v560_v50 = vrot.slane %v534_v44, 6  ;;  %vm4650_vm1 = vcmask 1045504   ;;  %vm3355_vm4 = vmxor %vm4652_vm9, %vm4635_vm3 }
 0x128   : > { %v543_v53 = vsel %vm4650_vm1, %v541_v39, %v542_v45  ;;  %v546_v54 = vrot.slane %v535_v48, 2  ;;  %v554_v55 = vrot.slane %v535_v48, 6  ;;  %vm4651_vm2 = vcmask 1041408   ;;  %vm4655_vm7 = vmmov %vm4650_vm1 }
 0x129   : > { %v559_v56 = vsel %vm4651_vm2, %v557_v40, %v558_v46  ;;  %v4654_v57 = vsel %vm3355_vm4, 4294967295, %v4653_v57  ;;  %v545_v58 = vsel %vm4655_vm7, %v542_v45, %v544_v49  ;;  %vm4656_vm6 = vmmov %vm4651_vm2  ;;  %v4668_v11 = vmov 0 }
 0x12a   : > { %v561_v59 = vsel %vm4656_vm6, %v558_v46, %v560_v50  ;;  %vm4657_vm1 = vmxor %vm3235_vm10, %vm4647_vm13  ;;  %v569_v6 = vsel %vm3235_vm10, %v545_v58, %v559_v56  ;;  %v4684_v45 = vmov 0 }
 0x12b   : > { %vm3367_vm2 = vmxor %vm4657_vm1, %vm4635_vm3  ;;  %v573_v17 = vmin.f32 %v533_v42, %v569_v6  ;;  %v577_v21 = vmax.f32 %v533_v42, %v569_v6  ;;  %vm4671_vm1 = vnez %v4609_v43 }
 0x12c   : > { %v4659_v60 = vsel %vm3367_vm2, 4294967295, %v4658_v60  ;;  %vm4660_vm8 = vmmov %vm4655_vm7 }
 0x12d   : > { %v547_v61 = vsel %vm4660_vm8, %v544_v49, %v546_v54  ;;  %vm4661_vm9 = vmmov %vm4655_vm7  ;;  %vm4670_vm8 = vnez %v4627_v12  ;;  %v581_v25 = vsel %vm3367_vm2, %v573_v17, %v577_v21 }
 0x12e   : > { %v553_v62 = vsel %vm4661_vm9, %v546_v54, %v541_v39  ;;  %vm4662_vm15 = vmmov %vm4656_vm6  ;;  %v570_v8 = vsel %vm3239_vm11, %v547_v61, %v561_v59  ;;  %vm4674_vm9 = vnez %v4615_v52  ;;  %v589_v31 = vrot.slane %v581_v25, 1 }
 0x12f   : > { %v562_v63 = vsel %vm4662_vm15, %v560_v50, %v554_v55  ;;  %vm4663_vm4 = vmmov %vm4656_vm6  ;;  %v574_v18 = vmin.f32 %v534_v44, %v570_v8  ;;  %v578_v22 = vmax.f32 %v534_v44, %v570_v8  ;;  %v604_v37 = vrot.slane %v581_v25, 7 }
 0x130   : > { %v567_v0 = vsel %vm4663_vm4, %v554_v55, %v557_v40  ;;  %vm4664_vm6 = vmxor %vm3239_vm11, %vm4648_vm14  ;;  %v571_v10 = vsel %vm3245_vm12, %v553_v62, %v562_v63  ;;  %v4677_v39 = vmov 0  ;;  %v4695_v59 = vmov 0 }
 0x131   : > { %vm3381_vm7 = vmxor %vm4664_vm6, %vm4635_vm3  ;;  %v568_v5 = vsel %vm4646_vm5, %v543_v53, %v567_v0  ;;  %v575_v19 = vmin.f32 %v535_v48, %v571_v10  ;;  %v579_v23 = vmax.f32 %v535_v48, %v571_v10  ;;  %vm4672_vm6 = vnez %v4613_v51 }
 0x132   : > { %v4666_v4 = vsel %vm3381_vm7, 4294967295, %v4665_v4  ;;  %vm4667_vm15 = vmxor %vm3245_vm12, %vm4649_vm0  ;;  %v572_v16 = vmin.f32 %v532_v34, %v568_v5  ;;  %v576_v20 = vmax.f32 %v532_v34, %v568_v5  ;;  %vm4673_vm12 = vnez %v4654_v57 }
 0x133   : > { %vm3399_vm4 = vmxor %vm4667_vm15, %vm4635_vm3  ;;  %v582_v27 = vsel %vm3381_vm7, %v574_v18, %v578_v22  ;;  %vm4675_vm15 = vnez %v4617_v1  ;;  %vm4679_vm7 = vcmask 1046528   ;;  %v4691_v53 = vmov 0 }
 0x134   : > { %v4669_v11 = vsel %vm3399_vm4, 4294967295, %v4668_v11  ;;  %v580_v24 = vsel %vm4673_vm12, %v572_v16, %v576_v20  ;;  %v583_v28 = vsel %vm3399_vm4, %v575_v19, %v579_v23  ;;  %v591_v32 = vrot.slane %v582_v27, 1  ;;  %vm4676_vm4 = vmxor %vm4671_vm1, %vm4670_vm8 }
 0x135   : > { %v588_v30 = vrot.slane %v580_v24, 1  ;;  %v593_v33 = vrot.slane %v583_v28, 1  ;;  %v601_v34 = vrot.slane %v583_v28, 7  ;;  %v603_v36 = vrot.slane %v580_v24, 7  ;;  %vm3433_vm10 = vmxor %vm4676_vm4, %vm4635_vm3 }
 0x136   : > { %v606_v38 = vrot.slane %v582_v27, 7  ;;  %v4678_v39 = vsel %vm3433_vm10, 4294967295, %v4677_v39  ;;  %vm4680_vm12 = vmmov %vm4679_vm7  ;;  %vm4686_vm4 = vcmask 1040384  }
 0x137   : > { %v590_v40 = vsel %vm4679_vm7, %v588_v30, %v589_v31  ;;  %v592_v41 = vsel %vm4680_vm12, %v589_v31, %v591_v32  ;;  %vm4681_vm11 = vmmov %vm4679_vm7  ;;  %v605_v46 = vsel %vm4686_vm4, %v603_v36, %v604_v37  ;;  %v4704_v31 = vmov 0 }
 0x138   : > { %v594_v42 = vsel %vm4681_vm11, %v591_v32, %v593_v33  ;;  %vm4682_vm2 = vmmov %vm4679_vm7  ;;  %v615_v55 = vsel %vm4672_vm6, %v592_v41, %v605_v46 }
 0x139   : > { %v600_v44 = vsel %vm4682_vm2, %v593_v33, %v588_v30  ;;  %vm4683_vm5 = vmxor %vm4672_vm6, %vm4647_vm13  ;;  %v619_v62 = vmin.f32 %v581_v25, %v615_v55  ;;  %v623_v6 = vmax.f32 %v581_v25, %v615_v55 }
 0x13a   : > { %vm3447_vm0 = vmxor %vm4683_vm5, %vm4635_vm3  ;;  %vm4693_vm5 = vnez %v4633_v15 }
 0x13b   : > { %v4685_v45 = vsel %vm3447_vm0, 4294967295, %v4684_v45  ;;  %vm4687_vm8 = vmmov %vm4686_vm4  ;;  %v627_v17 = vsel %vm3447_vm0, %v619_v62, %v623_v6  ;;  %vm4700_vm0 = vcmask 1043456  }
 0x13c   : > { %v607_v48 = vsel %vm4687_vm8, %v604_v37, %v606_v38  ;;  %vm4688_vm7 = vmmov %vm4686_vm4  ;;  %v636_v21 = vrot.slane %v627_v17, 4  ;;  %v4706_v37 = vmov 0 }
 0x13d   : > { %v608_v49 = vsel %vm4688_vm7, %v606_v38, %v601_v34  ;;  %vm4689_vm12 = vmmov %vm4686_vm4  ;;  %v616_v56 = vsel %vm4674_vm9, %v594_v42, %v607_v48 }
 0x13e   : > { %v613_v50 = vsel %vm4689_vm12, %v601_v34, %v603_v36  ;;  %vm4690_vm11 = vmxor %vm4674_vm9, %vm4648_vm14  ;;  %v617_v58 = vsel %vm4675_vm15, %v600_v44, %v608_v49  ;;  %v620_v63 = vmin.f32 %v582_v27, %v616_v56  ;;  %v624_v8 = vmax.f32 %v582_v27, %v616_v56 }
 0x13f   : > { %vm3461_vm2 = vmxor %vm4690_vm11, %vm4635_vm3  ;;  %v614_v54 = vsel %vm4671_vm1, %v590_v40, %v613_v50  ;;  %v621_v0 = vmin.f32 %v583_v28, %v617_v58  ;;  %v625_v10 = vmax.f32 %v583_v28, %v617_v58  ;;  %vm4697_vm11 = vnez %v4627_v12 }
 0x140   : > { %v4692_v53 = vsel %vm3461_vm2, 4294967295, %v4691_v53  ;;  %vm4694_vm8 = vmxor %vm4675_vm15, %vm4693_vm5  ;;  %v618_v61 = vmin.f32 %v580_v24, %v614_v54  ;;  %v622_v5 = vmax.f32 %v580_v24, %v614_v54  ;;  %v628_v18 = vsel %vm3461_vm2, %v620_v63, %v624_v8 }
 0x141   : > { %vm3479_vm4 = vmxor %vm4694_vm8, %vm4635_vm3  ;;  %v638_v22 = vrot.slane %v628_v18, 4  ;;  %v4698_v24 = vmov 0  ;;  %v4708_v44 = vmov 0 }
 0x142   : > { %v4696_v59 = vsel %vm3479_vm4, 4294967295, %v4695_v59  ;;  %vm298_vm7 = vmxor %vm4648_vm14, %vm4635_vm3  ;;  %v626_v16 = vsel %vm3433_vm10, %v618_v61, %v622_v5  ;;  %v629_v19 = vsel %vm3479_vm4, %v621_v0, %v625_v10 }
 0x143   : > { %vm296_vm8 = vmxor %vm4697_vm11, %vm4635_vm3  ;;  %v635_v20 = vrot.slane %v626_v16, 4  ;;  %v640_v23 = vrot.slane %v629_v19, 4 }
 0x144   : > { %vm3498_vm12 = vmxor %vm298_vm7, %vm4635_vm3  ;;  %vm4711_vm7 = vnez %v4621_v3 }
 0x145   : > { %v4699_v24 = vsel %vm3498_vm12, 4294967295, %v4698_v24  ;;  %v637_v25 = vsel %vm4700_vm0, %v635_v20, %v636_v21  ;;  %vm4701_vm10 = vmmov %vm4700_vm0 }
 0x146   : > { %v639_v27 = vsel %vm4701_vm10, %v636_v21, %v638_v22  ;;  %vm4702_vm2 = vmmov %vm4700_vm0  ;;  %v4719_v21 = vmov 0 }
 0x147   : > { %v641_v28 = vsel %vm4702_vm2, %v638_v22, %v640_v23  ;;  %vm4703_vm4 = vmmov %vm4700_vm0  ;;  %v649_v33 = vsel %vm4647_vm13, %v639_v27, %v637_v25  ;;  %vm4710_vm2 = vnez %v4611_v47 }
 0x148   : > { %v647_v30 = vsel %vm4703_vm4, %v640_v23, %v635_v20  ;;  %vm3507_vm15 = vmxor %vm296_vm8, %vm4635_vm3  ;;  %v650_v34 = vsel %vm4648_vm14, %v641_v28, %v639_v27  ;;  %v653_v38 = vmin.f32 %v627_v17, %v649_v33  ;;  %v657_v42 = vmax.f32 %v627_v17, %v649_v33 }
 0x149   : > { %v4705_v31 = vsel %vm3507_vm15, 4294967295, %v4704_v31  ;;  %v648_v32 = vsel %vm4697_vm11, %v637_v25, %v647_v30  ;;  %v651_v36 = vsel %vm4693_vm5, %v647_v30, %v641_v28  ;;  %vm3522_vm10 = vmxor %vm4647_vm13, %vm4635_vm3  ;;  %v654_v40 = vmin.f32 %v628_v18, %v650_v34 }
 0x14a   : > { %v4707_v37 = vsel %vm3522_vm10, 4294967295, %v4706_v37  ;;  %v655_v41 = vmin.f32 %v629_v19, %v651_v36  ;;  %vm3529_vm0 = vmxor %vm4693_vm5, %vm4635_vm3  ;;  %v658_v46 = vmax.f32 %v628_v18, %v650_v34  ;;  %v659_v48 = vmax.f32 %v629_v19, %v651_v36 }
 0x14b   : > { %v4709_v44 = vsel %vm3529_vm0, 4294967295, %v4708_v44  ;;  %v652_v49 = vmin.f32 %v626_v16, %v648_v32  ;;  %v656_v50 = vmax.f32 %v626_v16, %v648_v32  ;;  %v661_v54 = vsel %vm3522_vm10, %v653_v38, %v657_v42  ;;  %vm304_vm4 = vmxor %vm4710_vm2, %vm4635_vm3 }
 0x14c   : > { %v662_v55 = vsel %vm3498_vm12, %v654_v40, %v658_v46  ;;  %v663_v58 = vsel %vm3529_vm0, %v655_v41, %v659_v48  ;;  %v669_v61 = vrot.slane %v661_v54, 2  ;;  %vm306_vm8 = vmxor %vm4711_vm7, %vm4635_vm3  ;;  %v684_v10 = vrot.slane %v661_v54, 6 }
 0x14d   : > { %v660_v56 = vsel %vm3507_vm15, %v652_v49, %v656_v50  ;;  %v686_v62 = vrot.slane %v662_v55, 6  ;;  %v671_v0 = vrot.slane %v662_v55, 2  ;;  %v673_v5 = vrot.slane %v663_v58, 2  ;;  %vm3548_vm12 = vmxor %vm304_vm4, %vm4635_vm3 }
 0x14e   : > { %v668_v63 = vrot.slane %v660_v56, 2  ;;  %v681_v6 = vrot.slane %v663_v58, 6  ;;  %v683_v8 = vrot.slane %v660_v56, 6  ;;  %v4712_v16 = vmov 0 }
 0x14f   : > { %v4713_v16 = vsel %vm3548_vm12, 4294967295, %v4712_v16  ;;  %vm4714_vm15 = vcmask 1045504   ;;  %vm4718_vm13 = vnez %v4619_v2  ;;  %vm4721_vm10 = vcmask 1041408  }
 0x150   : > { %v670_v17 = vsel %vm4714_vm15, %v668_v63, %v669_v61  ;;  %vm4715_vm0 = vmmov %vm4714_vm15  ;;  %v685_v22 = vsel %vm4721_vm10, %v683_v8, %v684_v10  ;;  %v4725_v28 = vmov 0  ;;  %v4728_v36 = vmov 0 }
 0x151   : > { %v672_v18 = vsel %vm4715_vm0, %v669_v61, %v671_v0  ;;  %vm4716_vm5 = vmmov %vm4715_vm0 }
 0x152   : > { %v674_v19 = vsel %vm4716_vm5, %v671_v0, %v673_v5  ;;  %vm4717_vm14 = vmmov %vm4715_vm0  ;;  %v695_v32 = vsel %vm4718_vm13, %v672_v18, %v685_v22  ;;  %v4732_v18 = vmov 0 }
 0x153   : > { %v680_v20 = vsel %vm4717_vm14, %v673_v5, %v668_v63  ;;  %vm3559_vm11 = vmxor %vm4718_vm13, %vm4635_vm3  ;;  %vm4727_vm14 = vnez %v4623_v7  ;;  %v699_v40 = vmin.f32 %v661_v54, %v695_v32  ;;  %v703_v48 = vmax.f32 %v661_v54, %v695_v32 }
 0x154   : > { %v4720_v21 = vsel %vm3559_vm11, 4294967295, %v4719_v21  ;;  %vm4722_vm4 = vmmov %vm4721_vm10 }
 0x155   : > { %v687_v23 = vsel %vm4722_vm4, %v684_v10, %v686_v62  ;;  %vm4723_vm6 = vmmov %vm4722_vm4 }
 0x156   : > { %v688_v25 = vsel %vm4723_vm6, %v686_v62, %v681_v6  ;;  %vm4724_vm15 = vmmov %vm4722_vm4  ;;  %v696_v33 = vsel %vm4711_vm7, %v674_v19, %v687_v23  ;;  %v707_v62 = vsel %vm3559_vm11, %v699_v40, %v703_v48  ;;  %vm4734_vm4 = vcmask 1046528  }
 0x157   : > { %v693_v27 = vsel %vm4724_vm15, %v681_v6, %v683_v8  ;;  %vm3568_vm0 = vmxor %vm306_vm8, %vm4635_vm3  ;;  %v697_v34 = vsel %vm4727_vm14, %v680_v20, %v688_v25  ;;  %v700_v41 = vmin.f32 %v662_v55, %v696_v33  ;;  %v704_v49 = vmax.f32 %v662_v55, %v696_v33 }
 0x158   : > { %v4726_v28 = vsel %vm3568_vm0, 4294967295, %v4725_v28  ;;  %v694_v30 = vsel %vm4710_vm2, %v670_v17, %v693_v27  ;;  %vm3583_vm6 = vmxor %vm4727_vm14, %vm4635_vm3  ;;  %v701_v42 = vmin.f32 %v663_v58, %v697_v34  ;;  %v705_v50 = vmax.f32 %v663_v58, %v697_v34 }
 0x159   : > { %v4729_v36 = vsel %vm3583_vm6, 4294967295, %v4728_v36  ;;  %v698_v38 = vmin.f32 %v660_v56, %v694_v30  ;;  %v702_v46 = vmax.f32 %v660_v56, %v694_v30  ;;  %vm312_vm5 = vmxor %vm4671_vm1, %vm4635_vm3  ;;  %v708_v63 = vsel %vm3568_vm0, %v700_v41, %v704_v49 }
 0x15a   : > { %v709_v0 = vsel %vm3583_vm6, %v701_v42, %v705_v50  ;;  %v715_v54 = vrot.slane %v707_v62, 1  ;;  %v717_v55 = vrot.slane %v708_v63, 1  ;;  %vm3601_vm10 = vmxor %vm4674_vm9, %vm4635_vm3  ;;  %v730_v10 = vrot.slane %v707_v62, 7 }
 0x15b   : > { %v706_v61 = vsel %vm3548_vm12, %v698_v38, %v702_v46  ;;  %v719_v58 = vrot.slane %v709_v0, 1  ;;  %v727_v6 = vrot.slane %v709_v0, 7  ;;  %v732_v17 = vrot.slane %v708_v63, 7  ;;  %vm3606_vm8 = vmxor %vm312_vm5, %vm4635_vm3 }
 0x15c   : > { %v714_v56 = vrot.slane %v706_v61, 1  ;;  %v729_v8 = vrot.slane %v706_v61, 7  ;;  %v4733_v18 = vsel %vm3606_vm8, 4294967295, %v4732_v18  ;;  %vm4735_vm15 = vmmov %vm4734_vm4  ;;  %vm4738_vm6 = vnez %v4613_v51 }
 0x15d   : > { %v718_v20 = vsel %vm4735_vm15, %v715_v54, %v717_v55  ;;  %vm4736_vm0 = vmmov %vm4734_vm4  ;;  %v4739_v25 = vmov 0  ;;  %vm4741_vm7 = vcmask 1040384   ;;  %v4745_v34 = vmov 0 }
 0x15e   : > { %v716_v19 = vsel %vm4734_vm4, %v714_v56, %v715_v54  ;;  %v720_v22 = vsel %vm4736_vm0, %v717_v55, %v719_v58  ;;  %vm4737_vm12 = vmmov %vm4736_vm0  ;;  %v731_v27 = vsel %vm4741_vm7, %v729_v8, %v730_v10  ;;  %v4748_v46 = vmov 0 }
 0x15f   : > { %v726_v23 = vsel %vm4737_vm12, %v719_v58, %v714_v56  ;;  %vm3617_vm14 = vmxor %vm4738_vm6, %vm4635_vm3  ;;  %v741_v40 = vsel %vm4738_vm6, %v718_v20, %v731_v27 }
 0x160   : > { %v4740_v25 = vsel %vm3617_vm14, 4294967295, %v4739_v25  ;;  %vm4742_vm5 = vmmov %vm4741_vm7  ;;  %v745_v49 = vmin.f32 %v707_v62, %v741_v40  ;;  %v749_v55 = vmax.f32 %v707_v62, %v741_v40  ;;  %vm4750_vm7 = vcmask 1043456  }
 0x161   : > { %v733_v30 = vsel %vm4742_vm5, %v730_v10, %v732_v17  ;;  %vm4743_vm13 = vmmov %vm4742_vm5 }
 0x162   : > { %v734_v32 = vsel %vm4743_vm13, %v732_v17, %v727_v6  ;;  %vm4744_vm4 = vmmov %vm4742_vm5  ;;  %v742_v41 = vsel %vm4674_vm9, %v720_v22, %v733_v30  ;;  %vm4747_vm13 = vnez %v4617_v1 }
 0x163   : > { %v739_v33 = vsel %vm4744_vm4, %v727_v6, %v729_v8  ;;  %vm3628_vm0 = vmxor %vm3601_vm10, %vm4635_vm3  ;;  %v743_v42 = vsel %vm4747_vm13, %v726_v23, %v734_v32  ;;  %v746_v50 = vmin.f32 %v708_v63, %v742_v41  ;;  %v750_v58 = vmax.f32 %v708_v63, %v742_v41 }
 0x164   : > { %v4746_v34 = vsel %vm3628_vm0, 4294967295, %v4745_v34  ;;  %v740_v38 = vsel %vm4671_vm1, %v716_v19, %v739_v33  ;;  %vm3643_vm12 = vmxor %vm4747_vm13, %vm4635_vm3  ;;  %v747_v56 = vmin.f32 %v709_v0, %v743_v42  ;;  %v751_v5 = vmax.f32 %v709_v0, %v743_v42 }
 0x165   : > { %v4749_v46 = vsel %vm3643_vm12, 4294967295, %v4748_v46  ;;  %v744_v48 = vmin.f32 %v706_v61, %v740_v38  ;;  %v748_v54 = vmax.f32 %v706_v61, %v740_v38  ;;  %v753_v8 = vsel %vm3617_vm14, %v745_v49, %v749_v55  ;;  %vm4751_vm10 = vmmov %vm4750_vm7 }
 0x166   : > { %v754_v10 = vsel %vm3628_vm0, %v746_v50, %v750_v58  ;;  %v755_v17 = vsel %vm3643_vm12, %v747_v56, %v751_v5  ;;  %vm4752_vm15 = vmmov %vm4750_vm7  ;;  %vm4754_vm4 = vnez %v4707_v37  ;;  %v4755_v38 = vmov 0 }
 0x167   : > { %v752_v6 = vsel %vm3606_vm8, %v744_v48, %v748_v54  ;;  %v762_v20 = vmin.f32 %v754_v10, %v755_v17  ;;  %v767_v23 = vmax.f32 %v755_v17, %v754_v10  ;;  %vm4753_vm5 = vmmov %vm4750_vm7  ;;  %vm4757_vm12 = vnez %v4627_v12 }
 0x168   : > { %v760_v19 = vmin.f32 %v752_v6, %v753_v8  ;;  %v765_v22 = vmax.f32 %v753_v8, %v752_v6  ;;  %vm3662_vm0 = vmxor %vm4754_vm4, %vm4635_vm3  ;;  %vm4758_vm8 = vnez %v4629_v13  ;;  %v4762_v49 = vmov 0 }
 0x169   : > { %v779_v63 = vrot.slane %v762_v20, 4  ;;  %v781_v0 = vrot.slane %v767_v23, 4  ;;  %v4756_v38 = vsel %vm3662_vm0, 4294967295, %v4755_v38  ;;  %vm4764_vm4 = vnez %v4705_v31  ;;  %vm3700_vm13 = vmxor %vm3559_vm11, %vm4635_vm3 }
 0x16a   : > { %v776_v61 = vrot.slane %v760_v19, 4  ;;  %v777_v62 = vrot.slane %v765_v22, 4 }
 0x16b   : > { %v782_v32 = vsel %vm4752_vm15, %v779_v63, %v781_v0  ;;  %vm4761_vm15 = vnez %v4709_v44 }
 0x16c   : > { %v778_v27 = vsel %vm4750_vm7, %v776_v61, %v777_v62  ;;  %v780_v30 = vsel %vm4751_vm10, %v777_v62, %v779_v63  ;;  %v788_v33 = vsel %vm4753_vm5, %v781_v0, %v776_v61  ;;  %vm4759_vm7 = vnez %v4631_v14  ;;  %vm3677_vm5 = vmxor %vm4761_vm15, %vm4635_vm3 }
 0x16d   : > { %v789_v40 = vsel %vm4757_vm12, %v778_v27, %v788_v33  ;;  %v790_v41 = vsel %vm4758_vm8, %v780_v30, %v778_v27  ;;  %v791_v42 = vsel %vm4759_vm7, %v782_v32, %v780_v30  ;;  %vm4760_vm10 = vnez %v4633_v15 }
 0x16e   : > { %v792_v48 = vsel %vm4760_vm10, %v788_v33, %v782_v32  ;;  %v4763_v49 = vsel %vm3677_vm5, 4294967295, %v4762_v49  ;;  %v793_v50 = vmin.f32 %v760_v19, %v789_v40  ;;  %v794_v56 = vmin.f32 %v765_v22, %v790_v41 }
 0x16f   : > { %v795_v54 = vmin.f32 %v762_v20, %v791_v42  ;;  %v796_v55 = vmin.f32 %v767_v23, %v792_v48  ;;  %v797_v58 = vmax.f32 %v760_v19, %v789_v40  ;;  %v798_v5 = vmax.f32 %v765_v22, %v790_v41 }
 0x170   : > { %v799_v6 = vmax.f32 %v762_v20, %v791_v42  ;;  %v800_v8 = vmax.f32 %v767_v23, %v792_v48  ;;  %vm4765_vm10 = vnez %v4699_v24  ;;  %vm4766_vm15 = vcmask 1045504  }
 0x171   : > { %v801_v10 = vsel %vm4764_vm4, %v793_v50, %v797_v58  ;;  %v802_v17 = vsel %vm3662_vm0, %v794_v56, %v798_v5  ;;  %vm4767_vm4 = vmmov %vm4766_vm15 }
 0x172   : > { %v803_v61 = vsel %vm4765_vm10, %v795_v54, %v799_v6  ;;  %v804_v62 = vsel %vm3677_vm5, %v796_v55, %v800_v8  ;;  %v809_v63 = vrot.slane %v801_v10, 2  ;;  %v810_v0 = vrot.slane %v802_v17, 2  ;;  %vm4768_vm7 = vmmov %vm4767_vm4 }
 0x173   : > { %v812_v27 = vrot.slane %v803_v61, 2  ;;  %v814_v30 = vrot.slane %v804_v62, 2  ;;  %v822_v19 = vrot.slane %v804_v62, 6  ;;  %v824_v22 = vrot.slane %v801_v10, 6  ;;  %vm4769_vm0 = vmmov %vm4767_vm4 }
 0x174   : > { %v825_v20 = vrot.slane %v802_v17, 6  ;;  %v827_v23 = vrot.slane %v803_v61, 6  ;;  %v811_v32 = vsel %vm4766_vm15, %v809_v63, %v810_v0  ;;  %vm4770_vm10 = vcmask 1041408  }
 0x175   : > { %v813_v33 = vsel %vm4767_vm4, %v810_v0, %v812_v27  ;;  %v815_v40 = vsel %vm4768_vm7, %v812_v27, %v814_v30  ;;  %v821_v41 = vsel %vm4769_vm0, %v814_v30, %v809_v63  ;;  %vm4771_vm8 = vmmov %vm4770_vm10  ;;  %v4774_v54 = vmov 0 }
 0x176   : > { %v826_v42 = vsel %vm4770_vm10, %v824_v22, %v825_v20  ;;  %v828_v48 = vsel %vm4771_vm8, %v825_v20, %v827_v23  ;;  %vm4772_vm5 = vmmov %vm4771_vm8  ;;  %v4775_v54 = vsel %vm3700_vm13, 4294967295, %v4774_v54  ;;  %vm4776_vm0 = vnez %v4619_v2 }
 0x177   : > { %v829_v50 = vsel %vm4772_vm5, %v827_v23, %v822_v19  ;;  %vm4773_vm12 = vmmov %vm4772_vm5  ;;  %v836_v58 = vsel %vm4776_vm0, %v813_v33, %v826_v42  ;;  %vm4777_vm4 = vnez %v4621_v3  ;;  %vm4778_vm8 = vnez %v4623_v7 }
 0x178   : > { %v834_v56 = vsel %vm4773_vm12, %v822_v19, %v824_v22  ;;  %v837_v5 = vsel %vm4777_vm4, %v815_v40, %v828_v48  ;;  %v838_v6 = vsel %vm4778_vm8, %v821_v41, %v829_v50  ;;  %vm4779_vm12 = vnez %v4729_v36 }
 0x179   : > { %v835_v55 = vsel %vm4710_vm2, %v811_v32, %v834_v56  ;;  %vm3715_vm7 = vmxor %vm4779_vm12, %vm4635_vm3  ;;  %v4780_v8 = vmov 0  ;;  %v840_v0 = vmin.f32 %v802_v17, %v836_v58  ;;  %v841_v27 = vmin.f32 %v803_v61, %v837_v5 }
 0x17a   : > { %v4781_v8 = vsel %vm3715_vm7, 4294967295, %v4780_v8  ;;  %v839_v63 = vmin.f32 %v801_v10, %v835_v55  ;;  %v842_v30 = vmin.f32 %v804_v62, %v838_v6  ;;  %v843_v19 = vmax.f32 %v801_v10, %v835_v55 }
 0x17b   : > { %v844_v22 = vmax.f32 %v802_v17, %v836_v58  ;;  %v845_v20 = vmax.f32 %v803_v61, %v837_v5  ;;  %v846_v23 = vmax.f32 %v804_v62, %v838_v6  ;;  %vm4782_vm10 = vnez %v4713_v16 }
 0x17c   : > { %v847_v32 = vsel %vm4782_vm10, %v839_v63, %v843_v19  ;;  %vm4783_vm15 = vnez %v4726_v28  ;;  %vm4784_vm5 = vcmask 1046528   ;;  %vm4786_vm10 = vcmask 1040384  }
 0x17d   : > { %v848_v33 = vsel %vm3700_vm13, %v840_v0, %v844_v22  ;;  %v849_v40 = vsel %vm4783_vm15, %v841_v27, %v845_v20  ;;  %v850_v41 = vsel %vm3715_vm7, %v842_v30, %v846_v23  ;;  %v855_v42 = vrot.slane %v847_v32, 1  ;;  %vm4785_vm11 = vmmov %vm4784_vm5 }
 0x17e   : > { %v856_v48 = vrot.slane %v848_v33, 1  ;;  %v858_v50 = vrot.slane %v849_v40, 1  ;;  %v868_v56 = vrot.slane %v850_v41, 7  ;;  %v870_v10 = vrot.slane %v847_v32, 7  ;;  %vm4787_vm13 = vmmov %vm4786_vm10 }
 0x17f   : > { %v871_v17 = vrot.slane %v848_v33, 7  ;;  %v860_v61 = vrot.slane %v850_v41, 1  ;;  %v873_v62 = vrot.slane %v849_v40, 7  ;;  %vm4788_vm12 = vmmov %vm4784_vm5  ;;  %v4790_v27 = vmov 0 }
 0x180   : > { %v857_v55 = vsel %vm4784_vm5, %v855_v42, %v856_v48  ;;  %v859_v58 = vsel %vm4785_vm11, %v856_v48, %v858_v50  ;;  %v880_v6 = vsel %vm4787_vm13, %v868_v56, %v870_v10  ;;  %vm4789_vm15 = vmmov %vm4784_vm5 }
 0x181   : > { %v872_v5 = vsel %vm4786_vm10, %v870_v10, %v871_v17  ;;  %v861_v63 = vsel %vm4788_vm12, %v858_v50, %v860_v61  ;;  %v867_v0 = vsel %vm4789_vm15, %v860_v61, %v855_v42  ;;  %vm3736_vm7 = vmxor %vm3617_vm14, %vm4635_vm3  ;;  %v881_v30 = vsel %vm4671_vm1, %v857_v55, %v880_v6 }
 0x182   : > { %v4791_v27 = vsel %vm3736_vm7, 4294967295, %v4790_v27  ;;  %v882_v19 = vsel %vm4738_vm6, %v859_v58, %v872_v5  ;;  %vm4793_vm11 = vmmov %vm4786_vm10  ;;  %v885_v23 = vmin.f32 %v847_v32, %v881_v30  ;;  %v889_v42 = vmax.f32 %v847_v32, %v881_v30  ;;  %v2665_v30 = vld [vmem:[%s4489_s1 + $0x28] sm:$0xff] }
 0x183   : > { %4792 = vst [vmem:[#allocation10_spill] sm:$0xff] %v4791_v27  ;;  %v874_v22 = vsel %vm4793_vm11, %v871_v17, %v873_v62  ;;  %vm4794_vm13 = vmmov %vm4786_vm10  ;;  %v886_v48 = vmin.f32 %v848_v33, %v882_v19  ;;  %v890_v50 = vmax.f32 %v848_v33, %v882_v19  ;;  %vm4795_vm12 = vnez %v4617_v1  ;;  %v2676_v19 = vld [vmem:[%s4489_s1 + $0x40] sm:$0xff] }
 0x184   : > { %v875_v20 = vsel %vm4794_vm13, %v873_v62, %v868_v56  ;;  %v883_v10 = vsel %vm4674_vm9, %v861_v63, %v874_v22  ;;  %vm4796_vm10 = vnez %v4733_v18  ;;  %vm4797_vm15 = vnez %v4749_v46  ;;  %v915_v22 = vpop.permute.xlu1 %914 }
 0x185   : > { %v884_v61 = vsel %vm4795_vm12, %v867_v0, %v875_v20  ;;  %v893_v55 = vsel %vm4796_vm10, %v885_v23, %v889_v42  ;;  %v894_v58 = vsel %vm3736_vm7, %v886_v48, %v890_v50  ;;  %vm3757_vm5 = vmxor %vm4797_vm15, %vm4635_vm3  ;;  %v4798_v56 = vmov 0  ;;  %v910_v20 = vpop.permute.xlu0 %909 }
 0x186   : > { %v4799_v56 = vsel %vm3757_vm5, 4294967295, %v4798_v56  ;;  %v887_v32 = vmin.f32 %v849_v40, %v883_v10  ;;  %v888_v33 = vmin.f32 %v850_v41, %v884_v61  ;;  %v2808_v17 = vpack.c.bf16 %v894_v58, %v893_v55 }
 0x187   : > { %4800 = vst [vmem:[#allocation11_spill] sm:$0xff] %v4799_v56  ;;  %v891_v62 = vmax.f32 %v849_v40, %v883_v10  ;;  %v892_v5 = vmax.f32 %v850_v41, %v884_v61  ;;  %vm4801_vm11 = vnez %v4746_v34  ;;  %v2666_v40 = vld [vmem:[%s4489_s1 + $0x30] sm:$0xff]  ;;  %vm4802_vm3 = vcmask 261120   ;;  %v2667_v41 = vld [vmem:[%s4489_s1 + $0x38] sm:$0xff] }
 0x188   : > { %2809 = vmatprep.subr.bf16.mxu1 %v2808_v17  ;;  %vm4803_vm13 = vmmov %vm4802_vm3  ;;  %v925_v55 = vpop.permute.xlu1 %924 }
 0x189   : > { %v895_v6 = vsel %vm4801_vm11, %v887_v32, %v891_v62  ;;  %v896_v63 = vsel %vm3757_vm5, %v888_v33, %v892_v5  ;;  %2811 = vmatpush3.bf16.msra.mxu1 %v2808_v17  ;;  %vm4804_vm5 = vmmov %vm4802_vm3  ;;  %v920_v17 = vpop.permute.xlu0 %919 }
 0x18a   : > { %v2812_v0 = vpack.c.bf16 %v896_v63, %v895_v6  ;;  %vm4805_vm7 = vmmov %vm4802_vm3 }
 0x18b   : > { %2773 = vmatprep.mubr.msk.f32.mxu0 %vm4805_vm7, %v2676_v19 }
 0x18c   : > { %2813 = vmatprep.subr.bf16.mxu1 %v2812_v0 }
 0x18d   : > { %2815 = vmatpush3.bf16.msra.mxu1 %v2812_v0 }
 0x190   : > { %2760 = vmatmul.mubr.msk.f32.vlgmr.msra.gmra.mrb[0].mxu1 %vm4802_vm3, %v2665_v30  ;;  %vm4807_vm3 = vcmask 1040384  }
 0x191   : > { %2762 = vmatprep.mubr.msk.f32.mxu1 %vm4803_vm13, %v2666_v40  ;;  %vm4809_vm13 = vmmov %vm4807_vm3 }
 0x192   : > { %vm4812_vm14 = vmmov %vm4807_vm3 }
 0x194   : > { %2763 = vmatmul.mubr.msk.f32.gmra.mrb[2].mxu1 %vm4804_vm5, %v2667_v41  ;;  %vm4806_vm5 = vcmask 1046528  }
 0x195   : > { %vm4808_vm7 = vmmov %vm4806_vm5 }
 0x196   : > { %vm4810_vm15 = vmmov %vm4806_vm5 }
 0x197   : > { %vm4811_vm11 = vmmov %vm4806_vm5 }
 0x263   : > { %v2761_v23 = vpop.f32.mrb[0].mxu1 }
 0x264   : > { %v1012_v48 = vadd.f32 %v2761_v23, %v915_v22  ;;  %v1006_v42 = vpop.f32.mrb[1].mxu1 }
 0x265   : > { %v1007_v50 = vadd.f32 %v1006_v42, %v910_v20 }
 0x266   : > { %v1030_v10 = vrot.slane %v1012_v48, 1  ;;  %v1045_v61 = vrot.slane %v1012_v48, 7 }
 0x267   : > { %v1029_v58 = vrot.slane %v1007_v50, 1  ;;  %v1044_v32 = vrot.slane %v1007_v50, 7  ;;  %v2764_v33 = vpop.f32.mrb[2].mxu1 }
 0x268   : > { %v1022_v62 = vadd.f32 %v2764_v33, %v925_v55  ;;  %v1016_v5 = vpop.f32.mrb[3].mxu1 }
 0x269   : > { %v1031_v6 = vsel %vm4806_vm5, %v1029_v58, %v1030_v10  ;;  %v1046_v63 = vsel %vm4807_vm3, %v1044_v32, %v1045_v61  ;;  %v1017_v0 = vadd.f32 %v1016_v5, %v920_v17  ;;  %vm4813_vm5 = vmmov %vm4807_vm3  ;;  %vm4817_vm3 = vnez %v4644_v35 }
 0x26a   : > { %v1034_v30 = vrot.slane %v1022_v62, 1  ;;  %v1042_v40 = vrot.slane %v1022_v62, 7 }
 0x26b   : > { %v1032_v41 = vrot.slane %v1017_v0, 1  ;;  %v1047_v19 = vrot.slane %v1017_v0, 7 }
 0x26c   : > { %v1041_v22 = vsel %vm4808_vm7, %v1034_v30, %v1029_v58  ;;  %v1054_v20 = vsel %vm4809_vm13, %v1042_v40, %v1044_v32  ;;  %vm4818_vm7 = vcmask 1045504   ;;  %vm4819_vm13 = vcmask 1041408  }
 0x26d   : > { %v1055_v23 = vsel %vm4671_vm1, %v1031_v6, %v1054_v20  ;;  %v1033_v42 = vsel %vm4810_vm15, %v1030_v10, %v1032_v41  ;;  %v1035_v55 = vsel %vm4811_vm11, %v1032_v41, %v1034_v30  ;;  %v1048_v33 = vsel %vm4812_vm14, %v1045_v61, %v1047_v19  ;;  %vm4824_vm10 = vmmov %vm4819_vm13 }
 0x26e   : > { %v1059_v56 = vmin.f32 %v1007_v50, %v1055_v23  ;;  %v1063_v27 = vmax.f32 %v1007_v50, %v1055_v23  ;;  %v1049_v17 = vsel %vm4813_vm5, %v1047_v19, %v1042_v40  ;;  %v1056_v5 = vsel %vm4738_vm6, %v1033_v42, %v1046_v63  ;;  %vm4820_vm5 = vmmov %vm4818_vm7 }
 0x26f   : > { %v1057_v58 = vsel %vm4674_vm9, %v1035_v55, %v1048_v33  ;;  %v1058_v32 = vsel %vm4795_vm12, %v1041_v22, %v1049_v17  ;;  %v1060_v6 = vmin.f32 %v1012_v48, %v1056_v5  ;;  %v1064_v20 = vmax.f32 %v1012_v48, %v1056_v5  ;;  %vm4825_vm12 = vmmov %vm4824_vm10 }
 0x270   : > { %vm4814_vm15 = vnez %v4625_v9  ;;  %v1061_v30 = vmin.f32 %v1017_v0, %v1057_v58  ;;  %v1062_v61 = vmin.f32 %v1022_v62, %v1058_v32  ;;  %v1065_v41 = vmax.f32 %v1017_v0, %v1057_v58 }
 0x271   : > { %v1067_v10 = vsel %vm4814_vm15, %v1059_v56, %v1063_v27  ;;  %v1066_v40 = vmax.f32 %v1022_v62, %v1058_v32  ;;  %vm4815_vm14 = vnez %v4638_v26  ;;  %vm4816_vm11 = vnez %v4641_v29  ;;  %vm4821_vm15 = vmmov %vm4819_vm13 }
 0x272   : > { %v1075_v50 = vrot.slane %v1067_v10, 2  ;;  %v1090_v23 = vrot.slane %v1067_v10, 6  ;;  %v1068_v63 = vsel %vm4815_vm14, %v1060_v6, %v1064_v20  ;;  %v1069_v19 = vsel %vm4816_vm11, %v1061_v30, %v1065_v41  ;;  %vm4822_vm14 = vmmov %vm4820_vm5 }
 0x273   : > { %v1076_v42 = vrot.slane %v1068_v63, 2  ;;  %v1091_v55 = vrot.slane %v1068_v63, 6  ;;  %v1070_v48 = vsel %vm4817_vm3, %v1062_v61, %v1066_v40  ;;  %v1078_v22 = vrot.slane %v1069_v19, 2  ;;  %vm4823_vm11 = vmmov %vm4820_vm5 }
 0x274   : > { %v1093_v33 = vrot.slane %v1069_v19, 6  ;;  %v1080_v56 = vrot.slane %v1070_v48, 2  ;;  %v1088_v0 = vrot.slane %v1070_v48, 6  ;;  %vm4850_vm3 = vnez %v4633_v15 }
 0x275   : > { %v1077_v27 = vsel %vm4818_vm7, %v1075_v50, %v1076_v42  ;;  %v1092_v17 = vsel %vm4819_vm13, %v1090_v23, %v1091_v55  ;;  %v1079_v62 = vsel %vm4820_vm5, %v1076_v42, %v1078_v22 }
 0x276   : > { %v1094_v5 = vsel %vm4821_vm15, %v1091_v55, %v1093_v33  ;;  %v1081_v58 = vsel %vm4822_vm14, %v1078_v22, %v1080_v56  ;;  %v1087_v32 = vsel %vm4823_vm11, %v1080_v56, %v1075_v50  ;;  %v1095_v6 = vsel %vm4824_vm10, %v1093_v33, %v1088_v0 }
 0x277   : > { %v1100_v20 = vsel %vm4825_vm12, %v1088_v0, %v1090_v23  ;;  %v1102_v61 = vsel %vm4776_vm0, %v1079_v62, %v1092_v17  ;;  %v1103_v41 = vsel %vm4777_vm4, %v1081_v58, %v1094_v5  ;;  %v1104_v40 = vsel %vm4778_vm8, %v1087_v32, %v1095_v6 }
 0x278   : > { %v1101_v30 = vsel %vm4710_vm2, %v1077_v27, %v1100_v20  ;;  %v1106_v55 = vmin.f32 %v1068_v63, %v1102_v61  ;;  %v1107_v22 = vmin.f32 %v1069_v19, %v1103_v41  ;;  %v1108_v50 = vmin.f32 %v1070_v48, %v1104_v40 }
 0x279   : > { %v1105_v42 = vmin.f32 %v1067_v10, %v1101_v30  ;;  %v1109_v56 = vmax.f32 %v1067_v10, %v1101_v30  ;;  %v1110_v33 = vmax.f32 %v1068_v63, %v1102_v61  ;;  %v1111_v35 = vmax.f32 %v1069_v19, %v1103_v41 }
 0x27a   : > { %v1112_v23 = vmax.f32 %v1070_v48, %v1104_v40  ;;  %vm4826_vm12 = vnez %v4654_v57  ;;  %vm4827_vm10 = vnez %v4659_v60  ;;  %vm4828_vm15 = vnez %v4666_v4 }
 0x27b   : > { %v1113_v27 = vsel %vm4826_vm12, %v1105_v42, %v1109_v56  ;;  %v1114_v0 = vsel %vm4827_vm10, %v1106_v55, %v1110_v33  ;;  %v1115_v17 = vsel %vm4828_vm15, %v1107_v22, %v1111_v35  ;;  %vm4829_vm14 = vnez %v4669_v11 }
 0x27c   : > { %v1116_v62 = vsel %vm4829_vm14, %v1108_v50, %v1112_v23  ;;  %v1121_v5 = vrot.slane %v1113_v27, 1  ;;  %v1122_v58 = vrot.slane %v1114_v0, 1  ;;  %v1124_v32 = vrot.slane %v1115_v17, 1 }
 0x27d   : > { %v1126_v6 = vrot.slane %v1116_v62, 1  ;;  %v1134_v10 = vrot.slane %v1116_v62, 7  ;;  %v1136_v63 = vrot.slane %v1113_v27, 7  ;;  %v1137_v19 = vrot.slane %v1114_v0, 7 }
 0x27e   : > { %v1139_v48 = vrot.slane %v1115_v17, 7  ;;  %vm4830_vm11 = vcmask 1046528   ;;  %vm4834_vm15 = vcmask 1040384  }
 0x27f   : > { %v1123_v20 = vsel %vm4830_vm11, %v1121_v5, %v1122_v58  ;;  %vm4831_vm7 = vmmov %vm4830_vm11  ;;  %v1138_v35 = vsel %vm4834_vm15, %v1136_v63, %v1137_v19  ;;  %vm4838_vm11 = vnez %v4617_v1 }
 0x280   : > { %v1125_v30 = vsel %vm4831_vm7, %v1122_v58, %v1124_v32  ;;  %vm4832_vm13 = vmmov %vm4831_vm7 }
 0x281   : > { %v1127_v61 = vsel %vm4832_vm13, %v1124_v32, %v1126_v6  ;;  %vm4833_vm5 = vmmov %vm4831_vm7  ;;  %v1148_v50 = vsel %vm4738_vm6, %v1125_v30, %v1138_v35  ;;  %vm4843_vm7 = vcmask 1043456  }
 0x282   : > { %v1133_v41 = vsel %vm4833_vm5, %v1126_v6, %v1121_v5  ;;  %vm4835_vm10 = vmmov %vm4834_vm15  ;;  %v1152_v5 = vmin.f32 %v1114_v0, %v1148_v50  ;;  %vm4841_vm15 = vnez %v4692_v53 }
 0x283   : > { %v1140_v40 = vsel %vm4835_vm10, %v1137_v19, %v1139_v48  ;;  %vm4836_vm14 = vmmov %vm4835_vm10  ;;  %v1156_v19 = vmax.f32 %v1114_v0, %v1148_v50 }
 0x284   : > { %v1141_v42 = vsel %vm4836_vm14, %v1139_v48, %v1134_v10  ;;  %vm4837_vm12 = vmmov %vm4835_vm10  ;;  %v1149_v56 = vsel %vm4674_vm9, %v1127_v61, %v1140_v40  ;;  %vm4840_vm10 = vnez %v4685_v45  ;;  %vm4842_vm14 = vnez %v4696_v59 }
 0x285   : > { %v1146_v55 = vsel %vm4837_vm12, %v1134_v10, %v1136_v63  ;;  %v1150_v33 = vsel %vm4838_vm11, %v1133_v41, %v1141_v42  ;;  %v1153_v58 = vmin.f32 %v1115_v17, %v1149_v56  ;;  %v1157_v48 = vmax.f32 %v1115_v17, %v1149_v56  ;;  %vm4844_vm13 = vmmov %vm4843_vm7 }
 0x286   : > { %v1147_v22 = vsel %vm4671_vm1, %v1123_v20, %v1146_v55  ;;  %v1154_v32 = vmin.f32 %v1116_v62, %v1150_v33  ;;  %v1158_v10 = vmax.f32 %v1116_v62, %v1150_v33  ;;  %vm4839_vm12 = vnez %v4678_v39  ;;  %vm4845_vm5 = vmmov %vm4843_vm7 }
 0x287   : > { %v1151_v23 = vmin.f32 %v1113_v27, %v1147_v22  ;;  %v1155_v6 = vmax.f32 %v1113_v27, %v1147_v22  ;;  %v1160_v20 = vsel %vm4840_vm10, %v1152_v5, %v1156_v19  ;;  %v1161_v30 = vsel %vm4841_vm15, %v1153_v58, %v1157_v48 }
 0x288   : > { %v1162_v61 = vsel %vm4842_vm14, %v1154_v32, %v1158_v10  ;;  %v1168_v35 = vrot.slane %v1160_v20, 4  ;;  %v1170_v40 = vrot.slane %v1161_v30, 4  ;;  %vm4847_vm10 = vnez %v4627_v12 }
 0x289   : > { %v1159_v63 = vsel %vm4839_vm12, %v1151_v23, %v1155_v6  ;;  %v1172_v42 = vrot.slane %v1162_v61, 4  ;;  %vm4846_vm12 = vmmov %vm4845_vm5  ;;  %vm4848_vm15 = vnez %v4629_v13  ;;  %vm4849_vm14 = vnez %v4631_v14 }
 0x28a   : > { %v1167_v41 = vrot.slane %v1159_v63, 4  ;;  %v1171_v0 = vsel %vm4844_vm13, %v1168_v35, %v1170_v40  ;;  %vm4853_vm13 = vnez %v4699_v24 }
 0x28b   : > { %v1173_v17 = vsel %vm4845_vm5, %v1170_v40, %v1172_v42  ;;  %vm4854_vm5 = vnez %v4709_v44 }
 0x28c   : > { %v1169_v27 = vsel %vm4843_vm7, %v1167_v41, %v1168_v35  ;;  %v1179_v62 = vsel %vm4846_vm12, %v1172_v42, %v1167_v41  ;;  %v1182_v50 = vsel %vm4849_vm14, %v1173_v17, %v1171_v0  ;;  %vm4851_vm12 = vnez %v4705_v31 }
 0x28d   : > { %v1180_v55 = vsel %vm4847_vm10, %v1169_v27, %v1179_v62  ;;  %v1181_v22 = vsel %vm4848_vm15, %v1171_v0, %v1169_v27  ;;  %v1183_v56 = vsel %vm4850_vm3, %v1179_v62, %v1173_v17  ;;  %v1186_v5 = vmin.f32 %v1161_v30, %v1182_v50 }
 0x28e   : > { %v1184_v33 = vmin.f32 %v1159_v63, %v1180_v55  ;;  %v1185_v23 = vmin.f32 %v1160_v20, %v1181_v22  ;;  %v1187_v58 = vmin.f32 %v1162_v61, %v1183_v56  ;;  %v1188_v32 = vmax.f32 %v1159_v63, %v1180_v55 }
 0x28f   : > { %v1189_v6 = vmax.f32 %v1160_v20, %v1181_v22  ;;  %v1190_v19 = vmax.f32 %v1161_v30, %v1182_v50  ;;  %v1191_v48 = vmax.f32 %v1162_v61, %v1183_v56  ;;  %vm4852_vm7 = vnez %v4707_v37 }
 0x290   : > { %v1192_v10 = vsel %vm4851_vm12, %v1184_v33, %v1188_v32  ;;  %vm4855_vm3 = vcmask 1045504  }
 0x291   : > { %v1193_v41 = vsel %vm4852_vm7, %v1185_v23, %v1189_v6  ;;  %v1194_v35 = vsel %vm4853_vm13, %v1186_v5, %v1190_v19  ;;  %v1195_v40 = vsel %vm4854_vm5, %v1187_v58, %v1191_v48  ;;  %v1200_v42 = vrot.slane %v1192_v10, 2  ;;  %vm4856_vm12 = vmmov %vm4855_vm3 }
 0x292   : > { %v1201_v27 = vrot.slane %v1193_v41, 2  ;;  %v1203_v0 = vrot.slane %v1194_v35, 2  ;;  %v1205_v17 = vrot.slane %v1195_v40, 2  ;;  %v1213_v63 = vrot.slane %v1195_v40, 6  ;;  %vm4857_vm14 = vmmov %vm4855_vm3 }
 0x293   : > { %v1215_v20 = vrot.slane %v1192_v10, 6  ;;  %v1216_v30 = vrot.slane %v1193_v41, 6  ;;  %v1218_v61 = vrot.slane %v1194_v35, 6  ;;  %vm4858_vm7 = vmmov %vm4855_vm3  ;;  %vm4859_vm13 = vcmask 1041408  }
 0x294   : > { %v1204_v62 = vsel %vm4855_vm3, %v1201_v27, %v1203_v0  ;;  %v1206_v55 = vsel %vm4856_vm12, %v1203_v0, %v1205_v17  ;;  %v1212_v22 = vsel %vm4857_vm14, %v1205_v17, %v1200_v42  ;;  %v1202_v50 = vsel %vm4858_vm7, %v1200_v42, %v1201_v27  ;;  %vm4860_vm15 = vmmov %vm4859_vm13 }
 0x295   : > { %v1219_v56 = vsel %vm4859_vm13, %v1216_v30, %v1218_v61  ;;  %v1220_v33 = vsel %vm4860_vm15, %v1218_v61, %v1213_v63  ;;  %vm4861_vm5 = vmmov %vm4859_vm13  ;;  %vm4863_vm3 = vnez %v4726_v28  ;;  %vm4865_vm15 = vnez %v4713_v16 }
 0x296   : > { %v1217_v23 = vsel %vm4861_vm5, %v1215_v20, %v1216_v30  ;;  %vm4862_vm10 = vmmov %vm4861_vm5  ;;  %v1228_v58 = vsel %vm4777_vm4, %v1206_v55, %v1219_v56  ;;  %v1229_v32 = vsel %vm4778_vm8, %v1212_v22, %v1220_v33  ;;  %vm4866_vm14 = vnez %v4720_v21 }
 0x297   : > { %v1225_v5 = vsel %vm4862_vm10, %v1213_v63, %v1215_v20  ;;  %v1227_v19 = vsel %vm4776_vm0, %v1204_v62, %v1217_v23  ;;  %v1232_v48 = vmin.f32 %v1194_v35, %v1228_v58  ;;  %v1233_v42 = vmin.f32 %v1195_v40, %v1229_v32 }
 0x298   : > { %v1226_v6 = vsel %vm4710_vm2, %v1202_v50, %v1225_v5  ;;  %v1236_v27 = vmax.f32 %v1194_v35, %v1228_v58  ;;  %v1237_v0 = vmax.f32 %v1195_v40, %v1229_v32  ;;  %v1231_v30 = vmin.f32 %v1193_v41, %v1227_v19 }
 0x299   : > { %v1230_v17 = vmin.f32 %v1192_v10, %v1226_v6  ;;  %v1234_v61 = vmax.f32 %v1192_v10, %v1226_v6  ;;  %v1235_v63 = vmax.f32 %v1193_v41, %v1227_v19  ;;  %vm4864_vm10 = vnez %v4729_v36 }
 0x29a   : > { %v1240_v20 = vsel %vm4863_vm3, %v1232_v48, %v1236_v27  ;;  %v1241_v55 = vsel %vm4864_vm10, %v1233_v42, %v1237_v0  ;;  %vm4867_vm12 = vcmask 1046528   ;;  %vm4871_vm10 = vcmask 1040384  }
 0x29b   : > { %v1264_v22 = vrot.slane %v1240_v20, 7  ;;  %v1238_v50 = vsel %vm4865_vm15, %v1230_v17, %v1234_v61  ;;  %v1239_v62 = vsel %vm4866_vm14, %v1231_v30, %v1235_v63  ;;  %v1249_v56 = vrot.slane %v1240_v20, 1  ;;  %vm4868_vm7 = vmmov %vm4867_vm12 }
 0x29c   : > { %v1246_v35 = vrot.slane %v1238_v50, 1  ;;  %v1247_v40 = vrot.slane %v1239_v62, 1  ;;  %v1251_v33 = vrot.slane %v1241_v55, 1  ;;  %v1259_v23 = vrot.slane %v1241_v55, 7  ;;  %vm4869_vm13 = vmmov %vm4868_vm7 }
 0x29d   : > { %v1261_v10 = vrot.slane %v1238_v50, 7  ;;  %v1262_v41 = vrot.slane %v1239_v62, 7  ;;  %vm4870_vm5 = vmmov %vm4868_vm7 }
 0x29e   : > { %v1248_v5 = vsel %vm4867_vm12, %v1246_v35, %v1247_v40  ;;  %v1250_v58 = vsel %vm4868_vm7, %v1247_v40, %v1249_v56  ;;  %v1252_v32 = vsel %vm4869_vm13, %v1249_v56, %v1251_v33  ;;  %v1258_v6 = vsel %vm4870_vm5, %v1251_v33, %v1246_v35  ;;  %vm4872_vm3 = vmmov %vm4871_vm10 }
 0x29f   : > { %v1263_v19 = vsel %vm4871_vm10, %v1261_v10, %v1262_v41  ;;  %v1265_v48 = vsel %vm4872_vm3, %v1262_v41, %v1264_v22  ;;  %vm4873_vm14 = vmmov %vm4872_vm3  ;;  %vm4876_vm10 = vnez %v4740_v25  ;;  %vm4879_vm12 = vcmask 1043456  }
 0x2a0   : > { %v1266_v42 = vsel %vm4873_vm14, %v1264_v22, %v1259_v23  ;;  %vm4874_vm15 = vmmov %vm4872_vm3  ;;  %v1273_v17 = vsel %vm4738_vm6, %v1250_v58, %v1263_v19  ;;  %v1274_v30 = vsel %vm4674_vm9, %v1252_v32, %v1265_v48  ;;  %vm4875_vm3 = vnez %v4733_v18 }
 0x2a1   : > { %v1271_v27 = vsel %vm4874_vm15, %v1259_v23, %v1261_v10  ;;  %v1275_v61 = vsel %vm4838_vm11, %v1258_v6, %v1266_v42  ;;  %v1277_v56 = vmin.f32 %v1239_v62, %v1273_v17  ;;  %v1278_v35 = vmin.f32 %v1240_v20, %v1274_v30  ;;  %vm4880_vm7 = vmmov %vm4879_vm12 }
 0x2a2   : > { %v1272_v0 = vsel %vm4671_vm1, %v1248_v5, %v1271_v27  ;;  %v1279_v40 = vmin.f32 %v1241_v55, %v1275_v61  ;;  %v1281_v22 = vmax.f32 %v1239_v62, %v1273_v17  ;;  %v1282_v41 = vmax.f32 %v1240_v20, %v1274_v30  ;;  %vm4881_vm13 = vmmov %vm4880_vm7 }
 0x2a3   : > { %v1276_v63 = vmin.f32 %v1238_v50, %v1272_v0  ;;  %v1280_v33 = vmax.f32 %v1238_v50, %v1272_v0  ;;  %v1283_v23 = vmax.f32 %v1241_v55, %v1275_v61  ;;  %vm4877_vm15 = vnez %v4746_v34  ;;  %vm4882_vm5 = vmmov %vm4880_vm7 }
 0x2a4   : > { %v1285_v5 = vsel %vm4876_vm10, %v1277_v56, %v1281_v22  ;;  %v1286_v58 = vsel %vm4877_vm15, %v1278_v35, %v1282_v41  ;;  %vm4878_vm14 = vnez %v4749_v46  ;;  %vm4883_vm10 = vnez %v4627_v12 }
 0x2a5   : > { %v1284_v10 = vsel %vm4875_vm3, %v1276_v63, %v1280_v33  ;;  %v1287_v32 = vsel %vm4878_vm14, %v1279_v40, %v1283_v23  ;;  %vm4884_vm14 = vnez %v4629_v13  ;;  %vm4885_vm15 = vnez %v4631_v14 }
 0x2a6   : > { %v1292_v6 = vmin.f32 %v1284_v10, %v1285_v5  ;;  %v1294_v19 = vmin.f32 %v1286_v58, %v1287_v32  ;;  %v1297_v48 = vmax.f32 %v1285_v5, %v1284_v10  ;;  %v1299_v42 = vmax.f32 %v1287_v32, %v1286_v58 }
 0x2a7   : > { %vm4886_vm3 = vnez %v4633_v15 }
 0x2a8   : > { %v1308_v50 = vrot.slane %v1292_v6, 4  ;;  %v1309_v62 = vrot.slane %v1297_v48, 4  ;;  %v1311_v20 = vrot.slane %v1294_v19, 4  ;;  %v1313_v55 = vrot.slane %v1299_v42, 4 }
 0x2aa   : > { %v1310_v27 = vsel %vm4879_vm12, %v1308_v50, %v1309_v62  ;;  %v1312_v0 = vsel %vm4880_vm7, %v1309_v62, %v1311_v20  ;;  %v1314_v17 = vsel %vm4881_vm13, %v1311_v20, %v1313_v55  ;;  %v1320_v30 = vsel %vm4882_vm5, %v1313_v55, %v1308_v50 }
 0x2ab   : > { %v1321_v61 = vsel %vm4883_vm10, %v1310_v27, %v1320_v30  ;;  %v1322_v63 = vsel %vm4884_vm14, %v1312_v0, %v1310_v27  ;;  %v1323_v56 = vsel %vm4885_vm15, %v1314_v17, %v1312_v0  ;;  %v1324_v35 = vsel %vm4886_vm3, %v1320_v30, %v1314_v17 }
 0x2ac   : > { %v1325_v40 = vmin.f32 %v1292_v6, %v1321_v61  ;;  %v1326_v33 = vmin.f32 %v1297_v48, %v1322_v63  ;;  %v1327_v22 = vmin.f32 %v1294_v19, %v1323_v56  ;;  %v1328_v41 = vmin.f32 %v1299_v42, %v1324_v35 }
 0x2ad   : > { %v1329_v23 = vmax.f32 %v1292_v6, %v1321_v61  ;;  %v1330_v10 = vmax.f32 %v1297_v48, %v1322_v63  ;;  %v1331_v5 = vmax.f32 %v1294_v19, %v1323_v56  ;;  %v1332_v58 = vmax.f32 %v1299_v42, %v1324_v35 }
 0x2ae   : > { %vm4887_vm12 = vnez %v4705_v31  ;;  %vm4888_vm7 = vnez %v4756_v38  ;;  %vm4889_vm13 = vnez %v4699_v24  ;;  %vm4890_vm5 = vnez %v4763_v49 }
 0x2af   : > { %v1333_v32 = vsel %vm4887_vm12, %v1325_v40, %v1329_v23  ;;  %v1334_v50 = vsel %vm4888_vm7, %v1326_v33, %v1330_v10  ;;  %v1335_v62 = vsel %vm4889_vm13, %v1327_v22, %v1331_v5  ;;  %v1336_v20 = vsel %vm4890_vm5, %v1328_v41, %v1332_v58 }
 0x2b0   : > { %v1341_v55 = vrot.slane %v1333_v32, 2  ;;  %v1342_v27 = vrot.slane %v1334_v50, 2  ;;  %v1344_v0 = vrot.slane %v1335_v62, 2  ;;  %v1346_v17 = vrot.slane %v1336_v20, 2 }
 0x2b1   : > { %v1354_v6 = vrot.slane %v1336_v20, 6  ;;  %v1356_v48 = vrot.slane %v1333_v32, 6  ;;  %v1357_v19 = vrot.slane %v1334_v50, 6  ;;  %v1359_v42 = vrot.slane %v1335_v62, 6 }
 0x2b2   : > { %vm4891_vm3 = vcmask 1045504   ;;  %vm4895_vm13 = vcmask 1041408  }
 0x2b3   : > { %v1343_v30 = vsel %vm4891_vm3, %v1341_v55, %v1342_v27  ;;  %vm4892_vm12 = vmmov %vm4891_vm3  ;;  %v1358_v35 = vsel %vm4895_vm13, %v1356_v48, %v1357_v19 }
 0x2b4   : > { %v1345_v61 = vsel %vm4892_vm12, %v1342_v27, %v1344_v0  ;;  %vm4893_vm15 = vmmov %vm4891_vm3  ;;  %vm4903_vm12 = vcmask 1046528  }
 0x2b5   : > { %v1347_v63 = vsel %vm4893_vm15, %v1344_v0, %v1346_v17  ;;  %vm4894_vm7 = vmmov %vm4891_vm3  ;;  %v1368_v23 = vsel %vm4776_vm0, %v1345_v61, %v1358_v35  ;;  %vm4899_vm3 = vnez %v4713_v16  ;;  %vm4901_vm15 = vnez %v4726_v28 }
 0x2b6   : > { %v1353_v56 = vsel %vm4894_vm7, %v1346_v17, %v1341_v55  ;;  %vm4896_vm14 = vmmov %vm4895_vm13  ;;  %v1372_v55 = vmin.f32 %v1334_v50, %v1368_v23 }
 0x2b7   : > { %v1360_v40 = vsel %vm4896_vm14, %v1357_v19, %v1359_v42  ;;  %vm4897_vm5 = vmmov %vm4895_vm13  ;;  %v1376_v19 = vmax.f32 %v1334_v50, %v1368_v23  ;;  %vm4902_vm14 = vnez %v4781_v8  ;;  %vm4905_vm13 = vcmask 1040384  }
 0x2b8   : > { %v1361_v33 = vsel %vm4897_vm5, %v1359_v42, %v1354_v6  ;;  %vm4898_vm10 = vmmov %vm4897_vm5  ;;  %v1369_v10 = vsel %vm4777_vm4, %v1347_v63, %v1360_v40 }
 0x2b9   : > { %v1366_v22 = vsel %vm4898_vm10, %v1354_v6, %v1356_v48  ;;  %v1370_v5 = vsel %vm4778_vm8, %v1353_v56, %v1361_v33  ;;  %v1373_v27 = vmin.f32 %v1335_v62, %v1369_v10  ;;  %v1377_v42 = vmax.f32 %v1335_v62, %v1369_v10  ;;  %vm4904_vm7 = vmmov %vm4903_vm12 }
 0x2ba   : > { %v1367_v41 = vsel %vm4710_vm2, %v1343_v30, %v1366_v22  ;;  %v1374_v0 = vmin.f32 %v1336_v20, %v1370_v5  ;;  %v1378_v6 = vmax.f32 %v1336_v20, %v1370_v5  ;;  %vm4900_vm10 = vnez %v4775_v54  ;;  %vm4906_vm5 = vmmov %vm4905_vm13 }
 0x2bb   : > { %v1371_v58 = vmin.f32 %v1333_v32, %v1367_v41  ;;  %v1375_v17 = vmax.f32 %v1333_v32, %v1367_v41  ;;  %v1380_v30 = vsel %vm4900_vm10, %v1372_v55, %v1376_v19  ;;  %v1381_v61 = vsel %vm4901_vm15, %v1373_v27, %v1377_v42  ;;  %vm4907_vm10 = vmmov %vm4904_vm7 }
 0x2bc   : > { %v1382_v63 = vsel %vm4902_vm14, %v1374_v0, %v1378_v6  ;;  %v1388_v35 = vrot.slane %v1380_v30, 1  ;;  %v1390_v40 = vrot.slane %v1381_v61, 1  ;;  %v1403_v50 = vrot.slane %v1380_v30, 7  ;;  %vm4909_vm14 = vmmov %vm4906_vm5 }
 0x2bd   : > { %v1379_v48 = vsel %vm4899_vm3, %v1371_v58, %v1375_v17  ;;  %v1400_v33 = vrot.slane %v1382_v63, 7  ;;  %v1392_v62 = vrot.slane %v1382_v63, 1  ;;  %v1405_v20 = vrot.slane %v1381_v61, 7  ;;  %vm4908_vm3 = vmmov %vm4904_vm7 }
 0x2be   : > { %v1387_v56 = vrot.slane %v1379_v48, 1  ;;  %v1402_v32 = vrot.slane %v1379_v48, 7  ;;  %v1391_v41 = vsel %vm4904_vm7, %v1388_v35, %v1390_v40  ;;  %vm4910_vm15 = vmmov %vm4906_vm5 }
 0x2bf   : > { %v1393_v5 = vsel %vm4907_vm10, %v1390_v40, %v1392_v62  ;;  %v1406_v0 = vsel %vm4909_vm14, %v1403_v50, %v1405_v20  ;;  %v1407_v17 = vsel %vm4910_vm15, %v1405_v20, %v1400_v33  ;;  %vm4914_vm15 = vnez %v4746_v34 }
 0x2c0   : > { %v1389_v22 = vsel %vm4903_vm12, %v1387_v56, %v1388_v35  ;;  %v1404_v23 = vsel %vm4905_vm13, %v1402_v32, %v1403_v50  ;;  %v1412_v10 = vsel %vm4906_vm5, %v1400_v33, %v1402_v32  ;;  %v1399_v58 = vsel %vm4908_vm3, %v1392_v62, %v1387_v56  ;;  %v4912_v62 = vld [vmem:[#allocation10_spill] sm:$0xff] }
 0x2c1   : > { %v1413_v55 = vsel %vm4671_vm1, %v1389_v22, %v1412_v10  ;;  %v1414_v27 = vsel %vm4738_vm6, %v1391_v41, %v1404_v23  ;;  %v1415_v32 = vsel %vm4674_vm9, %v1393_v5, %v1406_v0  ;;  %v1416_v56 = vsel %vm4838_vm11, %v1399_v58, %v1407_v17  ;;  %v2677_v58 = vld [vmem:[%s4489_s1 + $0x48] sm:$0xff]  ;;  %v1442_v0 = vpop.permute.xlu0 %1441 }
 0x2c2   : > { %v1417_v19 = vmin.f32 %v1379_v48, %v1413_v55  ;;  %v1418_v42 = vmin.f32 %v1380_v30, %v1414_v27  ;;  %v1421_v6 = vmax.f32 %v1379_v48, %v1413_v55  ;;  %v1422_v35 = vmax.f32 %v1380_v30, %v1414_v27  ;;  %v4915_v30 = vld [vmem:[#allocation11_spill] sm:$0xff]  ;;  %v1447_v27 = vpop.permute.xlu1 %1446 }
 0x2c3   : > { %vm4911_vm3 = vnez %v4733_v18  ;;  %vm4913_vm10 = vnez %v4912_v62  ;;  %v1419_v41 = vmin.f32 %v1381_v61, %v1415_v32  ;;  %v1420_v50 = vmin.f32 %v1382_v63, %v1416_v56  ;;  %v2688_v55 = vld [vmem:[%s4489_s1 + $0x60] sm:$0xff] }
 0x2c4   : > { %v1425_v40 = vsel %vm4911_vm3, %v1417_v19, %v1421_v6  ;;  %v1426_v22 = vsel %vm4913_vm10, %v1418_v42, %v1422_v35  ;;  %v1423_v33 = vmax.f32 %v1381_v61, %v1415_v32  ;;  %v1424_v20 = vmax.f32 %v1382_v63, %v1416_v56  ;;  %v2678_v61 = vld [vmem:[%s4489_s1 + $0x50] sm:$0xff]  ;;  %v2679_v63 = vld [vmem:[%s4489_s1 + $0x58] sm:$0xff] }
 0x2c5   : > { %v2816_v23 = vpack.c.bf16 %v1426_v22, %v1425_v40  ;;  %vm4916_vm14 = vnez %v4915_v30  ;;  %vm4917_vm12 = vcmask 261120  }
 0x2c6   : > { %v1427_v48 = vsel %vm4914_vm15, %v1419_v41, %v1423_v33  ;;  %v1428_v10 = vsel %vm4916_vm14, %v1420_v50, %v1424_v20  ;;  %vm4918_vm7 = vmmov %vm4917_vm12  ;;  %v1457_v56 = vpop.permute.xlu1 %1456  ;;  %v1452_v50 = vpop.permute.xlu0 %1451 }
 0x2c7   : > { %2817 = vmatprep.subr.bf16.mxu0 %v2816_v23  ;;  %v2820_v5 = vpack.c.bf16 %v1428_v10, %v1427_v48  ;;  %vm4919_vm13 = vmmov %vm4918_vm7 }
 0x2c8   : > { %2819 = vmatpush3.bf16.msra.mxu0 %v2816_v23  ;;  %vm4920_vm5 = vmmov %vm4918_vm7 }
 0x2c9   : > { %2821 = vmatprep.subr.bf16.mxu0 %v2820_v5  ;;  %2787 = vmatprep.mubr.msk.f32.mxu1 %vm4920_vm5, %v2688_v55 }
 0x2cc   : > { %2823 = vmatpush3.bf16.msra.mxu0 %v2820_v5 }
 0x2cf   : > { %2774 = vmatmul.mubr.msk.f32.vlgmr.msra.gmra.mrb[4].mxu0 %vm4917_vm12, %v2677_v58  ;;  %vm4921_vm12 = vcmask 1046528  }
 0x2d0   : > { %2776 = vmatprep.mubr.msk.f32.mxu0 %vm4918_vm7, %v2678_v61  ;;  %vm4922_vm7 = vcmask 1040384   ;;  %vm4925_vm14 = vmmov %vm4921_vm12 }
 0x2d1   : > { %vm4924_vm5 = vmmov %vm4922_vm7 }
 0x2d2   : > { %vm4926_vm10 = vmmov %vm4921_vm12 }
 0x2d3   : > { %2777 = vmatmul.mubr.msk.f32.gmra.mrb[6].mxu0 %vm4919_vm13, %v2679_v63  ;;  %vm4923_vm13 = vmmov %vm4921_vm12 }
 0x2d4   : > { %vm4927_vm15 = vmmov %vm4924_vm5 }
 0x3a2   : > { %v2775_v17 = vpop.f32.mrb[4].mxu0 }
 0x3a3   : > { %v1543_v19 = vadd.f32 %v2775_v17, %v1447_v27  ;;  %v1537_v42 = vpop.f32.mrb[5].mxu0 }
 0x3a4   : > { %v1538_v6 = vadd.f32 %v1537_v42, %v1442_v0 }
 0x3a5   : > { %v1561_v35 = vrot.slane %v1543_v19, 1  ;;  %v1576_v32 = vrot.slane %v1543_v19, 7 }
 0x3a6   : > { %v1560_v40 = vrot.slane %v1538_v6, 1  ;;  %v1575_v22 = vrot.slane %v1538_v6, 7  ;;  %v2778_v41 = vpop.f32.mrb[6].mxu0 }
 0x3a7   : > { %v1553_v23 = vadd.f32 %v2778_v41, %v1457_v56  ;;  %v1547_v33 = vpop.f32.mrb[7].mxu0 }
 0x3a8   : > { %v1562_v20 = vsel %vm4921_vm12, %v1560_v40, %v1561_v35  ;;  %v1577_v48 = vsel %vm4922_vm7, %v1575_v22, %v1576_v32  ;;  %v1548_v10 = vadd.f32 %v1547_v33, %v1452_v50  ;;  %vm4928_vm12 = vmmov %vm4924_vm5 }
 0x3a9   : > { %v1565_v5 = vrot.slane %v1553_v23, 1  ;;  %v1573_v58 = vrot.slane %v1553_v23, 7 }
 0x3aa   : > { %v1563_v61 = vrot.slane %v1548_v10, 1  ;;  %v1578_v63 = vrot.slane %v1548_v10, 7 }
 0x3ab   : > { %v1572_v55 = vsel %vm4923_vm13, %v1565_v5, %v1560_v40  ;;  %v1585_v27 = vsel %vm4924_vm5, %v1573_v58, %v1575_v22  ;;  %vm4934_vm13 = vcmask 1045504   ;;  %vm4935_vm5 = vcmask 1041408  }
 0x3ac   : > { %v1586_v0 = vsel %vm4671_vm1, %v1562_v20, %v1585_v27  ;;  %v1564_v17 = vsel %vm4925_vm14, %v1561_v35, %v1563_v61  ;;  %v1566_v42 = vsel %vm4926_vm10, %v1563_v61, %v1565_v5  ;;  %v1579_v56 = vsel %vm4927_vm15, %v1576_v32, %v1578_v63  ;;  %vm4940_vm3 = vmmov %vm4935_vm5 }
 0x3ad   : > { %v1590_v41 = vmin.f32 %v1538_v6, %v1586_v0  ;;  %v1594_v30 = vmax.f32 %v1538_v6, %v1586_v0  ;;  %v1580_v50 = vsel %vm4928_vm12, %v1578_v63, %v1573_v58  ;;  %v1587_v33 = vsel %vm4738_vm6, %v1564_v17, %v1577_v48  ;;  %vm4936_vm12 = vmmov %vm4934_vm13 }
 0x3ae   : > { %v1588_v40 = vsel %vm4674_vm9, %v1566_v42, %v1579_v56  ;;  %v1589_v22 = vsel %vm4838_vm11, %v1572_v55, %v1580_v50  ;;  %v1591_v20 = vmin.f32 %v1543_v19, %v1587_v33  ;;  %v1595_v27 = vmax.f32 %v1543_v19, %v1587_v33  ;;  %v4932_v55 = vld [vmem:[#allocation9_spill] sm:$0xff]  ;;  %vm4941_vm11 = vmmov %vm4940_vm3 }
 0x3af   : > { %vm4929_vm14 = vnez %v4625_v9  ;;  %v1592_v5 = vmin.f32 %v1548_v10, %v1588_v40  ;;  %v1593_v32 = vmin.f32 %v1553_v23, %v1589_v22  ;;  %v1596_v61 = vmax.f32 %v1548_v10, %v1588_v40 }
 0x3b0   : > { %v1598_v35 = vsel %vm4929_vm14, %v1590_v41, %v1594_v30  ;;  %v1597_v58 = vmax.f32 %v1553_v23, %v1589_v22  ;;  %vm4930_vm10 = vnez %v4638_v26  ;;  %vm4931_vm15 = vnez %v4641_v29  ;;  %vm4937_vm14 = vmmov %vm4935_vm5 }
 0x3b1   : > { %v1606_v6 = vrot.slane %v1598_v35, 2  ;;  %v1621_v0 = vrot.slane %v1598_v35, 6  ;;  %v1599_v48 = vsel %vm4930_vm10, %v1591_v20, %v1595_v27  ;;  %v1600_v63 = vsel %vm4931_vm15, %v1592_v5, %v1596_v61  ;;  %vm4938_vm10 = vmmov %vm4936_vm12 }
 0x3b2   : > { %v1607_v17 = vrot.slane %v1599_v48, 2  ;;  %v1622_v42 = vrot.slane %v1599_v48, 6  ;;  %vm4933_vm7 = vnez %v4932_v55  ;;  %v1609_v56 = vrot.slane %v1600_v63, 2  ;;  %vm4939_vm15 = vmmov %vm4938_vm10 }
 0x3b3   : > { %v1601_v19 = vsel %vm4933_vm7, %v1593_v32, %v1597_v58  ;;  %v1624_v50 = vrot.slane %v1600_v63, 6  ;;  %vm4966_vm7 = vnez %v4633_v15 }
 0x3b4   : > { %v1608_v30 = vsel %vm4934_vm13, %v1606_v6, %v1607_v17  ;;  %v1611_v41 = vrot.slane %v1601_v19, 2  ;;  %v1619_v10 = vrot.slane %v1601_v19, 6  ;;  %v1623_v33 = vsel %vm4935_vm5, %v1621_v0, %v1622_v42 }
 0x3b5   : > { %v1610_v23 = vsel %vm4936_vm12, %v1607_v17, %v1609_v56  ;;  %v1625_v40 = vsel %vm4937_vm14, %v1622_v42, %v1624_v50  ;;  %vm4944_vm14 = vnez %v4666_v4 }
 0x3b6   : > { %v1612_v22 = vsel %vm4938_vm10, %v1609_v56, %v1611_v41  ;;  %v1618_v20 = vsel %vm4939_vm15, %v1611_v41, %v1606_v6  ;;  %v1626_v27 = vsel %vm4940_vm3, %v1624_v50, %v1619_v10  ;;  %v1631_v5 = vsel %vm4941_vm11, %v1619_v10, %v1621_v0 }
 0x3b7   : > { %v1632_v32 = vsel %vm4710_vm2, %v1608_v30, %v1631_v5  ;;  %v1633_v61 = vsel %vm4776_vm0, %v1610_v23, %v1623_v33  ;;  %v1634_v58 = vsel %vm4777_vm4, %v1612_v22, %v1625_v40  ;;  %v1635_v17 = vsel %vm4778_vm8, %v1618_v20, %v1626_v27 }
 0x3b8   : > { %v1636_v42 = vmin.f32 %v1598_v35, %v1632_v32  ;;  %v1637_v56 = vmin.f32 %v1599_v48, %v1633_v61  ;;  %v1638_v55 = vmin.f32 %v1600_v63, %v1634_v58  ;;  %v1639_v6 = vmin.f32 %v1601_v19, %v1635_v17 }
 0x3b9   : > { %v1640_v41 = vmax.f32 %v1598_v35, %v1632_v32  ;;  %v1641_v50 = vmax.f32 %v1599_v48, %v1633_v61  ;;  %v1642_v29 = vmax.f32 %v1600_v63, %v1634_v58  ;;  %v1643_v0 = vmax.f32 %v1601_v19, %v1635_v17 }
 0x3ba   : > { %vm4942_vm11 = vnez %v4654_v57  ;;  %vm4943_vm3 = vnez %v4659_v60  ;;  %vm4945_vm10 = vnez %v4669_v11  ;;  %vm4946_vm15 = vcmask 1046528  }
 0x3bb   : > { %v1644_v30 = vsel %vm4942_vm11, %v1636_v42, %v1640_v41  ;;  %v1645_v10 = vsel %vm4943_vm3, %v1637_v56, %v1641_v50  ;;  %v1646_v33 = vsel %vm4944_vm14, %v1638_v55, %v1642_v29  ;;  %v1647_v23 = vsel %vm4945_vm10, %v1639_v6, %v1643_v0  ;;  %vm4947_vm13 = vmmov %vm4946_vm15 }
 0x3bc   : > { %v1652_v40 = vrot.slane %v1644_v30, 1  ;;  %v1653_v22 = vrot.slane %v1645_v10, 1  ;;  %v1655_v20 = vrot.slane %v1646_v33, 1  ;;  %v1657_v27 = vrot.slane %v1647_v23, 1  ;;  %vm4948_vm5 = vmmov %vm4947_vm13 }
 0x3bd   : > { %v1665_v35 = vrot.slane %v1647_v23, 7  ;;  %v1667_v48 = vrot.slane %v1644_v30, 7  ;;  %v1668_v63 = vrot.slane %v1645_v10, 7  ;;  %v1670_v19 = vrot.slane %v1646_v33, 7  ;;  %vm4949_vm12 = vmmov %vm4948_vm5 }
 0x3be   : > { %v1654_v5 = vsel %vm4946_vm15, %v1652_v40, %v1653_v22  ;;  %v1656_v32 = vsel %vm4947_vm13, %v1653_v22, %v1655_v20  ;;  %v1658_v61 = vsel %vm4948_vm5, %v1655_v20, %v1657_v27  ;;  %v1664_v58 = vsel %vm4949_vm12, %v1657_v27, %v1652_v40 }
 0x3bf   : > { %vm4950_vm14 = vcmask 1040384   ;;  %vm4954_vm15 = vnez %v4617_v1  ;;  %vm4959_vm13 = vcmask 1043456  }
 0x3c0   : > { %v1669_v29 = vsel %vm4950_vm14, %v1667_v48, %v1668_v63  ;;  %vm4951_vm3 = vmmov %vm4950_vm14  ;;  %vm4957_vm14 = vnez %v4692_v53 }
 0x3c1   : > { %v1671_v55 = vsel %vm4951_vm3, %v1668_v63, %v1670_v19  ;;  %vm4952_vm10 = vmmov %vm4951_vm3  ;;  %v1679_v6 = vsel %vm4738_vm6, %v1656_v32, %v1669_v29 }
 0x3c2   : > { %v1672_v17 = vsel %vm4952_vm10, %v1670_v19, %v1665_v35  ;;  %vm4953_vm11 = vmmov %vm4951_vm3  ;;  %v1680_v41 = vsel %vm4674_vm9, %v1658_v61, %v1671_v55  ;;  %v1683_v40 = vmin.f32 %v1645_v10, %v1679_v6  ;;  %v1687_v63 = vmax.f32 %v1645_v10, %v1679_v6 }
 0x3c3   : > { %v1677_v42 = vsel %vm4953_vm11, %v1665_v35, %v1667_v48  ;;  %v1681_v50 = vsel %vm4954_vm15, %v1664_v58, %v1672_v17  ;;  %v1684_v22 = vmin.f32 %v1646_v33, %v1680_v41  ;;  %v1688_v19 = vmax.f32 %v1646_v33, %v1680_v41  ;;  %vm4960_vm5 = vmmov %vm4959_vm13 }
 0x3c4   : > { %v1678_v56 = vsel %vm4671_vm1, %v1654_v5, %v1677_v42  ;;  %v1685_v20 = vmin.f32 %v1647_v23, %v1681_v50  ;;  %v1689_v35 = vmax.f32 %v1647_v23, %v1681_v50  ;;  %vm4955_vm11 = vnez %v4678_v39  ;;  %vm4961_vm12 = vmmov %vm4960_vm5 }
 0x3c5   : > { %v1682_v0 = vmin.f32 %v1644_v30, %v1678_v56  ;;  %v1686_v27 = vmax.f32 %v1644_v30, %v1678_v56  ;;  %vm4956_vm3 = vnez %v4685_v45  ;;  %v1692_v32 = vsel %vm4957_vm14, %v1684_v22, %v1688_v19 }
 0x3c6   : > { %v1691_v5 = vsel %vm4956_vm3, %v1683_v40, %v1687_v63  ;;  %vm4958_vm10 = vnez %v4696_v59  ;;  %v1701_v55 = vrot.slane %v1692_v32, 4  ;;  %vm4963_vm3 = vnez %v4627_v12 }
 0x3c7   : > { %v1690_v48 = vsel %vm4955_vm11, %v1682_v0, %v1686_v27  ;;  %v1693_v61 = vsel %vm4958_vm10, %v1685_v20, %v1689_v35  ;;  %v1699_v29 = vrot.slane %v1691_v5, 4  ;;  %vm4962_vm11 = vmmov %vm4960_vm5  ;;  %vm4964_vm14 = vnez %v4629_v13 }
 0x3c8   : > { %v1698_v58 = vrot.slane %v1690_v48, 4  ;;  %v1703_v17 = vrot.slane %v1693_v61, 4  ;;  %vm4965_vm10 = vnez %v4631_v14 }
 0x3c9   : > { %v1702_v10 = vsel %vm4960_vm5, %v1699_v29, %v1701_v55  ;;  %vm4969_vm5 = vnez %v4699_v24 }
 0x3ca   : > { %v1700_v30 = vsel %vm4959_vm13, %v1698_v58, %v1699_v29  ;;  %v1704_v33 = vsel %vm4961_vm12, %v1701_v55, %v1703_v17  ;;  %v1710_v23 = vsel %vm4962_vm11, %v1703_v17, %v1698_v58  ;;  %vm4967_vm11 = vnez %v4705_v31 }
 0x3cb   : > { %v1711_v42 = vsel %vm4963_vm3, %v1700_v30, %v1710_v23  ;;  %v1712_v56 = vsel %vm4964_vm14, %v1702_v10, %v1700_v30  ;;  %v1713_v6 = vsel %vm4965_vm10, %v1704_v33, %v1702_v10  ;;  %v1714_v41 = vsel %vm4966_vm7, %v1710_v23, %v1704_v33 }
 0x3cc   : > { %v1715_v50 = vmin.f32 %v1690_v48, %v1711_v42  ;;  %v1716_v0 = vmin.f32 %v1691_v5, %v1712_v56  ;;  %v1717_v40 = vmin.f32 %v1692_v32, %v1713_v6  ;;  %v1718_v22 = vmin.f32 %v1693_v61, %v1714_v41 }
 0x3cd   : > { %v1719_v20 = vmax.f32 %v1690_v48, %v1711_v42  ;;  %v1720_v27 = vmax.f32 %v1691_v5, %v1712_v56  ;;  %v1721_v63 = vmax.f32 %v1692_v32, %v1713_v6  ;;  %v1722_v19 = vmax.f32 %v1693_v61, %v1714_v41 }
 0x3ce   : > { %vm4968_vm13 = vnez %v4707_v37  ;;  %vm4970_vm12 = vnez %v4709_v44  ;;  %vm4971_vm7 = vcmask 1045504  }
 0x3cf   : > { %v1723_v35 = vsel %vm4967_vm11, %v1715_v50, %v1719_v20  ;;  %v1724_v58 = vsel %vm4968_vm13, %v1716_v0, %v1720_v27  ;;  %v1725_v29 = vsel %vm4969_vm5, %v1717_v40, %v1721_v63  ;;  %v1726_v55 = vsel %vm4970_vm12, %v1718_v22, %v1722_v19  ;;  %vm4972_vm11 = vmmov %vm4971_vm7 }
 0x3d0   : > { %v1731_v17 = vrot.slane %v1723_v35, 2  ;;  %v1732_v30 = vrot.slane %v1724_v58, 2  ;;  %v1734_v10 = vrot.slane %v1725_v29, 2  ;;  %v1736_v33 = vrot.slane %v1726_v55, 2  ;;  %vm4973_vm10 = vmmov %vm4971_vm7 }
 0x3d1   : > { %v1744_v48 = vrot.slane %v1726_v55, 6  ;;  %v1746_v5 = vrot.slane %v1723_v35, 6  ;;  %v1747_v32 = vrot.slane %v1724_v58, 6  ;;  %v1749_v61 = vrot.slane %v1725_v29, 6  ;;  %vm4974_vm13 = vmmov %vm4971_vm7 }
 0x3d2   : > { %v1735_v23 = vsel %vm4971_vm7, %v1732_v30, %v1734_v10  ;;  %v1737_v42 = vsel %vm4972_vm11, %v1734_v10, %v1736_v33  ;;  %v1743_v56 = vsel %vm4973_vm10, %v1736_v33, %v1731_v17  ;;  %v1733_v6 = vsel %vm4974_vm13, %v1731_v17, %v1732_v30 }
 0x3d3   : > { %vm4975_vm5 = vcmask 1041408   ;;  %vm4979_vm7 = vnez %v4726_v28  ;;  %vm4982_vm10 = vnez %v4720_v21  ;;  %vm4983_vm11 = vcmask 1046528  }
 0x3d4   : > { %v1750_v41 = vsel %vm4975_vm5, %v1747_v32, %v1749_v61  ;;  %vm4976_vm14 = vmmov %vm4975_vm5 }
 0x3d5   : > { %v1751_v50 = vsel %vm4976_vm14, %v1749_v61, %v1744_v48  ;;  %vm4977_vm12 = vmmov %vm4975_vm5  ;;  %v1759_v22 = vsel %vm4777_vm4, %v1737_v42, %v1750_v41  ;;  %vm4981_vm14 = vnez %v4713_v16 }
 0x3d6   : > { %v1748_v0 = vsel %vm4977_vm12, %v1746_v5, %v1747_v32  ;;  %vm4978_vm3 = vmmov %vm4975_vm5  ;;  %v1760_v20 = vsel %vm4778_vm8, %v1743_v56, %v1751_v50  ;;  %v1763_v19 = vmin.f32 %v1725_v29, %v1759_v22  ;;  %v1767_v30 = vmax.f32 %v1725_v29, %v1759_v22 }
 0x3d7   : > { %v1756_v40 = vsel %vm4978_vm3, %v1744_v48, %v1746_v5  ;;  %v1758_v63 = vsel %vm4776_vm0, %v1735_v23, %v1748_v0  ;;  %v1764_v17 = vmin.f32 %v1726_v55, %v1760_v20  ;;  %v1768_v10 = vmax.f32 %v1726_v55, %v1760_v20  ;;  %vm4984_vm13 = vmmov %vm4983_vm11 }
 0x3d8   : > { %v1757_v27 = vsel %vm4710_vm2, %v1733_v6, %v1756_v40  ;;  %v1762_v32 = vmin.f32 %v1724_v58, %v1758_v63  ;;  %v1766_v48 = vmax.f32 %v1724_v58, %v1758_v63  ;;  %v1771_v5 = vsel %vm4979_vm7, %v1763_v19, %v1767_v30  ;;  %vm4985_vm5 = vmmov %vm4983_vm11 }
 0x3d9   : > { %v1761_v33 = vmin.f32 %v1723_v35, %v1757_v27  ;;  %v1765_v61 = vmax.f32 %v1723_v35, %v1757_v27  ;;  %vm4980_vm3 = vnez %v4729_v36  ;;  %v1795_v56 = vrot.slane %v1771_v5, 7  ;;  %vm4986_vm12 = vmmov %vm4985_vm5 }
 0x3da   : > { %v1772_v42 = vsel %vm4980_vm3, %v1764_v17, %v1768_v10  ;;  %v1770_v23 = vsel %vm4982_vm10, %v1762_v32, %v1766_v48  ;;  %v1780_v41 = vrot.slane %v1771_v5, 1  ;;  %vm4987_vm3 = vcmask 1040384  }
 0x3db   : > { %v1769_v6 = vsel %vm4981_vm14, %v1761_v33, %v1765_v61  ;;  %v1778_v55 = vrot.slane %v1770_v23, 1  ;;  %v1782_v50 = vrot.slane %v1772_v42, 1  ;;  %v1790_v0 = vrot.slane %v1772_v42, 7  ;;  %vm4988_vm7 = vmmov %vm4987_vm3 }
 0x3dc   : > { %v1777_v29 = vrot.slane %v1769_v6, 1  ;;  %v1792_v35 = vrot.slane %v1769_v6, 7  ;;  %v1793_v58 = vrot.slane %v1770_v23, 7  ;;  %vm4989_vm10 = vmmov %vm4987_vm3 }
 0x3dd   : > { %v1781_v22 = vsel %vm4984_vm13, %v1778_v55, %v1780_v41  ;;  %v1783_v20 = vsel %vm4985_vm5, %v1780_v41, %v1782_v50  ;;  %v1797_v17 = vsel %vm4989_vm10, %v1795_v56, %v1790_v0  ;;  %vm4990_vm14 = vmmov %vm4987_vm3  ;;  %vm4994_vm10 = vnez %v4749_v46 }
 0x3de   : > { %v1779_v40 = vsel %vm4983_vm11, %v1777_v29, %v1778_v55  ;;  %v1789_v27 = vsel %vm4986_vm12, %v1782_v50, %v1777_v29  ;;  %v1794_v63 = vsel %vm4987_vm3, %v1792_v35, %v1793_v58  ;;  %v1796_v19 = vsel %vm4988_vm7, %v1793_v58, %v1795_v56 }
 0x3df   : > { %v1802_v30 = vsel %vm4990_vm14, %v1790_v0, %v1792_v35  ;;  %v1804_v33 = vsel %vm4738_vm6, %v1781_v22, %v1794_v63  ;;  %v1805_v32 = vsel %vm4674_vm9, %v1783_v20, %v1796_v19  ;;  %v1806_v61 = vsel %vm4954_vm15, %v1789_v27, %v1797_v17 }
 0x3e0   : > { %v1803_v10 = vsel %vm4671_vm1, %v1779_v40, %v1802_v30  ;;  %v1808_v41 = vmin.f32 %v1770_v23, %v1804_v33  ;;  %v1809_v29 = vmin.f32 %v1771_v5, %v1805_v32  ;;  %v1810_v55 = vmin.f32 %v1772_v42, %v1806_v61 }
 0x3e1   : > { %v1807_v48 = vmin.f32 %v1769_v6, %v1803_v10  ;;  %v1811_v50 = vmax.f32 %v1769_v6, %v1803_v10  ;;  %v1812_v56 = vmax.f32 %v1770_v23, %v1804_v33  ;;  %v1813_v58 = vmax.f32 %v1771_v5, %v1805_v32 }
 0x3e2   : > { %v1814_v0 = vmax.f32 %v1772_v42, %v1806_v61  ;;  %vm4991_vm7 = vnez %v4733_v18  ;;  %vm4992_vm3 = vnez %v4740_v25  ;;  %vm4993_vm14 = vnez %v4746_v34 }
 0x3e3   : > { %v1815_v35 = vsel %vm4991_vm7, %v1807_v48, %v1811_v50  ;;  %v1816_v40 = vsel %vm4992_vm3, %v1808_v41, %v1812_v56  ;;  %v1817_v22 = vsel %vm4993_vm14, %v1809_v29, %v1813_v58  ;;  %vm4995_vm11 = vcmask 1043456  }
 0x3e4   : > { %v1818_v20 = vsel %vm4994_vm10, %v1810_v55, %v1814_v0  ;;  %v1823_v27 = vmin.f32 %v1815_v35, %v1816_v40  ;;  %v1828_v19 = vmax.f32 %v1816_v40, %v1815_v35  ;;  %vm4996_vm13 = vmmov %vm4995_vm11  ;;  %vm4999_vm3 = vnez %v4627_v12 }
 0x3e5   : > { %v1825_v63 = vmin.f32 %v1817_v22, %v1818_v20  ;;  %v1830_v17 = vmax.f32 %v1818_v20, %v1817_v22  ;;  %vm4997_vm5 = vmmov %vm4995_vm11  ;;  %vm5000_vm10 = vnez %v4629_v13  ;;  %vm5001_vm14 = vnez %v4631_v14 }
 0x3e6   : > { %v1839_v6 = vrot.slane %v1823_v27, 4  ;;  %v1840_v23 = vrot.slane %v1828_v19, 4  ;;  %vm4998_vm12 = vmmov %vm4997_vm5  ;;  %vm5002_vm7 = vnez %v4633_v15 }
 0x3e7   : > { %v1842_v5 = vrot.slane %v1825_v63, 4  ;;  %v1844_v42 = vrot.slane %v1830_v17, 4 }
 0x3e8   : > { %v1841_v30 = vsel %vm4995_vm11, %v1839_v6, %v1840_v23  ;;  %vm5003_vm11 = vnez %v4705_v31 }
 0x3e9   : > { %v1843_v10 = vsel %vm4996_vm13, %v1840_v23, %v1842_v5  ;;  %v1845_v33 = vsel %vm4997_vm5, %v1842_v5, %v1844_v42  ;;  %v1851_v32 = vsel %vm4998_vm12, %v1844_v42, %v1839_v6  ;;  %vm5004_vm13 = vnez %v4756_v38 }
 0x3ea   : > { %v1852_v61 = vsel %vm4999_vm3, %v1841_v30, %v1851_v32  ;;  %v1853_v48 = vsel %vm5000_vm10, %v1843_v10, %v1841_v30  ;;  %v1854_v41 = vsel %vm5001_vm14, %v1845_v33, %v1843_v10  ;;  %v1855_v29 = vsel %vm5002_vm7, %v1851_v32, %v1845_v33 }
 0x3eb   : > { %v1856_v55 = vmin.f32 %v1823_v27, %v1852_v61  ;;  %v1857_v50 = vmin.f32 %v1828_v19, %v1853_v48  ;;  %v1858_v56 = vmin.f32 %v1825_v63, %v1854_v41  ;;  %v1859_v58 = vmin.f32 %v1830_v17, %v1855_v29 }
 0x3ec   : > { %v1860_v0 = vmax.f32 %v1823_v27, %v1852_v61  ;;  %v1861_v35 = vmax.f32 %v1828_v19, %v1853_v48  ;;  %v1862_v40 = vmax.f32 %v1825_v63, %v1854_v41  ;;  %v1863_v22 = vmax.f32 %v1830_v17, %v1855_v29 }
 0x3ed   : > { %vm5005_vm5 = vnez %v4699_v24  ;;  %vm5006_vm12 = vnez %v4763_v49  ;;  %vm5007_vm7 = vcmask 1045504  }
 0x3ee   : > { %v1864_v20 = vsel %vm5003_vm11, %v1856_v55, %v1860_v0  ;;  %v1865_v6 = vsel %vm5004_vm13, %v1857_v50, %v1861_v35  ;;  %v1866_v23 = vsel %vm5005_vm5, %v1858_v56, %v1862_v40  ;;  %v1867_v5 = vsel %vm5006_vm12, %v1859_v58, %v1863_v22  ;;  %vm5008_vm11 = vmmov %vm5007_vm7 }
 0x3ef   : > { %v1872_v42 = vrot.slane %v1864_v20, 2  ;;  %v1873_v30 = vrot.slane %v1865_v6, 2  ;;  %v1875_v10 = vrot.slane %v1866_v23, 2  ;;  %v1877_v33 = vrot.slane %v1867_v5, 2  ;;  %vm5009_vm14 = vmmov %vm5007_vm7 }
 0x3f0   : > { %v1885_v27 = vrot.slane %v1867_v5, 6  ;;  %v1887_v19 = vrot.slane %v1864_v20, 6  ;;  %v1888_v63 = vrot.slane %v1865_v6, 6  ;;  %v1890_v17 = vrot.slane %v1866_v23, 6  ;;  %vm5010_vm13 = vmmov %vm5007_vm7 }
 0x3f1   : > { %v1874_v32 = vsel %vm5007_vm7, %v1872_v42, %v1873_v30  ;;  %v1876_v61 = vsel %vm5008_vm11, %v1873_v30, %v1875_v10  ;;  %v1878_v48 = vsel %vm5009_vm14, %v1875_v10, %v1877_v33  ;;  %v1884_v41 = vsel %vm5010_vm13, %v1877_v33, %v1872_v42 }
 0x3f2   : > { %vm5011_vm5 = vcmask 1041408   ;;  %vm5015_vm7 = vnez %v4713_v16  ;;  %vm5017_vm14 = vnez %v4726_v28  ;;  %vm5019_vm11 = vcmask 1046528  }
 0x3f3   : > { %v1889_v29 = vsel %vm5011_vm5, %v1887_v19, %v1888_v63  ;;  %vm5012_vm10 = vmmov %vm5011_vm5 }
 0x3f4   : > { %v1891_v55 = vsel %vm5012_vm10, %v1888_v63, %v1890_v17  ;;  %vm5013_vm12 = vmmov %vm5011_vm5  ;;  %v1899_v0 = vsel %vm4776_vm0, %v1876_v61, %v1889_v29  ;;  %vm5018_vm10 = vnez %v4781_v8 }
 0x3f5   : > { %v1892_v50 = vsel %vm5013_vm12, %v1890_v17, %v1885_v27  ;;  %vm5014_vm3 = vmmov %vm5011_vm5  ;;  %v1900_v35 = vsel %vm4777_vm4, %v1878_v48, %v1891_v55  ;;  %v1903_v42 = vmin.f32 %v1865_v6, %v1899_v0  ;;  %v1907_v63 = vmax.f32 %v1865_v6, %v1899_v0 }
 0x3f6   : > { %v1897_v56 = vsel %vm5014_vm3, %v1885_v27, %v1887_v19  ;;  %v1901_v40 = vsel %vm4778_vm8, %v1884_v41, %v1892_v50  ;;  %v1904_v30 = vmin.f32 %v1866_v23, %v1900_v35  ;;  %v1908_v17 = vmax.f32 %v1866_v23, %v1900_v35  ;;  %vm5020_vm13 = vmmov %vm5019_vm11 }
 0x3f7   : > { %v1898_v58 = vsel %vm4710_vm2, %v1874_v32, %v1897_v56  ;;  %v1905_v10 = vmin.f32 %v1867_v5, %v1901_v40  ;;  %v1909_v27 = vmax.f32 %v1867_v5, %v1901_v40  ;;  %vm5016_vm3 = vnez %v4775_v54 }
 0x3f8   : > { %v1902_v22 = vmin.f32 %v1864_v20, %v1898_v58  ;;  %v1906_v33 = vmax.f32 %v1864_v20, %v1898_v58  ;;  %v1911_v32 = vsel %vm5016_vm3, %v1903_v42, %v1907_v63  ;;  %v1912_v61 = vsel %vm5017_vm14, %v1904_v30, %v1908_v17  ;;  %vm5023_vm3 = vmmov %vm5019_vm11 }
 0x3f9   : > { %v1913_v48 = vsel %vm5018_vm10, %v1905_v10, %v1909_v27  ;;  %v1919_v29 = vrot.slane %v1911_v32, 1  ;;  %v1921_v55 = vrot.slane %v1912_v61, 1  ;;  %v1934_v6 = vrot.slane %v1911_v32, 7 }
 0x3fa   : > { %v1910_v19 = vsel %vm5015_vm7, %v1902_v22, %v1906_v33  ;;  %v1931_v50 = vrot.slane %v1913_v48, 7  ;;  %v1923_v23 = vrot.slane %v1913_v48, 1  ;;  %v1936_v5 = vrot.slane %v1912_v61, 7  ;;  %vm5024_vm7 = vmmov %vm5023_vm3 }
 0x3fb   : > { %v1918_v41 = vrot.slane %v1910_v19, 1  ;;  %v1933_v20 = vrot.slane %v1910_v19, 7  ;;  %v1922_v58 = vsel %vm5020_vm13, %v1919_v29, %v1921_v55  ;;  %vm5021_vm5 = vcmask 1040384  }
 0x3fc   : > { %vm5022_vm12 = vmmov %vm5021_vm5  ;;  %v1924_v40 = vsel %vm5023_vm3, %v1921_v55, %v1923_v23  ;;  %vm5028_vm3 = vnez %v4912_v62 }
 0x3fd   : > { %v1920_v56 = vsel %vm5019_vm11, %v1918_v41, %v1919_v29  ;;  %v1935_v0 = vsel %vm5021_vm5, %v1933_v20, %v1934_v6  ;;  %v1943_v35 = vsel %vm5022_vm12, %v1931_v50, %v1933_v20  ;;  %v1930_v22 = vsel %vm5024_vm7, %v1923_v23, %v1918_v41  ;;  %vm5025_vm10 = vmmov %vm5021_vm5 }
 0x3fe   : > { %v1944_v42 = vsel %vm4671_vm1, %v1920_v56, %v1943_v35  ;;  %v1945_v30 = vsel %vm4738_vm6, %v1922_v58, %v1935_v0  ;;  %v1937_v10 = vsel %vm5025_vm10, %v1934_v6, %v1936_v5  ;;  %vm5026_vm14 = vmmov %vm5021_vm5  ;;  %vm5027_vm7 = vnez %v4733_v18 }
 0x3ff   : > { %v1938_v33 = vsel %vm5026_vm14, %v1936_v5, %v1931_v50  ;;  %v1948_v63 = vmin.f32 %v1910_v19, %v1944_v42  ;;  %v1949_v17 = vmin.f32 %v1911_v32, %v1945_v30  ;;  %v1952_v27 = vmax.f32 %v1910_v19, %v1944_v42 }
 0x400   : > { %v1953_v29 = vmax.f32 %v1911_v32, %v1945_v30  ;;  %v1946_v20 = vsel %vm4674_vm9, %v1924_v40, %v1937_v10  ;;  %v1947_v41 = vsel %vm4954_vm15, %v1930_v22, %v1938_v33  ;;  %vm5029_vm14 = vnez %v4746_v34  ;;  %v5030_v32 = vld [vmem:[#allocation11_spill] sm:$0xff]  ;;  %v2689_v40 = vld [vmem:[%s4489_s1 + $0x68] sm:$0xff]  ;;  %v1978_v30 = vpop.permute.xlu1 %1977  ;;  %v1973_v10 = vpop.permute.xlu0 %1972 }
 0x401   : > { %v1956_v55 = vsel %vm5027_vm7, %v1948_v63, %v1952_v27  ;;  %v1950_v56 = vmin.f32 %v1912_v61, %v1946_v20  ;;  %v1951_v6 = vmin.f32 %v1913_v48, %v1947_v41  ;;  %v1954_v50 = vmax.f32 %v1912_v61, %v1946_v20  ;;  %v2690_v61 = vld [vmem:[%s4489_s1 + $0x70] sm:$0xff] }
 0x402   : > { %v1957_v23 = vsel %vm5028_vm3, %v1949_v17, %v1953_v29  ;;  %v1955_v5 = vmax.f32 %v1913_v48, %v1947_v41  ;;  %vm5031_vm10 = vnez %v5030_v32  ;;  %vm5032_vm11 = vcmask 261120   ;;  %v2691_v48 = vld [vmem:[%s4489_s1 + $0x78] sm:$0xff] }
 0x403   : > { %v2824_v58 = vpack.c.bf16 %v1957_v23, %v1956_v55  ;;  %v1958_v19 = vsel %vm5029_vm14, %v1950_v56, %v1954_v50  ;;  %vm5033_vm13 = vmmov %vm5032_vm11  ;;  %v4600_v22 = vmov 0.0|0.0   ;;  %vm2999_vm12 = vmmov 0  }
 0x404   : > { %v1959_v0 = vsel %vm5031_vm10, %v1951_v6, %v1955_v5  ;;  %vm5034_vm5 = vmmov %vm5032_vm11  ;;  %2832 = vmatprep.subr.bf16.mxu0 %v4600_v22  ;;  %v3000_v42 = vmov 0.0   ;;  %v1988_v41 = vpop.permute.xlu1 %1987  ;;  %v1983_v6 = vpop.permute.xlu0 %1982 }
 0x405   : > { %2825 = vmatprep.subr.bf16.mxu1 %v2824_v58  ;;  %v2828_v35 = vpack.c.bf16 %v1959_v0, %v1958_v19  ;;  %2801 = vmatprep.mubr.msk.f32.mxu0 %vm2999_vm12, %v3000_v42 }
 0x406   : > { %2827 = vmatpush3.bf16.msra.mxu1 %v2824_v58 }
 0x407   : > { %2829 = vmatprep.subr.bf16.mxu1 %v2828_v35 }
 0x40a   : > { %2831 = vmatpush3.bf16.msra.mxu1 %v2828_v35 }
 0x40d   : > { %2788 = vmatmul.mubr.msk.f32.vlgmr.msra.gmra.mrb[4].mxu1 %vm5032_vm11, %v2689_v40  ;;  %vm5035_vm11 = vcmask 1046528  }
 0x40e   : > { %2790 = vmatprep.mubr.msk.f32.mxu1 %vm5033_vm13, %v2690_v61  ;;  %vm5036_vm13 = vcmask 1040384  }
 0x40f   : > { %vm5038_vm12 = vmmov %vm5036_vm13 }
 0x410   : > { %vm5041_vm14 = vmmov %vm5038_vm12 }
 0x411   : > { %2791 = vmatmul.mubr.msk.f32.gmra.mrb[6].mxu1 %vm5034_vm5, %v2691_v48  ;;  %vm5037_vm5 = vmmov %vm5035_vm11 }
 0x412   : > { %vm5039_vm10 = vmmov %vm5037_vm5 }
 0x413   : > { %vm5040_vm3 = vmmov %vm5037_vm5 }
 0x4e0   : > { %v2789_v33 = vpop.f32.mrb[4].mxu1 }
 0x4e1   : > { %v2074_v63 = vadd.f32 %v2789_v33, %v1978_v30  ;;  %v2068_v17 = vpop.f32.mrb[5].mxu1 }
 0x4e2   : > { %v2069_v27 = vadd.f32 %v2068_v17, %v1973_v10 }
 0x4e3   : > { %v2092_v29 = vrot.slane %v2074_v63, 1  ;;  %v2107_v20 = vrot.slane %v2074_v63, 7 }
 0x4e4   : > { %v2091_v55 = vrot.slane %v2069_v27, 1  ;;  %v2106_v23 = vrot.slane %v2069_v27, 7  ;;  %v2792_v56 = vpop.f32.mrb[6].mxu1 }
 0x4e5   : > { %v2084_v58 = vadd.f32 %v2792_v56, %v1988_v41  ;;  %v2078_v50 = vpop.f32.mrb[7].mxu1 }
 0x4e6   : > { %v2093_v5 = vsel %vm5035_vm11, %v2091_v55, %v2092_v29  ;;  %v2108_v19 = vsel %vm5036_vm13, %v2106_v23, %v2107_v20  ;;  %v2079_v0 = vadd.f32 %v2078_v50, %v1983_v6  ;;  %vm5042_vm11 = vmmov %vm5038_vm12 }
 0x4e7   : > { %v2096_v35 = vrot.slane %v2084_v58, 1  ;;  %v2104_v40 = vrot.slane %v2084_v58, 7 }
 0x4e8   : > { %v2094_v61 = vrot.slane %v2079_v0, 1  ;;  %v2109_v48 = vrot.slane %v2079_v0, 7 }
 0x4e9   : > { %v2103_v42 = vsel %vm5037_vm5, %v2096_v35, %v2091_v55  ;;  %v2116_v30 = vsel %vm5038_vm12, %v2104_v40, %v2106_v23  ;;  %vm5049_vm5 = vcmask 1045504   ;;  %vm5050_vm12 = vcmask 1041408  }
 0x4ea   : > { %v2117_v10 = vsel %vm4671_vm1, %v2093_v5, %v2116_v30  ;;  %v2095_v33 = vsel %vm5039_vm10, %v2092_v29, %v2094_v61  ;;  %v2097_v17 = vsel %vm5040_vm3, %v2094_v61, %v2096_v35  ;;  %v2110_v41 = vsel %vm5041_vm14, %v2107_v20, %v2109_v48 }
 0x4eb   : > { %v2121_v56 = vmin.f32 %v2069_v27, %v2117_v10  ;;  %v2125_v22 = vmax.f32 %v2069_v27, %v2117_v10  ;;  %v2111_v6 = vsel %vm5042_vm11, %v2109_v48, %v2104_v40  ;;  %v2118_v50 = vsel %vm4738_vm6, %v2095_v33, %v2108_v19  ;;  %v5045_v48 = vld [vmem:[#allocation8_spill] sm:$0xff]  ;;  %vm5051_vm11 = vmmov %vm5049_vm5 }
 0x4ec   : > { %v2119_v55 = vsel %vm4674_vm9, %v2097_v17, %v2110_v41  ;;  %v2120_v23 = vsel %vm4954_vm15, %v2103_v42, %v2111_v6  ;;  %v2122_v5 = vmin.f32 %v2074_v63, %v2118_v50  ;;  %v2126_v30 = vmax.f32 %v2074_v63, %v2118_v50  ;;  %v5047_v42 = vld [vmem:[#allocation9_spill] sm:$0xff] }
 0x4ed   : > { %vm5043_vm10 = vnez %v4625_v9  ;;  %v2123_v35 = vmin.f32 %v2079_v0, %v2119_v55  ;;  %v2124_v20 = vmin.f32 %v2084_v58, %v2120_v23  ;;  %v2127_v61 = vmax.f32 %v2079_v0, %v2119_v55 }
 0x4ee   : > { %v2129_v29 = vsel %vm5043_vm10, %v2121_v56, %v2125_v22  ;;  %v2128_v40 = vmax.f32 %v2084_v58, %v2120_v23  ;;  %vm5044_vm3 = vnez %v4638_v26  ;;  %vm5046_vm14 = vnez %v5045_v48  ;;  %vm5052_vm10 = vmmov %vm5050_vm12 }
 0x4ef   : > { %v2137_v27 = vrot.slane %v2129_v29, 2  ;;  %v2152_v10 = vrot.slane %v2129_v29, 6  ;;  %v2130_v19 = vsel %vm5044_vm3, %v2122_v5, %v2126_v30  ;;  %v2131_v33 = vsel %vm5046_vm14, %v2123_v35, %v2127_v61  ;;  %vm5053_vm3 = vmmov %vm5049_vm5 }
 0x4f0   : > { %v2138_v17 = vrot.slane %v2130_v19, 2  ;;  %v2153_v41 = vrot.slane %v2130_v19, 6  ;;  %vm5048_vm13 = vnez %v5047_v42  ;;  %v2140_v6 = vrot.slane %v2131_v33, 2  ;;  %vm5054_vm14 = vmmov %vm5053_vm3 }
 0x4f1   : > { %v2132_v63 = vsel %vm5048_vm13, %v2124_v20, %v2128_v40  ;;  %v2155_v9 = vrot.slane %v2131_v33, 6  ;;  %vm5055_vm7 = vmmov %vm5052_vm10  ;;  %vm5059_vm13 = vnez %v4666_v4 }
 0x4f2   : > { %v2139_v22 = vsel %vm5049_vm5, %v2137_v27, %v2138_v17  ;;  %v2142_v56 = vrot.slane %v2132_v63, 2  ;;  %v2150_v0 = vrot.slane %v2132_v63, 6  ;;  %v2154_v50 = vsel %vm5050_vm12, %v2152_v10, %v2153_v41  ;;  %vm5056_vm15 = vmmov %vm5055_vm7 }
 0x4f3   : > { %v2141_v58 = vsel %vm5051_vm11, %v2138_v17, %v2140_v6  ;;  %v2156_v26 = vsel %vm5052_vm10, %v2153_v41, %v2155_v9  ;;  %vm5060_vm5 = vnez %v4669_v11  ;;  %vm5061_vm12 = vcmask 1046528  }
 0x4f4   : > { %v2143_v55 = vsel %vm5053_vm3, %v2140_v6, %v2142_v56  ;;  %v2149_v23 = vsel %vm5054_vm14, %v2142_v56, %v2137_v27  ;;  %v2157_v5 = vsel %vm5055_vm7, %v2155_v9, %v2150_v0  ;;  %v2162_v30 = vsel %vm5056_vm15, %v2150_v0, %v2152_v10  ;;  %vm5062_vm11 = vmmov %vm5061_vm12 }
 0x4f5   : > { %v2163_v35 = vsel %vm4710_vm2, %v2139_v22, %v2162_v30  ;;  %v2164_v20 = vsel %vm4776_vm0, %v2141_v58, %v2154_v50  ;;  %v2165_v61 = vsel %vm4777_vm4, %v2143_v55, %v2156_v26  ;;  %v2166_v40 = vsel %vm4778_vm8, %v2149_v23, %v2157_v5  ;;  %vm5063_vm10 = vmmov %vm5062_vm11 }
 0x4f6   : > { %v2167_v48 = vmin.f32 %v2129_v29, %v2163_v35  ;;  %v2168_v17 = vmin.f32 %v2130_v19, %v2164_v20  ;;  %v2169_v41 = vmin.f32 %v2131_v33, %v2165_v61  ;;  %v2170_v27 = vmin.f32 %v2132_v63, %v2166_v40  ;;  %vm5064_vm3 = vmmov %vm5063_vm10 }
 0x4f7   : > { %v2171_v42 = vmax.f32 %v2129_v29, %v2163_v35  ;;  %v2172_v6 = vmax.f32 %v2130_v19, %v2164_v20  ;;  %v2173_v9 = vmax.f32 %v2131_v33, %v2165_v61  ;;  %v2174_v10 = vmax.f32 %v2132_v63, %v2166_v40 }
 0x4f8   : > { %vm5057_vm15 = vnez %v4654_v57  ;;  %vm5058_vm7 = vnez %v4659_v60  ;;  %vm5065_vm14 = vcmask 1040384  }
 0x4f9   : > { %v2175_v22 = vsel %vm5057_vm15, %v2167_v48, %v2171_v42  ;;  %v2176_v56 = vsel %vm5058_vm7, %v2168_v17, %v2172_v6  ;;  %v2177_v0 = vsel %vm5059_vm13, %v2169_v41, %v2173_v9  ;;  %v2178_v50 = vsel %vm5060_vm5, %v2170_v27, %v2174_v10  ;;  %vm5066_vm15 = vmmov %vm5065_vm14 }
 0x4fa   : > { %v2183_v58 = vrot.slane %v2175_v22, 1  ;;  %v2184_v26 = vrot.slane %v2176_v56, 1  ;;  %v2186_v55 = vrot.slane %v2177_v0, 1  ;;  %v2188_v23 = vrot.slane %v2178_v50, 1  ;;  %vm5067_vm7 = vmmov %vm5065_vm14 }
 0x4fb   : > { %v2196_v29 = vrot.slane %v2178_v50, 7  ;;  %v2198_v19 = vrot.slane %v2175_v22, 7  ;;  %v2199_v33 = vrot.slane %v2176_v56, 7  ;;  %v2201_v63 = vrot.slane %v2177_v0, 7  ;;  %vm5068_vm13 = vmmov %vm5067_vm7 }
 0x4fc   : > { %v2185_v57 = vsel %vm5061_vm12, %v2183_v58, %v2184_v26  ;;  %v2187_v5 = vsel %vm5062_vm11, %v2184_v26, %v2186_v55  ;;  %v2189_v60 = vsel %vm5063_vm10, %v2186_v55, %v2188_v23  ;;  %v2195_v4 = vsel %vm5064_vm3, %v2188_v23, %v2183_v58 }
 0x4fd   : > { %v2200_v30 = vsel %vm5065_vm14, %v2198_v19, %v2199_v33  ;;  %v2202_v11 = vsel %vm5066_vm15, %v2199_v33, %v2201_v63  ;;  %v2203_v35 = vsel %vm5067_vm7, %v2201_v63, %v2196_v29  ;;  %v2208_v20 = vsel %vm5068_vm13, %v2196_v29, %v2198_v19 }
 0x4fe   : > { %v2209_v61 = vsel %vm4671_vm1, %v2185_v57, %v2208_v20  ;;  %v2210_v40 = vsel %vm4738_vm6, %v2187_v5, %v2200_v30  ;;  %v2211_v48 = vsel %vm4674_vm9, %v2189_v60, %v2202_v11  ;;  %vm5069_vm5 = vnez %v4617_v1 }
 0x4ff   : > { %v2212_v17 = vsel %vm5069_vm5, %v2195_v4, %v2203_v35  ;;  %v2213_v41 = vmin.f32 %v2175_v22, %v2209_v61  ;;  %v2214_v27 = vmin.f32 %v2176_v56, %v2210_v40  ;;  %v2215_v42 = vmin.f32 %v2177_v0, %v2211_v48 }
 0x500   : > { %v2216_v6 = vmin.f32 %v2178_v50, %v2212_v17  ;;  %v2217_v9 = vmax.f32 %v2175_v22, %v2209_v61  ;;  %v2218_v10 = vmax.f32 %v2176_v56, %v2210_v40  ;;  %v2219_v58 = vmax.f32 %v2177_v0, %v2211_v48 }
 0x501   : > { %v2220_v26 = vmax.f32 %v2178_v50, %v2212_v17  ;;  %vm5070_vm12 = vnez %v4678_v39  ;;  %vm5071_vm11 = vnez %v4685_v45  ;;  %vm5072_vm10 = vnez %v4692_v53 }
 0x502   : > { %v2221_v55 = vsel %vm5070_vm12, %v2213_v41, %v2217_v9  ;;  %v2222_v23 = vsel %vm5071_vm11, %v2214_v27, %v2218_v10  ;;  %v2223_v29 = vsel %vm5072_vm10, %v2215_v42, %v2219_v58  ;;  %vm5073_vm3 = vnez %v4696_v59 }
 0x503   : > { %v2224_v19 = vsel %vm5073_vm3, %v2216_v6, %v2220_v26  ;;  %v2229_v33 = vrot.slane %v2221_v55, 4  ;;  %v2230_v63 = vrot.slane %v2222_v23, 4  ;;  %v2232_v57 = vrot.slane %v2223_v29, 4 }
 0x504   : > { %v2234_v5 = vrot.slane %v2224_v19, 4  ;;  %vm5074_vm14 = vcmask 1043456   ;;  %vm5078_vm12 = vnez %v4627_v12  ;;  %vm5079_vm11 = vnez %v4629_v13 }
 0x505   : > { %v2231_v22 = vsel %vm5074_vm14, %v2229_v33, %v2230_v63  ;;  %vm5075_vm15 = vmmov %vm5074_vm14  ;;  %vm5080_vm10 = vnez %v4631_v14  ;;  %vm5081_vm3 = vnez %v4633_v15 }
 0x506   : > { %v2233_v56 = vsel %vm5075_vm15, %v2230_v63, %v2232_v57  ;;  %vm5076_vm7 = vmmov %vm5074_vm14  ;;  %vm5082_vm14 = vnez %v4705_v31  ;;  %vm5083_vm15 = vnez %v4707_v37 }
 0x507   : > { %v2235_v39 = vsel %vm5076_vm7, %v2232_v57, %v2234_v5  ;;  %vm5077_vm13 = vmmov %vm5076_vm7  ;;  %v2243_v53 = vsel %vm5079_vm11, %v2233_v56, %v2231_v22  ;;  %vm5084_vm7 = vnez %v4699_v24 }
 0x508   : > { %v2241_v0 = vsel %vm5077_vm13, %v2234_v5, %v2229_v33  ;;  %v2244_v59 = vsel %vm5080_vm10, %v2235_v39, %v2233_v56  ;;  %v2247_v4 = vmin.f32 %v2222_v23, %v2243_v53  ;;  %v2251_v20 = vmax.f32 %v2222_v23, %v2243_v53 }
 0x509   : > { %v2242_v45 = vsel %vm5078_vm12, %v2231_v22, %v2241_v0  ;;  %v2245_v50 = vsel %vm5081_vm3, %v2241_v0, %v2235_v39  ;;  %v2248_v30 = vmin.f32 %v2223_v29, %v2244_v59  ;;  %v2252_v61 = vmax.f32 %v2223_v29, %v2244_v59 }
 0x50a   : > { %v2246_v60 = vmin.f32 %v2221_v55, %v2242_v45  ;;  %v2249_v11 = vmin.f32 %v2224_v19, %v2245_v50  ;;  %v2250_v35 = vmax.f32 %v2221_v55, %v2242_v45  ;;  %v2253_v40 = vmax.f32 %v2224_v19, %v2245_v50 }
 0x50b   : > { %v2255_v17 = vsel %vm5083_vm15, %v2247_v4, %v2251_v20  ;;  %v2256_v41 = vsel %vm5084_vm7, %v2248_v30, %v2252_v61  ;;  %vm5085_vm13 = vnez %v4709_v44  ;;  %vm5086_vm3 = vcmask 1045504  }
 0x50c   : > { %v2254_v48 = vsel %vm5082_vm14, %v2246_v60, %v2250_v35  ;;  %v2257_v27 = vsel %vm5085_vm13, %v2249_v11, %v2253_v40  ;;  %v2263_v6 = vrot.slane %v2255_v17, 2  ;;  %v2265_v9 = vrot.slane %v2256_v41, 2  ;;  %vm5087_vm14 = vmmov %vm5086_vm3 }
 0x50d   : > { %v2262_v42 = vrot.slane %v2254_v48, 2  ;;  %v2267_v10 = vrot.slane %v2257_v27, 2  ;;  %v2275_v58 = vrot.slane %v2257_v27, 6  ;;  %v2277_v26 = vrot.slane %v2254_v48, 6  ;;  %vm5088_vm10 = vmmov %vm5086_vm3 }
 0x50e   : > { %v2278_v55 = vrot.slane %v2255_v17, 6  ;;  %v2280_v23 = vrot.slane %v2256_v41, 6  ;;  %v2266_v29 = vsel %vm5086_vm3, %v2263_v6, %v2265_v9  ;;  %vm5089_vm15 = vmmov %vm5086_vm3  ;;  %vm5090_vm7 = vcmask 1041408  }
 0x50f   : > { %v2268_v19 = vsel %vm5087_vm14, %v2265_v9, %v2267_v10  ;;  %v2274_v37 = vsel %vm5088_vm10, %v2267_v10, %v2262_v42  ;;  %v2264_v33 = vsel %vm5089_vm15, %v2262_v42, %v2263_v6  ;;  %vm5091_vm11 = vmmov %vm5090_vm7  ;;  %vm5096_vm10 = vnez %v4713_v16 }
 0x510   : > { %v2279_v63 = vsel %vm5090_vm7, %v2277_v26, %v2278_v55  ;;  %v2281_v44 = vsel %vm5091_vm11, %v2278_v55, %v2280_v23  ;;  %vm5092_vm13 = vmmov %vm5090_vm7  ;;  %vm5095_vm11 = vnez %v4726_v28  ;;  %vm5097_vm3 = vnez %v4729_v36 }
 0x511   : > { %v2282_v57 = vsel %vm5092_vm13, %v2280_v23, %v2275_v58  ;;  %vm5093_vm12 = vmmov %vm5090_vm7  ;;  %v2289_v22 = vsel %vm4776_vm0, %v2266_v29, %v2279_v63  ;;  %v2290_v56 = vsel %vm4777_vm4, %v2268_v19, %v2281_v44  ;;  %vm5098_vm14 = vcmask 1046528  }
 0x512   : > { %v2287_v5 = vsel %vm5093_vm12, %v2275_v58, %v2277_v26  ;;  %v2291_v39 = vsel %vm4778_vm8, %v2274_v37, %v2282_v57  ;;  %v2293_v45 = vmin.f32 %v2255_v17, %v2289_v22  ;;  %v2294_v53 = vmin.f32 %v2256_v41, %v2290_v56  ;;  %vm5099_vm7 = vmmov %vm5098_vm14 }
 0x513   : > { %v2288_v0 = vsel %vm4710_vm2, %v2264_v33, %v2287_v5  ;;  %v2295_v59 = vmin.f32 %v2257_v27, %v2291_v39  ;;  %v2297_v50 = vmax.f32 %v2255_v17, %v2289_v22  ;;  %v2298_v60 = vmax.f32 %v2256_v41, %v2290_v56  ;;  %vm5100_vm15 = vmmov %vm5099_vm7 }
 0x514   : > { %v2299_v4 = vmax.f32 %v2257_v27, %v2291_v39  ;;  %v2292_v30 = vmin.f32 %v2254_v48, %v2288_v0  ;;  %v2296_v11 = vmax.f32 %v2254_v48, %v2288_v0  ;;  %vm5094_vm12 = vnez %v4720_v21  ;;  %vm5101_vm13 = vmmov %vm5099_vm7 }
 0x515   : > { %v2301_v35 = vsel %vm5094_vm12, %v2293_v45, %v2297_v50  ;;  %v2302_v20 = vsel %vm5095_vm11, %v2294_v53, %v2298_v60  ;;  %vm5102_vm12 = vcmask 1040384  }
 0x516   : > { %v2300_v61 = vsel %vm5096_vm10, %v2292_v30, %v2296_v11  ;;  %v2303_v40 = vsel %vm5097_vm3, %v2295_v59, %v2299_v4  ;;  %v2309_v42 = vrot.slane %v2301_v35, 1  ;;  %v2326_v6 = vrot.slane %v2302_v20, 7  ;;  %vm5103_vm11 = vmmov %vm5102_vm12 }
 0x517   : > { %v2308_v9 = vrot.slane %v2300_v61, 1  ;;  %v2311_v17 = vrot.slane %v2302_v20, 1  ;;  %v2313_v41 = vrot.slane %v2303_v40, 1  ;;  %v2321_v27 = vrot.slane %v2303_v40, 7  ;;  %vm5104_vm3 = vmmov %vm5103_vm11 }
 0x518   : > { %v2323_v10 = vrot.slane %v2300_v61, 7  ;;  %v2324_v48 = vrot.slane %v2301_v35, 7  ;;  %vm5105_vm10 = vmmov %vm5104_vm3 }
 0x519   : > { %v2310_v21 = vsel %vm5098_vm14, %v2308_v9, %v2309_v42  ;;  %v2312_v58 = vsel %vm5099_vm7, %v2309_v42, %v2311_v17  ;;  %v2314_v26 = vsel %vm5100_vm15, %v2311_v17, %v2313_v41  ;;  %v2320_v55 = vsel %vm5101_vm13, %v2313_v41, %v2308_v9 }
 0x51a   : > { %v2325_v23 = vsel %vm5102_vm12, %v2323_v10, %v2324_v48  ;;  %v2327_v36 = vsel %vm5103_vm11, %v2324_v48, %v2326_v6  ;;  %v2328_v29 = vsel %vm5104_vm3, %v2326_v6, %v2321_v27  ;;  %v2333_v19 = vsel %vm5105_vm10, %v2321_v27, %v2323_v10 }
 0x51b   : > { %v2334_v37 = vsel %vm4671_vm1, %v2310_v21, %v2333_v19  ;;  %v2335_v33 = vsel %vm4738_vm6, %v2312_v58, %v2325_v23  ;;  %v2336_v63 = vsel %vm4674_vm9, %v2314_v26, %v2327_v36  ;;  %v2337_v44 = vsel %vm5069_vm5, %v2320_v55, %v2328_v29 }
 0x51c   : > { %v2338_v57 = vmin.f32 %v2300_v61, %v2334_v37  ;;  %v2339_v5 = vmin.f32 %v2301_v35, %v2335_v33  ;;  %v2340_v22 = vmin.f32 %v2302_v20, %v2336_v63  ;;  %v2341_v56 = vmin.f32 %v2303_v40, %v2337_v44 }
 0x51d   : > { %v2342_v39 = vmax.f32 %v2300_v61, %v2334_v37  ;;  %v2343_v0 = vmax.f32 %v2301_v35, %v2335_v33  ;;  %v2344_v45 = vmax.f32 %v2302_v20, %v2336_v63  ;;  %v2345_v53 = vmax.f32 %v2303_v40, %v2337_v44 }
 0x51e   : > { %vm5106_vm11 = vnez %v4733_v18  ;;  %vm5107_vm10 = vnez %v4740_v25  ;;  %vm5108_vm14 = vnez %v4746_v34  ;;  %vm5109_vm7 = vnez %v4749_v46 }
 0x51f   : > { %v2346_v59 = vsel %vm5106_vm11, %v2338_v57, %v2342_v39  ;;  %v2347_v50 = vsel %vm5107_vm10, %v2339_v5, %v2343_v0  ;;  %v2348_v60 = vsel %vm5108_vm14, %v2340_v22, %v2344_v45  ;;  %v2349_v4 = vsel %vm5109_vm7, %v2341_v56, %v2345_v53 }
 0x520   : > { %v2354_v30 = vmin.f32 %v2346_v59, %v2347_v50  ;;  %v2356_v11 = vmin.f32 %v2348_v60, %v2349_v4  ;;  %v2359_v42 = vmax.f32 %v2347_v50, %v2346_v59  ;;  %v2361_v6 = vmax.f32 %v2349_v4, %v2348_v60 }
 0x521   : > { %vm5110_vm15 = vcmask 1043456   ;;  %vm5114_vm10 = vnez %v4627_v12  ;;  %vm5115_vm7 = vnez %v4629_v13  ;;  %vm5116_vm14 = vnez %v4631_v14 }
 0x522   : > { %v2370_v61 = vrot.slane %v2354_v30, 4  ;;  %v2371_v35 = vrot.slane %v2359_v42, 4  ;;  %v2373_v20 = vrot.slane %v2356_v11, 4  ;;  %v2375_v40 = vrot.slane %v2361_v6, 4  ;;  %vm5111_vm13 = vmmov %vm5110_vm15 }
 0x523   : > { %vm5112_vm12 = vmmov %vm5111_vm13  ;;  %vm5117_vm11 = vnez %v4633_v15 }
 0x524   : > { %v2372_v9 = vsel %vm5110_vm15, %v2370_v61, %v2371_v35  ;;  %v2374_v17 = vsel %vm5111_vm13, %v2371_v35, %v2373_v20  ;;  %v2376_v25 = vsel %vm5112_vm12, %v2373_v20, %v2375_v40  ;;  %vm5113_vm3 = vmmov %vm5112_vm12  ;;  %vm5118_vm15 = vnez %v4705_v31 }
 0x525   : > { %v2382_v41 = vsel %vm5113_vm3, %v2375_v40, %v2370_v61  ;;  %v2384_v27 = vsel %vm5115_vm7, %v2374_v17, %v2372_v9  ;;  %v2385_v10 = vsel %vm5116_vm14, %v2376_v25, %v2374_v17  ;;  %vm5119_vm13 = vnez %v4756_v38 }
 0x526   : > { %v2383_v46 = vsel %vm5114_vm10, %v2372_v9, %v2382_v41  ;;  %v2386_v48 = vsel %vm5117_vm11, %v2382_v41, %v2376_v25  ;;  %v2388_v58 = vmin.f32 %v2359_v42, %v2384_v27  ;;  %v2389_v26 = vmin.f32 %v2356_v11, %v2385_v10 }
 0x527   : > { %v2387_v21 = vmin.f32 %v2354_v30, %v2383_v46  ;;  %v2390_v55 = vmin.f32 %v2361_v6, %v2386_v48  ;;  %v2391_v23 = vmax.f32 %v2354_v30, %v2383_v46  ;;  %v2392_v36 = vmax.f32 %v2359_v42, %v2384_v27 }
 0x528   : > { %v2393_v29 = vmax.f32 %v2356_v11, %v2385_v10  ;;  %v2394_v19 = vmax.f32 %v2361_v6, %v2386_v48  ;;  %vm5120_vm12 = vnez %v4699_v24  ;;  %vm5121_vm14 = vnez %v4763_v49 }
 0x529   : > { %v2395_v12 = vsel %vm5118_vm15, %v2387_v21, %v2391_v23  ;;  %v2396_v13 = vsel %vm5119_vm13, %v2388_v58, %v2392_v36  ;;  %vm5122_vm11 = vcmask 1045504   ;;  %vm5126_vm15 = vcmask 1041408  }
 0x52a   : > { %v2397_v14 = vsel %vm5120_vm12, %v2389_v26, %v2393_v29  ;;  %v2398_v15 = vsel %vm5121_vm14, %v2390_v55, %v2394_v19  ;;  %v2403_v37 = vrot.slane %v2395_v12, 2  ;;  %v2404_v33 = vrot.slane %v2396_v13, 2  ;;  %vm5123_vm3 = vmmov %vm5122_vm11 }
 0x52b   : > { %v2406_v63 = vrot.slane %v2397_v14, 2  ;;  %v2408_v44 = vrot.slane %v2398_v15, 2  ;;  %v2416_v57 = vrot.slane %v2398_v15, 6  ;;  %v2418_v5 = vrot.slane %v2395_v12, 6  ;;  %vm5124_vm10 = vmmov %vm5123_vm3 }
 0x52c   : > { %v2419_v22 = vrot.slane %v2396_v13, 6  ;;  %v2421_v56 = vrot.slane %v2397_v14, 6  ;;  %v2405_v31 = vsel %vm5122_vm11, %v2403_v37, %v2404_v33  ;;  %vm5125_vm7 = vmmov %vm5123_vm3  ;;  %vm5130_vm11 = vnez %v4713_v16 }
 0x52d   : > { %v2407_v39 = vsel %vm5123_vm3, %v2404_v33, %v2406_v63  ;;  %v2409_v38 = vsel %vm5124_vm10, %v2406_v63, %v2408_v44  ;;  %v2415_v24 = vsel %vm5125_vm7, %v2408_v44, %v2403_v37  ;;  %vm5127_vm13 = vmmov %vm5126_vm15  ;;  %vm5136_vm10 = vcmask 1040384  }
 0x52e   : > { %v2420_v0 = vsel %vm5126_vm15, %v2418_v5, %v2419_v22  ;;  %v2422_v49 = vsel %vm5127_vm13, %v2419_v22, %v2421_v56  ;;  %vm5128_vm12 = vmmov %vm5127_vm13 }
 0x52f   : > { %v2423_v45 = vsel %vm5128_vm12, %v2421_v56, %v2416_v57  ;;  %vm5129_vm14 = vmmov %vm5128_vm12  ;;  %v2430_v50 = vsel %vm4776_vm0, %v2407_v39, %v2420_v0  ;;  %v2431_v60 = vsel %vm4777_vm4, %v2409_v38, %v2422_v49  ;;  %vm5132_vm0 = vnez %v4726_v28 }
 0x530   : > { %v2428_v53 = vsel %vm5129_vm14, %v2416_v57, %v2418_v5  ;;  %v2432_v4 = vsel %vm4778_vm8, %v2415_v24, %v2423_v45  ;;  %v2434_v11 = vmin.f32 %v2396_v13, %v2430_v50  ;;  %v2435_v42 = vmin.f32 %v2397_v14, %v2431_v60  ;;  %vm5137_vm7 = vmmov %vm5136_vm10 }
 0x531   : > { %v2429_v59 = vsel %vm4710_vm2, %v2405_v31, %v2428_v53  ;;  %v2436_v6 = vmin.f32 %v2398_v15, %v2432_v4  ;;  %v2438_v35 = vmax.f32 %v2396_v13, %v2430_v50  ;;  %v2439_v20 = vmax.f32 %v2397_v14, %v2431_v60  ;;  %vm5140_vm12 = vmmov %vm5137_vm7 }
 0x532   : > { %v2433_v30 = vmin.f32 %v2395_v12, %v2429_v59  ;;  %v2437_v61 = vmax.f32 %v2395_v12, %v2429_v59  ;;  %v2440_v40 = vmax.f32 %v2398_v15, %v2432_v4  ;;  %vm5131_vm2 = vnez %v4775_v54  ;;  %vm5141_vm14 = vmmov %vm5137_vm7 }
 0x533   : > { %v2442_v2 = vsel %vm5131_vm2, %v2434_v11, %v2438_v35  ;;  %v2443_v3 = vsel %vm5132_vm0, %v2435_v42, %v2439_v20  ;;  %vm5133_vm4 = vnez %v4781_v8  ;;  %vm5134_vm8 = vcmask 1046528  }
 0x534   : > { %v2441_v47 = vsel %vm5130_vm11, %v2433_v30, %v2437_v61  ;;  %v2444_v7 = vsel %vm5133_vm4, %v2436_v6, %v2440_v40  ;;  %v2450_v17 = vrot.slane %v2442_v2, 1  ;;  %v2452_v25 = vrot.slane %v2443_v3, 1  ;;  %vm5135_vm3 = vmmov %vm5134_vm8 }
 0x535   : > { %v2449_v9 = vrot.slane %v2441_v47, 1  ;;  %v2462_v41 = vrot.slane %v2444_v7, 7  ;;  %v2464_v46 = vrot.slane %v2441_v47, 7  ;;  %v2465_v27 = vrot.slane %v2442_v2, 7  ;;  %vm5138_vm15 = vmmov %vm5135_vm3 }
 0x536   : > { %v2454_v10 = vrot.slane %v2444_v7, 1  ;;  %v2467_v48 = vrot.slane %v2443_v3, 7  ;;  %v2453_v21 = vsel %vm5135_vm3, %v2450_v17, %v2452_v25  ;;  %vm5139_vm13 = vmmov %vm5135_vm3  ;;  %vm5142_vm11 = vnez %v4733_v18 }
 0x537   : > { %v2451_v16 = vsel %vm5134_vm8, %v2449_v9, %v2450_v17  ;;  %v2466_v54 = vsel %vm5136_vm10, %v2464_v46, %v2465_v27  ;;  %v2474_v28 = vsel %vm5137_vm7, %v2462_v41, %v2464_v46  ;;  %v5146_v5 = vmov 0.0|0.0  }
 0x538   : > { %v2455_v58 = vsel %vm5138_vm15, %v2452_v25, %v2454_v10  ;;  %v2461_v8 = vsel %vm5139_vm13, %v2454_v10, %v2449_v9  ;;  %v2475_v26 = vsel %vm4671_vm1, %v2451_v16, %v2474_v28  ;;  %v2476_v55 = vsel %vm4738_vm6, %v2453_v21, %v2466_v54 }
 0x539   : > { %v2468_v23 = vsel %vm5140_vm12, %v2465_v27, %v2467_v48  ;;  %v2469_v36 = vsel %vm5141_vm14, %v2467_v48, %v2462_v41  ;;  %v2479_v29 = vmin.f32 %v2441_v47, %v2475_v26  ;;  %v2480_v19 = vmin.f32 %v2442_v2, %v2476_v55 }
 0x53a   : > { %v2483_v12 = vmax.f32 %v2441_v47, %v2475_v26  ;;  %v2484_v13 = vmax.f32 %v2442_v2, %v2476_v55  ;;  %v2477_v14 = vsel %vm4674_vm9, %v2455_v58, %v2468_v23  ;;  %v2478_v15 = vsel %vm5069_vm5, %v2461_v8, %v2469_v36 }
 0x53b   : > { %vm5143_vm1 = vnez %v4912_v62  ;;  %v2481_v37 = vmin.f32 %v2443_v3, %v2477_v14  ;;  %v2482_v33 = vmin.f32 %v2444_v7, %v2478_v15  ;;  %v2485_v44 = vmax.f32 %v2443_v3, %v2477_v14  ;;  %v2700_v62 = vld [vmem:[%s4489_s1 + $0x80] sm:$0xff] }
 0x53c   : > { %v2487_v43 = vsel %vm5142_vm11, %v2479_v29, %v2483_v12  ;;  %v2488_v51 = vsel %vm5143_vm1, %v2480_v19, %v2484_v13  ;;  %v2486_v57 = vmax.f32 %v2444_v7, %v2478_v15  ;;  %vm5144_vm6 = vnez %v4746_v34  ;;  %v2498_v34 = vpop.permute.xlu0 %2497 }
 0x53d   : > { %v2833_v63 = vpack.c.bf16 %v2488_v51, %v2487_v43  ;;  %v2489_v52 = vsel %vm5144_vm6, %v2481_v37, %v2485_v44  ;;  %vm5145_vm9 = vnez %v5030_v32  ;;  %vm5147_vm5 = vcmask 261120  }
 0x53e   : > { %v2490_v1 = vsel %vm5145_vm9, %v2482_v33, %v2486_v57 }
 0x53f   : > { %2834 = vmatpush3.bf16.msra.mxu0 %v2833_v63  ;;  %v2836_v18 = vpack.c.bf16 %v2490_v1, %v2489_v52 }
 0x540   : > { %2835 = vmatprep.subr.bf16.mxu0 %v5146_v5 }
 0x543   : > { %2837 = vmatpush3.bf16.msra.mxu0 %v2836_v18 }
 0x546   : > { %2802 = vmatmul.mubr.msk.f32.vlgmr.msra.gmra.mrb[8].mxu0 %vm5147_vm5, %v2700_v62 }
 0x619   : > { %v2569_v22 = vpop.f32.mrb[8].mxu0 }
 0x61a   : > { %v2570_v56 = vadd.f32 %v2569_v22, %v2498_v34  ;;  %v2803_v32 = vpop.f32.mrb[9].mxu0 }
 0x61c   : > { %2573 = vst [vmem:[%s186_s6] sm:$0x1] %v2570_v56 }
 0x61d   : > { %2937 = shalt.err (!%p2934_p3)
}
 0x61e   : > { %s2938_s9 = scalar_lea.hbm %s4444_s23, 16  ;;  %s2942_s30 = scalar_lea.hbm %s4491_s3, 32 }
 0x61f   : > { %p2939_p5 = scmp.ne.s32.totalorder %s4444_s23, %s2938_s9  ;;  %p2943_p9 = scmp.lt.u32.totalorder %s4444_s23, %s4491_s3 }
 0x620   : > { %p2944_p0 = scmp.lt.u32.totalorder %s2942_s30, %s2938_s9  ;;  %p2946_p6 = scmp.lt.u32.totalorder %s2938_s9, %s4444_s23 }
 0x621   : > { %p2940_p7 = pnand %p2939_p5, %p5148_p11 }
 0x622   : > { %p2945_p2 = por %p2944_p0, %p2943_p9 }
 0x623   : > { %p2941_p8 = pneg %p2940_p7 }
 0x624   : > { %p2947_p12 = por %p2946_p6, %p2945_p2 }
 0x626   : > { %p2948_p13 = pnand %p2947_p12, %p2941_p8 }
 0x628   : > { %2951 = shalt.err (!%p2948_p13)
}
 0x629   : > { %2840 = dma.vmem_to_hbm [thread:$0]  (%p5148_p11), %s4446_s7, 16, %s4444_s23, %s2575_s20  }
 0x62a PF: > { %s2599_s11 = sand.u32 1, %s2978_s12   ;;  %p5149_p4 = scmp.ne.s32.totalorder %s4605_s25, 0 }
 0x62b   : > { %p5150_p10 = scmp.ge.s32.totalorder %s2990_s15, 2  ;;  %s2600_s17 = scalar_lea.sflag [#allocation4], %s2599_s11 }
 0x62d   : > { %p2847_p1 = pnand %p5150_p10, %p5149_p4 }
 0x62f   : > { %2973 = dma.done.wait (!%p2847_p1), %s2600_s17, 16  }
 0x630   : > { %2975 = vsyncadd (!%p2847_p1), %s2600_s17, 4294967280  ;;  %p16_p3 = scmp.ge.s32.totalorder %s3047_s18, 4   ;;  %s5151_s12 = smov %s2982_s13 }
 0x631   : > { %s5152_s13 = smov %s2986_s14  ;;  %s5153_s14 = smov %s3059_s21 }
 0x632   : > { %s5154_s15 = smov %s3047_s18  ;;  %18 = sbr.rel (!%p16_p3) target bundleno = 5 (0x5), region = 85 }
 0x639   :  { %2604 = vsyncpa [#allocation3], 1 }
 0x63a   :  { %2606 = vsyncpa [#allocation3 + $0x1], 1 }
 0x63b   :  { %2607 = vsyncpa [#allocation4], 1 }
 0x63c   :  { %2609 = vsyncpa [#allocation4 + $0x1], 1 }

</bundles_post_ra>
